<compile_context>
chip_gen: v5e
topology: v5e:2x2
jax: 0.10.0
libtpu: 0.0.40
codegen_flags: <defaults>
</compile_context>

<pallas_src>
import functools

import jax
import jax.numpy as jnp
from jax.experimental import pallas as pl
from jax.experimental.pallas import tpu as pltpu


# ---------------------------------------------------------------------------
# Fused forward kernel (single grid step, everything stays in VMEM / vregs).
# ---------------------------------------------------------------------------
def _fused_forward_kernel(x_ref, fe_w_ref, fe_b_ref,
                          w1a_ref, b1a_ref, w2a_ref, b2a_ref, d1w_ref, d1b_ref,
                          w1b_ref, b1b_ref, w2b_ref, b2b_ref, d2w_ref, d2b_ref,
                          *rest, with_loss):
    if with_loss:
        labels_ref, logits_ref, loss_ref = rest
    else:
        (logits_ref,) = rest

    B, _, T = x_ref.shape
    n1 = w1a_ref.shape[1] // 3          # rows of branch-1 features = in1 * H

    # Lane-shift matrices (zero-filled 'same' boundary).  Applied on the MXU so
    # the +/-1 time shift never needs an in-kernel lane relayout.
    ri = jax.lax.broadcasted_iota(jnp.int32, (T, T), 0)
    ci = jax.lax.broadcasted_iota(jnp.int32, (T, T), 1)
    s_next = (ri == ci + 1).astype(jnp.float32)   # (x @ s_next)[:, t] = x[:, t + 1]
    s_prev = (ci == ri + 1).astype(jnp.float32)   # (x @ s_prev)[:, t] = x[:, t - 1]

    def time_taps(a):
        # (R, T) -> (3R, T): blocks sample t-1, t, t+1 (zero outside range),
        # matching the kw-major column blocks of the packed conv weights.
        return jnp.concatenate(
            [jnp.dot(a, s_prev, preferred_element_type=jnp.float32),
             a,
             jnp.dot(a, s_next, preferred_element_type=jnp.float32)], axis=0)

    def branch(spec, w1, b1, w2, b2, dw, db):
        # spec: (Cin*H, T), rows ordered (c, y); T stays on lanes throughout.
        h = jnp.dot(w1, time_taps(spec), preferred_element_type=jnp.float32) + b1
        h = jnp.maximum(h, 0.0)                                      # (hidden*H, T)
        m = jnp.dot(w2, time_taps(h), preferred_element_type=jnp.float32) + b2  # (H, T)
        return jnp.dot(dw, m, preferred_element_type=jnp.float32) + db          # (K, T)

    loss_sum = jnp.float32(0.0)
    for b in range(B):                                   # B is tiny and static
        # fused feature extractors: (N_cat, C) @ (C, T)
        feats = jnp.dot(fe_w_ref[...], x_ref[b],
                        preferred_element_type=jnp.float32) + fe_b_ref[...]
        lg1 = branch(feats[:n1], w1a_ref[...], b1a_ref[...],
                     w2a_ref[...], b2a_ref[...], d1w_ref[...], d1b_ref[...])
        lg2 = branch(feats[n1:], w1b_ref[...], b1b_ref[...],
                     w2b_ref[...], b2b_ref[...], d2w_ref[...], d2b_ref[...])
        z = (lg1 + lg2) * 0.5                                        # (K, T)
        logits_ref[b] = z.astype(logits_ref.dtype)

        if with_loss:
            y = labels_ref[b]                                        # (K, T)
            # BCEWithLogitsLoss (mean): max(z,0) - z*y + log1p(exp(-|z|))
            per = jnp.maximum(z, 0.0) - z * y + jnp.log1p(jnp.exp(-jnp.abs(z)))
            loss_sum = loss_sum + jnp.sum(per)

    if with_loss:
        n_el = labels_ref.shape[0] * labels_ref.shape[1] * labels_ref.shape[2]
        loss_ref[...] = (loss_sum / n_el).reshape(1, 1)


# ---------------------------------------------------------------------------
# Forward (mirrors Spec2DCNNMulti.forward with do_mixup = do_cutmix = False).
# ---------------------------------------------------------------------------
def spec2dcnn_multi_forward(packed, x, labels=None):
    B, _, T = x.shape
    K = packed["dec1_w"].shape[0]
    args = [x, packed["fe_w"], packed["fe_b"],
            packed["enc1_w1"], packed["enc1_b1"], packed["enc1_w2"], packed["enc1_b2"],
            packed["dec1_w"], packed["dec1_b"],
            packed["enc2_w1"], packed["enc2_b1"], packed["enc2_w2"], packed["enc2_b2"],
            packed["dec2_w"], packed["dec2_b"]]
    cparams = pltpu.CompilerParams(vmem_limit_bytes=32 * 1024 * 1024)

    if labels is None:
        logits_kt = pl.pallas_call(
            functools.partial(_fused_forward_kernel, with_loss=False),
            out_shape=jax.ShapeDtypeStruct((B, K, T), jnp.float32),
            compiler_params=cparams,
        )(*args)
        return {"logits": jnp.transpose(logits_kt, (0, 2, 1))}

    labels_kt = jnp.transpose(labels, (0, 2, 1))            # (B, K, T), lane-dense
    logits_kt, loss = pl.pallas_call(
        functools.partial(_fused_forward_kernel, with_loss=True),
        out_shape=(jax.ShapeDtypeStruct((B, K, T), jnp.float32),
                   jax.ShapeDtypeStruct((1, 1), jnp.float32)),
        compiler_params=cparams,
    )(*args, labels_kt)
    return {"logits": jnp.transpose(logits_kt, (0, 2, 1)), "loss": loss[0, 0]}


# ---------------------------------------------------------------------------
# Deterministic stand-in parameters (natural layout) + one-time MXU repack.
# ---------------------------------------------------------------------------
def init_params(key, C, in1, in2, height, hidden, n_classes):
    ks = jax.random.split(key, 8)

    def w(k, shape, fan_in):
        return jax.random.normal(k, shape, jnp.float32) / jnp.sqrt(float(fan_in))

    def enc(k1, k2, cin):
        return {"w1": w(k1, (hidden, cin, 3, 3), 9 * cin),
                "b1": jnp.zeros((hidden,), jnp.float32),
                "w2": w(k2, (1, hidden, 3, 3), 9 * hidden),
                "b2": jnp.zeros((1,), jnp.float32)}

    return {
        "fe1_w": w(ks[0], (in1 * height, C), C),
        "fe1_b": jnp.zeros((in1 * height,), jnp.float32),
        "fe2_w": w(ks[1], (in2 * height, C), C),
        "fe2_b": jnp.zeros((in2 * height,), jnp.float32),
        "enc1": enc(ks[2], ks[3], in1),
        "enc2": enc(ks[4], ks[5], in2),
        "dec1_w": w(ks[6], (n_classes, height), height),
        "dec1_b": jnp.zeros((n_classes,), jnp.float32),
        "dec2_w": w(ks[7], (n_classes, height), height),
        "dec2_b": jnp.zeros((n_classes,), jnp.float32),
    }


def _pack_conv3x3(w, H):
    """(Cout, Cin, 3, 3) zero-padded 'same' conv -> (Cout*H, 3*Cin*H) block matrix.

    Column blocks are kw-major (t-1, t, t+1); the kh (height) offsets are folded
    into the weights via shifted identities, so the conv over (H, T) maps becomes
    a single matmul  W_big @ [x(t-1); x(t); x(t+1)].
    """
    blocks = []
    for kw in range(3):
        a = sum(jnp.kron(w[:, :, kh, kw], jnp.eye(H, k=kh - 1, dtype=w.dtype))
                for kh in range(3))
        blocks.append(a)
    return jnp.concatenate(blocks, axis=1)


def pack_params(p, height):
    def rep(b):  # per-channel bias -> per-(channel, y) row bias column
        return jnp.repeat(b, height)[:, None]

    return {
        "fe_w": jnp.concatenate([p["fe1_w"], p["fe2_w"]], axis=0),
        "fe_b": jnp.concatenate([p["fe1_b"], p["fe2_b"]], axis=0)[:, None],
        "enc1_w1": _pack_conv3x3(p["enc1"]["w1"], height),
        "enc1_b1": rep(p["enc1"]["b1"]),
        "enc1_w2": _pack_conv3x3(p["enc1"]["w2"], height),
        "enc1_b2": rep(p["enc1"]["b2"]),
        "enc2_w1": _pack_conv3x3(p["enc2"]["w1"], height),
        "enc2_b1": rep(p["enc2"]["b1"]),
        "enc2_w2": _pack_conv3x3(p["enc2"]["w2"], height),
        "enc2_b2": rep(p["enc2"]["b2"]),
        "dec1_w": p["dec1_w"], "dec1_b": p["dec1_b"][:, None],
        "dec2_w": p["dec2_w"], "dec2_b": p["dec2_b"][:, None],
    }


# ---------------------------------------------------------------------------
# Pure-JAX reference of the same stand-in network (for correctness check).
# ---------------------------------------------------------------------------
def _conv3x3_ref(x, w, b):
    """x: (Cin, H, T), w: (Cout, Cin, 3, 3), b: (Cout,) -> (Cout, H, T)."""
    _, H, T = x.shape
    xp = jnp.pad(x, ((0, 0), (1, 1), (1, 1)))
    out = jnp.broadcast_to(b[:, None, None], (w.shape[0], H, T)).astype(jnp.float32)
    for kh in range(3):
        for kw in range(3):
            out = out + jnp.einsum("oc,cht->oht", w[:, :, kh, kw],
                                   xp[:, kh:kh + H, kw:kw + T])
    return out


def spec2dcnn_multi_reference(p, x, labels=None):
    B, _, T = x.shape
    H = p["dec1_w"].shape[1]

    def branch(xb, fe_w, fe_b, enc, dec_w, dec_b):
        cin = enc["w1"].shape[1]
        spec = (fe_w @ xb + fe_b[:, None]).reshape(cin, H, T)
        h = jnp.maximum(_conv3x3_ref(spec, enc["w1"], enc["b1"]), 0.0)
        m = _conv3x3_ref(h, enc["w2"], enc["b2"])[0]
        return dec_w @ m + dec_b[:, None]

    logits = []
    for b in range(B):
        lg1 = branch(x[b], p["fe1_w"], p["fe1_b"], p["enc1"], p["dec1_w"], p["dec1_b"])
        lg2 = branch(x[b], p["fe2_w"], p["fe2_b"], p["enc2"], p["dec2_w"], p["dec2_b"])
        logits.append(((lg1 + lg2) * 0.5).T)
    logits = jnp.stack(logits, axis=0)                    # (B, T, K)
    out = {"logits": logits}
    if labels is not None:
        z, y = logits, labels
        per = jnp.maximum(z, 0.0) - z * y + jnp.log1p(jnp.exp(-jnp.abs(z)))
        out["loss"] = jnp.mean(per)
    return out


if __name__ == "__main__":
    B, C, T = 2, 4, 128            # (batch_size, n_channels, n_timesteps)
    in1, in2 = 3, 2                # in_channels_1 / in_channels_2 of the branches
    height, hidden, n_classes = 8, 16, 3

    root = jax.random.PRNGKey(0)
    kp, kx, kl = jax.random.split(root, 3)

    params = init_params(kp, C, in1, in2, height, hidden, n_classes)
    packed = pack_params(params, height)                 # one-time repack

    x = jax.random.normal(kx, (B, C, T), jnp.float32)
    labels = (jax.random.uniform(kl, (B, T, n_classes)) > 0.5).astype(jnp.float32)

    fwd = jax.jit(spec2dcnn_multi_forward)

    # training path (logits + BCE loss)
    out = fwd(packed, x, labels)
    jax.block_until_ready(out["logits"])
    jax.block_until_ready(out["loss"])
    assert out["logits"].shape == (B, T, n_classes)
    assert out["loss"].shape == ()

    # inference path (no labels -> all loss work skipped)
    out_inf = fwd(packed, x)
    jax.block_until_ready(out_inf["logits"])
    assert out_inf["logits"].shape == (B, T, n_classes)
    assert "loss" not in out_inf

    # numerical check against the pure-JAX reference of the same stand-in net
    ref = spec2dcnn_multi_reference(params, x, labels)
    max_err = float(jnp.max(jnp.abs(out["logits"] - ref["logits"])))
    assert jnp.allclose(out["logits"], ref["logits"], atol=1e-1, rtol=1e-1), max_err
    assert abs(float(out["loss"]) - float(ref["loss"])) < 5e-2, \
        (float(out["loss"]), float(ref["loss"]))
    assert jnp.allclose(out_inf["logits"], out["logits"], atol=1e-3, rtol=1e-3)

    print("KERNEL_OK")
</pallas_src>

<mosaic_0001>
module attributes {stable_mosaic.version = 11 : i64} {
  func.func @_fused_forward_kernel(%arg0: memref<2x4x128xf32, #tpu.memory_space<vmem>>, %arg1: memref<40x4xf32, #tpu.memory_space<vmem>>, %arg2: memref<40x1xf32, #tpu.memory_space<vmem>>, %arg3: memref<128x72xf32, #tpu.memory_space<vmem>>, %arg4: memref<128x1xf32, #tpu.memory_space<vmem>>, %arg5: memref<8x384xf32, #tpu.memory_space<vmem>>, %arg6: memref<8x1xf32, #tpu.memory_space<vmem>>, %arg7: memref<3x8xf32, #tpu.memory_space<vmem>>, %arg8: memref<3x1xf32, #tpu.memory_space<vmem>>, %arg9: memref<128x48xf32, #tpu.memory_space<vmem>>, %arg10: memref<128x1xf32, #tpu.memory_space<vmem>>, %arg11: memref<8x384xf32, #tpu.memory_space<vmem>>, %arg12: memref<8x1xf32, #tpu.memory_space<vmem>>, %arg13: memref<3x8xf32, #tpu.memory_space<vmem>>, %arg14: memref<3x1xf32, #tpu.memory_space<vmem>>, %arg15: memref<2x3x128xf32, #tpu.memory_space<vmem>>, %arg16: memref<2x3x128xf32, #tpu.memory_space<vmem>>, %arg17: memref<1x1xf32, #tpu.memory_space<vmem>>) attributes {dimension_semantics = [], scalar_prefetch = 0 : i64, scratch_operands = 0 : i64, tpu.core_type = #tpu.core_type<tc>} {
    %0 = tpu.iota {dimensions = array<i32: 0>} : vector<128x128xi32>
    %1 = tpu.iota {dimensions = array<i32: 1>} : vector<128x128xi32>
    %c1_i32 = arith.constant 1 : i32
    %2 = vector.broadcast %c1_i32 : i32 to vector<128x128xi32>
    %3 = arith.addi %1, %2 : vector<128x128xi32>
    %4 = arith.cmpi eq, %0, %3 : vector<128x128xi32>
    %5 = arith.extui %4 : vector<128x128xi1> to vector<128x128xi32>
    %6 = arith.sitofp %5 : vector<128x128xi32> to vector<128x128xf32>
    %c1_i32_0 = arith.constant 1 : i32
    %7 = vector.broadcast %c1_i32_0 : i32 to vector<128x128xi32>
    %8 = arith.addi %0, %7 : vector<128x128xi32>
    %9 = arith.cmpi eq, %1, %8 : vector<128x128xi32>
    %10 = arith.extui %9 : vector<128x128xi1> to vector<128x128xi32>
    %11 = arith.sitofp %10 : vector<128x128xi32> to vector<128x128xf32>
    %c0 = arith.constant 0 : index
    %c0_1 = arith.constant 0 : index
    %12 = vector.load %arg1[%c0, %c0_1] : memref<40x4xf32, #tpu.memory_space<vmem>>, vector<40x4xf32>
    %c0_2 = arith.constant 0 : index
    %c0_3 = arith.constant 0 : index
    %c0_4 = arith.constant 0 : index
    %13 = vector.load %arg0[%c0_2, %c0_3, %c0_4] : memref<2x4x128xf32, #tpu.memory_space<vmem>>, vector<1x4x128xf32>
    %14 = vector.shape_cast %13 : vector<1x4x128xf32> to vector<4x128xf32>
    %cst = arith.constant dense<0.000000e+00> : vector<40x128xf32>
    %15 = tpu.matmul %12, %14, %cst {dimension_numbers = #tpu.dot_dimension_numbers<[1], [0], [0], [1], [0, 0, 1, 1], [], []>} : vector<40x4xf32>, vector<4x128xf32>, vector<40x128xf32> -> vector<40x128xf32>
    %c0_5 = arith.constant 0 : index
    %c0_6 = arith.constant 0 : index
    %16 = vector.load %arg2[%c0_5, %c0_6] : memref<40x1xf32, #tpu.memory_space<vmem>>, vector<40x1xf32>
    %17 = vector.broadcast %16 : vector<40x1xf32> to vector<40x128xf32>
    %18 = arith.addf %15, %17 : vector<40x128xf32>
    %19 = vector.extract_strided_slice %18 {offsets = [0, 0], sizes = [24, 128], strides = [1, 1]} : vector<40x128xf32> to vector<24x128xf32>
    %c0_7 = arith.constant 0 : index
    %c0_8 = arith.constant 0 : index
    %20 = vector.load %arg3[%c0_7, %c0_8] : memref<128x72xf32, #tpu.memory_space<vmem>>, vector<128x72xf32>
    %c0_9 = arith.constant 0 : index
    %c0_10 = arith.constant 0 : index
    %21 = vector.load %arg4[%c0_9, %c0_10] : memref<128x1xf32, #tpu.memory_space<vmem>>, vector<128x1xf32>
    %c0_11 = arith.constant 0 : index
    %c0_12 = arith.constant 0 : index
    %22 = vector.load %arg5[%c0_11, %c0_12] : memref<8x384xf32, #tpu.memory_space<vmem>>, vector<8x384xf32>
    %c0_13 = arith.constant 0 : index
    %c0_14 = arith.constant 0 : index
    %23 = vector.load %arg6[%c0_13, %c0_14] : memref<8x1xf32, #tpu.memory_space<vmem>>, vector<8x1xf32>
    %c0_15 = arith.constant 0 : index
    %c0_16 = arith.constant 0 : index
    %24 = vector.load %arg7[%c0_15, %c0_16] : memref<3x8xf32, #tpu.memory_space<vmem>>, vector<3x8xf32>
    %c0_17 = arith.constant 0 : index
    %c0_18 = arith.constant 0 : index
    %25 = vector.load %arg8[%c0_17, %c0_18] : memref<3x1xf32, #tpu.memory_space<vmem>>, vector<3x1xf32>
    %cst_19 = arith.constant dense<0.000000e+00> : vector<24x128xf32>
    %26 = tpu.matmul %19, %11, %cst_19 {dimension_numbers = #tpu.dot_dimension_numbers<[1], [0], [0], [1], [0, 0, 1, 1], [], []>} : vector<24x128xf32>, vector<128x128xf32>, vector<24x128xf32> -> vector<24x128xf32>
    %cst_20 = arith.constant dense<0.000000e+00> : vector<24x128xf32>
    %27 = tpu.matmul %19, %6, %cst_20 {dimension_numbers = #tpu.dot_dimension_numbers<[1], [0], [0], [1], [0, 0, 1, 1], [], []>} : vector<24x128xf32>, vector<128x128xf32>, vector<24x128xf32> -> vector<24x128xf32>
    %28 = tpu.concatenate %26, %19, %27 in 0 : vector<24x128xf32>, vector<24x128xf32>, vector<24x128xf32> -> vector<72x128xf32>
    %cst_21 = arith.constant dense<0.000000e+00> : vector<128x128xf32>
    %29 = tpu.matmul %20, %28, %cst_21 {dimension_numbers = #tpu.dot_dimension_numbers<[1], [0], [0], [1], [0, 0, 1, 1], [], []>} : vector<128x72xf32>, vector<72x128xf32>, vector<128x128xf32> -> vector<128x128xf32>
    %30 = vector.broadcast %21 : vector<128x1xf32> to vector<128x128xf32>
    %31 = arith.addf %29, %30 : vector<128x128xf32>
    %cst_22 = arith.constant 0.000000e+00 : f32
    %32 = vector.broadcast %cst_22 : f32 to vector<128x128xf32>
    %33 = arith.maximumf %31, %32 : vector<128x128xf32>
    %cst_23 = arith.constant dense<0.000000e+00> : vector<128x128xf32>
    %34 = tpu.matmul %33, %11, %cst_23 {dimension_numbers = #tpu.dot_dimension_numbers<[1], [0], [0], [1], [0, 0, 1, 1], [], []>} : vector<128x128xf32>, vector<128x128xf32>, vector<128x128xf32> -> vector<128x128xf32>
    %cst_24 = arith.constant dense<0.000000e+00> : vector<128x128xf32>
    %35 = tpu.matmul %33, %6, %cst_24 {dimension_numbers = #tpu.dot_dimension_numbers<[1], [0], [0], [1], [0, 0, 1, 1], [], []>} : vector<128x128xf32>, vector<128x128xf32>, vector<128x128xf32> -> vector<128x128xf32>
    %36 = tpu.concatenate %34, %33, %35 in 0 : vector<128x128xf32>, vector<128x128xf32>, vector<128x128xf32> -> vector<384x128xf32>
    %cst_25 = arith.constant dense<0.000000e+00> : vector<8x128xf32>
    %37 = tpu.matmul %22, %36, %cst_25 {dimension_numbers = #tpu.dot_dimension_numbers<[1], [0], [0], [1], [0, 0, 1, 1], [], []>} : vector<8x384xf32>, vector<384x128xf32>, vector<8x128xf32> -> vector<8x128xf32>
    %38 = vector.broadcast %23 : vector<8x1xf32> to vector<8x128xf32>
    %39 = arith.addf %37, %38 : vector<8x128xf32>
    %cst_26 = arith.constant dense<0.000000e+00> : vector<3x128xf32>
    %40 = tpu.matmul %24, %39, %cst_26 {dimension_numbers = #tpu.dot_dimension_numbers<[1], [0], [0], [1], [0, 0, 1, 1], [], []>} : vector<3x8xf32>, vector<8x128xf32>, vector<3x128xf32> -> vector<3x128xf32>
    %41 = vector.broadcast %25 : vector<3x1xf32> to vector<3x128xf32>
    %42 = arith.addf %40, %41 : vector<3x128xf32>
    %43 = vector.extract_strided_slice %18 {offsets = [24, 0], sizes = [16, 128], strides = [1, 1]} : vector<40x128xf32> to vector<16x128xf32>
    %c0_27 = arith.constant 0 : index
    %c0_28 = arith.constant 0 : index
    %44 = vector.load %arg9[%c0_27, %c0_28] : memref<128x48xf32, #tpu.memory_space<vmem>>, vector<128x48xf32>
    %c0_29 = arith.constant 0 : index
    %c0_30 = arith.constant 0 : index
    %45 = vector.load %arg10[%c0_29, %c0_30] : memref<128x1xf32, #tpu.memory_space<vmem>>, vector<128x1xf32>
    %c0_31 = arith.constant 0 : index
    %c0_32 = arith.constant 0 : index
    %46 = vector.load %arg11[%c0_31, %c0_32] : memref<8x384xf32, #tpu.memory_space<vmem>>, vector<8x384xf32>
    %c0_33 = arith.constant 0 : index
    %c0_34 = arith.constant 0 : index
    %47 = vector.load %arg12[%c0_33, %c0_34] : memref<8x1xf32, #tpu.memory_space<vmem>>, vector<8x1xf32>
    %c0_35 = arith.constant 0 : index
    %c0_36 = arith.constant 0 : index
    %48 = vector.load %arg13[%c0_35, %c0_36] : memref<3x8xf32, #tpu.memory_space<vmem>>, vector<3x8xf32>
    %c0_37 = arith.constant 0 : index
    %c0_38 = arith.constant 0 : index
    %49 = vector.load %arg14[%c0_37, %c0_38] : memref<3x1xf32, #tpu.memory_space<vmem>>, vector<3x1xf32>
    %cst_39 = arith.constant dense<0.000000e+00> : vector<16x128xf32>
    %50 = tpu.matmul %43, %11, %cst_39 {dimension_numbers = #tpu.dot_dimension_numbers<[1], [0], [0], [1], [0, 0, 1, 1], [], []>} : vector<16x128xf32>, vector<128x128xf32>, vector<16x128xf32> -> vector<16x128xf32>
    %cst_40 = arith.constant dense<0.000000e+00> : vector<16x128xf32>
    %51 = tpu.matmul %43, %6, %cst_40 {dimension_numbers = #tpu.dot_dimension_numbers<[1], [0], [0], [1], [0, 0, 1, 1], [], []>} : vector<16x128xf32>, vector<128x128xf32>, vector<16x128xf32> -> vector<16x128xf32>
    %52 = tpu.concatenate %50, %43, %51 in 0 : vector<16x128xf32>, vector<16x128xf32>, vector<16x128xf32> -> vector<48x128xf32>
    %cst_41 = arith.constant dense<0.000000e+00> : vector<128x128xf32>
    %53 = tpu.matmul %44, %52, %cst_41 {dimension_numbers = #tpu.dot_dimension_numbers<[1], [0], [0], [1], [0, 0, 1, 1], [], []>} : vector<128x48xf32>, vector<48x128xf32>, vector<128x128xf32> -> vector<128x128xf32>
    %54 = vector.broadcast %45 : vector<128x1xf32> to vector<128x128xf32>
    %55 = arith.addf %53, %54 : vector<128x128xf32>
    %cst_42 = arith.constant 0.000000e+00 : f32
    %56 = vector.broadcast %cst_42 : f32 to vector<128x128xf32>
    %57 = arith.maximumf %55, %56 : vector<128x128xf32>
    %cst_43 = arith.constant dense<0.000000e+00> : vector<128x128xf32>
    %58 = tpu.matmul %57, %11, %cst_43 {dimension_numbers = #tpu.dot_dimension_numbers<[1], [0], [0], [1], [0, 0, 1, 1], [], []>} : vector<128x128xf32>, vector<128x128xf32>, vector<128x128xf32> -> vector<128x128xf32>
    %cst_44 = arith.constant dense<0.000000e+00> : vector<128x128xf32>
    %59 = tpu.matmul %57, %6, %cst_44 {dimension_numbers = #tpu.dot_dimension_numbers<[1], [0], [0], [1], [0, 0, 1, 1], [], []>} : vector<128x128xf32>, vector<128x128xf32>, vector<128x128xf32> -> vector<128x128xf32>
    %60 = tpu.concatenate %58, %57, %59 in 0 : vector<128x128xf32>, vector<128x128xf32>, vector<128x128xf32> -> vector<384x128xf32>
    %cst_45 = arith.constant dense<0.000000e+00> : vector<8x128xf32>
    %61 = tpu.matmul %46, %60, %cst_45 {dimension_numbers = #tpu.dot_dimension_numbers<[1], [0], [0], [1], [0, 0, 1, 1], [], []>} : vector<8x384xf32>, vector<384x128xf32>, vector<8x128xf32> -> vector<8x128xf32>
    %62 = vector.broadcast %47 : vector<8x1xf32> to vector<8x128xf32>
    %63 = arith.addf %61, %62 : vector<8x128xf32>
    %cst_46 = arith.constant dense<0.000000e+00> : vector<3x128xf32>
    %64 = tpu.matmul %48, %63, %cst_46 {dimension_numbers = #tpu.dot_dimension_numbers<[1], [0], [0], [1], [0, 0, 1, 1], [], []>} : vector<3x8xf32>, vector<8x128xf32>, vector<3x128xf32> -> vector<3x128xf32>
    %65 = vector.broadcast %49 : vector<3x1xf32> to vector<3x128xf32>
    %66 = arith.addf %64, %65 : vector<3x128xf32>
    %67 = arith.addf %42, %66 : vector<3x128xf32>
    %cst_47 = arith.constant 5.000000e-01 : f32
    %68 = vector.broadcast %cst_47 : f32 to vector<3x128xf32>
    %69 = arith.mulf %67, %68 : vector<3x128xf32>
    %c0_48 = arith.constant 0 : index
    %c0_49 = arith.constant 0 : index
    %c0_50 = arith.constant 0 : index
    %70 = vector.load %arg16[%c0_48, %c0_49, %c0_50] : memref<2x3x128xf32, #tpu.memory_space<vmem>>, vector<1x3x128xf32>
    %71 = vector.shape_cast %70 : vector<1x3x128xf32> to vector<3x128xf32>
    %72 = vector.shape_cast %69 : vector<3x128xf32> to vector<1x3x128xf32>
    tpu.vector_store %arg16[%c0_48, %c0_49, %c0_50], %72 {strides = array<i32>} : memref<2x3x128xf32, #tpu.memory_space<vmem>>, vector<1x3x128xf32>,
    %c0_51 = arith.constant 0 : index
    %c0_52 = arith.constant 0 : index
    %c0_53 = arith.constant 0 : index
    %73 = vector.load %arg15[%c0_51, %c0_52, %c0_53] : memref<2x3x128xf32, #tpu.memory_space<vmem>>, vector<1x3x128xf32>
    %74 = vector.shape_cast %73 : vector<1x3x128xf32> to vector<3x128xf32>
    %cst_54 = arith.constant 0.000000e+00 : f32
    %75 = vector.broadcast %cst_54 : f32 to vector<3x128xf32>
    %76 = arith.maximumf %69, %75 : vector<3x128xf32>
    %77 = arith.mulf %69, %74 : vector<3x128xf32>
    %78 = arith.subf %76, %77 : vector<3x128xf32>
    %79 = math.absf %69 : vector<3x128xf32>
    %cst_55 = arith.constant 0.000000e+00 : f32
    %80 = vector.broadcast %cst_55 : f32 to vector<3x128xf32>
    %81 = arith.subf %80, %79 : vector<3x128xf32>
    %82 = math.exp %81 : vector<3x128xf32>
    %83 = math.log1p %82 : vector<3x128xf32>
    %84 = arith.addf %78, %83 : vector<3x128xf32>
    %85 = vector.shape_cast %84 : vector<3x128xf32> to vector<1x3x128xf32>
    %cst_56 = arith.constant dense<0.000000e+00> : vector<1xf32>
    %86 = vector.multi_reduction <add>, %85, %cst_56 [1, 2] : vector<1x3x128xf32> to vector<1xf32>
    %87 = vector.shape_cast %86 : vector<1xf32> to vector<1x1x1xf32>
    %88 = vector.extract %87[0, 0, 0] : f32 from vector<1x1x1xf32>
    %cst_57 = arith.constant 0.000000e+00 : f32
    %89 = arith.addf %cst_57, %88 : f32
    %c0_58 = arith.constant 0 : index
    %c0_59 = arith.constant 0 : index
    %90 = vector.load %arg1[%c0_58, %c0_59] : memref<40x4xf32, #tpu.memory_space<vmem>>, vector<40x4xf32>
    %c1 = arith.constant 1 : index
    %c0_60 = arith.constant 0 : index
    %c0_61 = arith.constant 0 : index
    %91 = vector.load %arg0[%c1, %c0_60, %c0_61] : memref<2x4x128xf32, #tpu.memory_space<vmem>>, vector<1x4x128xf32>
    %92 = vector.shape_cast %91 : vector<1x4x128xf32> to vector<4x128xf32>
    %cst_62 = arith.constant dense<0.000000e+00> : vector<40x128xf32>
    %93 = tpu.matmul %90, %92, %cst_62 {dimension_numbers = #tpu.dot_dimension_numbers<[1], [0], [0], [1], [0, 0, 1, 1], [], []>} : vector<40x4xf32>, vector<4x128xf32>, vector<40x128xf32> -> vector<40x128xf32>
    %c0_63 = arith.constant 0 : index
    %c0_64 = arith.constant 0 : index
    %94 = vector.load %arg2[%c0_63, %c0_64] : memref<40x1xf32, #tpu.memory_space<vmem>>, vector<40x1xf32>
    %95 = vector.broadcast %94 : vector<40x1xf32> to vector<40x128xf32>
    %96 = arith.addf %93, %95 : vector<40x128xf32>
    %97 = vector.extract_strided_slice %96 {offsets = [0, 0], sizes = [24, 128], strides = [1, 1]} : vector<40x128xf32> to vector<24x128xf32>
    %c0_65 = arith.constant 0 : index
    %c0_66 = arith.constant 0 : index
    %98 = vector.load %arg3[%c0_65, %c0_66] : memref<128x72xf32, #tpu.memory_space<vmem>>, vector<128x72xf32>
    %c0_67 = arith.constant 0 : index
    %c0_68 = arith.constant 0 : index
    %99 = vector.load %arg4[%c0_67, %c0_68] : memref<128x1xf32, #tpu.memory_space<vmem>>, vector<128x1xf32>
    %c0_69 = arith.constant 0 : index
    %c0_70 = arith.constant 0 : index
    %100 = vector.load %arg5[%c0_69, %c0_70] : memref<8x384xf32, #tpu.memory_space<vmem>>, vector<8x384xf32>
    %c0_71 = arith.constant 0 : index
    %c0_72 = arith.constant 0 : index
    %101 = vector.load %arg6[%c0_71, %c0_72] : memref<8x1xf32, #tpu.memory_space<vmem>>, vector<8x1xf32>
    %c0_73 = arith.constant 0 : index
    %c0_74 = arith.constant 0 : index
    %102 = vector.load %arg7[%c0_73, %c0_74] : memref<3x8xf32, #tpu.memory_space<vmem>>, vector<3x8xf32>
    %c0_75 = arith.constant 0 : index
    %c0_76 = arith.constant 0 : index
    %103 = vector.load %arg8[%c0_75, %c0_76] : memref<3x1xf32, #tpu.memory_space<vmem>>, vector<3x1xf32>
    %cst_77 = arith.constant dense<0.000000e+00> : vector<24x128xf32>
    %104 = tpu.matmul %97, %11, %cst_77 {dimension_numbers = #tpu.dot_dimension_numbers<[1], [0], [0], [1], [0, 0, 1, 1], [], []>} : vector<24x128xf32>, vector<128x128xf32>, vector<24x128xf32> -> vector<24x128xf32>
    %cst_78 = arith.constant dense<0.000000e+00> : vector<24x128xf32>
    %105 = tpu.matmul %97, %6, %cst_78 {dimension_numbers = #tpu.dot_dimension_numbers<[1], [0], [0], [1], [0, 0, 1, 1], [], []>} : vector<24x128xf32>, vector<128x128xf32>, vector<24x128xf32> -> vector<24x128xf32>
    %106 = tpu.concatenate %104, %97, %105 in 0 : vector<24x128xf32>, vector<24x128xf32>, vector<24x128xf32> -> vector<72x128xf32>
    %cst_79 = arith.constant dense<0.000000e+00> : vector<128x128xf32>
    %107 = tpu.matmul %98, %106, %cst_79 {dimension_numbers = #tpu.dot_dimension_numbers<[1], [0], [0], [1], [0, 0, 1, 1], [], []>} : vector<128x72xf32>, vector<72x128xf32>, vector<128x128xf32> -> vector<128x128xf32>
    %108 = vector.broadcast %99 : vector<128x1xf32> to vector<128x128xf32>
    %109 = arith.addf %107, %108 : vector<128x128xf32>
    %cst_80 = arith.constant 0.000000e+00 : f32
    %110 = vector.broadcast %cst_80 : f32 to vector<128x128xf32>
    %111 = arith.maximumf %109, %110 : vector<128x128xf32>
    %cst_81 = arith.constant dense<0.000000e+00> : vector<128x128xf32>
    %112 = tpu.matmul %111, %11, %cst_81 {dimension_numbers = #tpu.dot_dimension_numbers<[1], [0], [0], [1], [0, 0, 1, 1], [], []>} : vector<128x128xf32>, vector<128x128xf32>, vector<128x128xf32> -> vector<128x128xf32>
    %cst_82 = arith.constant dense<0.000000e+00> : vector<128x128xf32>
    %113 = tpu.matmul %111, %6, %cst_82 {dimension_numbers = #tpu.dot_dimension_numbers<[1], [0], [0], [1], [0, 0, 1, 1], [], []>} : vector<128x128xf32>, vector<128x128xf32>, vector<128x128xf32> -> vector<128x128xf32>
    %114 = tpu.concatenate %112, %111, %113 in 0 : vector<128x128xf32>, vector<128x128xf32>, vector<128x128xf32> -> vector<384x128xf32>
    %cst_83 = arith.constant dense<0.000000e+00> : vector<8x128xf32>
    %115 = tpu.matmul %100, %114, %cst_83 {dimension_numbers = #tpu.dot_dimension_numbers<[1], [0], [0], [1], [0, 0, 1, 1], [], []>} : vector<8x384xf32>, vector<384x128xf32>, vector<8x128xf32> -> vector<8x128xf32>
    %116 = vector.broadcast %101 : vector<8x1xf32> to vector<8x128xf32>
    %117 = arith.addf %115, %116 : vector<8x128xf32>
    %cst_84 = arith.constant dense<0.000000e+00> : vector<3x128xf32>
    %118 = tpu.matmul %102, %117, %cst_84 {dimension_numbers = #tpu.dot_dimension_numbers<[1], [0], [0], [1], [0, 0, 1, 1], [], []>} : vector<3x8xf32>, vector<8x128xf32>, vector<3x128xf32> -> vector<3x128xf32>
    %119 = vector.broadcast %103 : vector<3x1xf32> to vector<3x128xf32>
    %120 = arith.addf %118, %119 : vector<3x128xf32>
    %121 = vector.extract_strided_slice %96 {offsets = [24, 0], sizes = [16, 128], strides = [1, 1]} : vector<40x128xf32> to vector<16x128xf32>
    %c0_85 = arith.constant 0 : index
    %c0_86 = arith.constant 0 : index
    %122 = vector.load %arg9[%c0_85, %c0_86] : memref<128x48xf32, #tpu.memory_space<vmem>>, vector<128x48xf32>
    %c0_87 = arith.constant 0 : index
    %c0_88 = arith.constant 0 : index
    %123 = vector.load %arg10[%c0_87, %c0_88] : memref<128x1xf32, #tpu.memory_space<vmem>>, vector<128x1xf32>
    %c0_89 = arith.constant 0 : index
    %c0_90 = arith.constant 0 : index
    %124 = vector.load %arg11[%c0_89, %c0_90] : memref<8x384xf32, #tpu.memory_space<vmem>>, vector<8x384xf32>
    %c0_91 = arith.constant 0 : index
    %c0_92 = arith.constant 0 : index
    %125 = vector.load %arg12[%c0_91, %c0_92] : memref<8x1xf32, #tpu.memory_space<vmem>>, vector<8x1xf32>
    %c0_93 = arith.constant 0 : index
    %c0_94 = arith.constant 0 : index
    %126 = vector.load %arg13[%c0_93, %c0_94] : memref<3x8xf32, #tpu.memory_space<vmem>>, vector<3x8xf32>
    %c0_95 = arith.constant 0 : index
    %c0_96 = arith.constant 0 : index
    %127 = vector.load %arg14[%c0_95, %c0_96] : memref<3x1xf32, #tpu.memory_space<vmem>>, vector<3x1xf32>
    %cst_97 = arith.constant dense<0.000000e+00> : vector<16x128xf32>
    %128 = tpu.matmul %121, %11, %cst_97 {dimension_numbers = #tpu.dot_dimension_numbers<[1], [0], [0], [1], [0, 0, 1, 1], [], []>} : vector<16x128xf32>, vector<128x128xf32>, vector<16x128xf32> -> vector<16x128xf32>
    %cst_98 = arith.constant dense<0.000000e+00> : vector<16x128xf32>
    %129 = tpu.matmul %121, %6, %cst_98 {dimension_numbers = #tpu.dot_dimension_numbers<[1], [0], [0], [1], [0, 0, 1, 1], [], []>} : vector<16x128xf32>, vector<128x128xf32>, vector<16x128xf32> -> vector<16x128xf32>
    %130 = tpu.concatenate %128, %121, %129 in 0 : vector<16x128xf32>, vector<16x128xf32>, vector<16x128xf32> -> vector<48x128xf32>
    %cst_99 = arith.constant dense<0.000000e+00> : vector<128x128xf32>
    %131 = tpu.matmul %122, %130, %cst_99 {dimension_numbers = #tpu.dot_dimension_numbers<[1], [0], [0], [1], [0, 0, 1, 1], [], []>} : vector<128x48xf32>, vector<48x128xf32>, vector<128x128xf32> -> vector<128x128xf32>
    %132 = vector.broadcast %123 : vector<128x1xf32> to vector<128x128xf32>
    %133 = arith.addf %131, %132 : vector<128x128xf32>
    %cst_100 = arith.constant 0.000000e+00 : f32
    %134 = vector.broadcast %cst_100 : f32 to vector<128x128xf32>
    %135 = arith.maximumf %133, %134 : vector<128x128xf32>
    %cst_101 = arith.constant dense<0.000000e+00> : vector<128x128xf32>
    %136 = tpu.matmul %135, %11, %cst_101 {dimension_numbers = #tpu.dot_dimension_numbers<[1], [0], [0], [1], [0, 0, 1, 1], [], []>} : vector<128x128xf32>, vector<128x128xf32>, vector<128x128xf32> -> vector<128x128xf32>
    %cst_102 = arith.constant dense<0.000000e+00> : vector<128x128xf32>
    %137 = tpu.matmul %135, %6, %cst_102 {dimension_numbers = #tpu.dot_dimension_numbers<[1], [0], [0], [1], [0, 0, 1, 1], [], []>} : vector<128x128xf32>, vector<128x128xf32>, vector<128x128xf32> -> vector<128x128xf32>
    %138 = tpu.concatenate %136, %135, %137 in 0 : vector<128x128xf32>, vector<128x128xf32>, vector<128x128xf32> -> vector<384x128xf32>
    %cst_103 = arith.constant dense<0.000000e+00> : vector<8x128xf32>
    %139 = tpu.matmul %124, %138, %cst_103 {dimension_numbers = #tpu.dot_dimension_numbers<[1], [0], [0], [1], [0, 0, 1, 1], [], []>} : vector<8x384xf32>, vector<384x128xf32>, vector<8x128xf32> -> vector<8x128xf32>
    %140 = vector.broadcast %125 : vector<8x1xf32> to vector<8x128xf32>
    %141 = arith.addf %139, %140 : vector<8x128xf32>
    %cst_104 = arith.constant dense<0.000000e+00> : vector<3x128xf32>
    %142 = tpu.matmul %126, %141, %cst_104 {dimension_numbers = #tpu.dot_dimension_numbers<[1], [0], [0], [1], [0, 0, 1, 1], [], []>} : vector<3x8xf32>, vector<8x128xf32>, vector<3x128xf32> -> vector<3x128xf32>
    %143 = vector.broadcast %127 : vector<3x1xf32> to vector<3x128xf32>
    %144 = arith.addf %142, %143 : vector<3x128xf32>
    %145 = arith.addf %120, %144 : vector<3x128xf32>
    %cst_105 = arith.constant 5.000000e-01 : f32
    %146 = vector.broadcast %cst_105 : f32 to vector<3x128xf32>
    %147 = arith.mulf %145, %146 : vector<3x128xf32>
    %c1_106 = arith.constant 1 : index
    %c0_107 = arith.constant 0 : index
    %c0_108 = arith.constant 0 : index
    %148 = vector.load %arg16[%c1_106, %c0_107, %c0_108] : memref<2x3x128xf32, #tpu.memory_space<vmem>>, vector<1x3x128xf32>
    %149 = vector.shape_cast %148 : vector<1x3x128xf32> to vector<3x128xf32>
    %150 = vector.shape_cast %147 : vector<3x128xf32> to vector<1x3x128xf32>
    tpu.vector_store %arg16[%c1_106, %c0_107, %c0_108], %150 {strides = array<i32>} : memref<2x3x128xf32, #tpu.memory_space<vmem>>, vector<1x3x128xf32>,
    %c1_109 = arith.constant 1 : index
    %c0_110 = arith.constant 0 : index
    %c0_111 = arith.constant 0 : index
    %151 = vector.load %arg15[%c1_109, %c0_110, %c0_111] : memref<2x3x128xf32, #tpu.memory_space<vmem>>, vector<1x3x128xf32>
    %152 = vector.shape_cast %151 : vector<1x3x128xf32> to vector<3x128xf32>
    %cst_112 = arith.constant 0.000000e+00 : f32
    %153 = vector.broadcast %cst_112 : f32 to vector<3x128xf32>
    %154 = arith.maximumf %147, %153 : vector<3x128xf32>
    %155 = arith.mulf %147, %152 : vector<3x128xf32>
    %156 = arith.subf %154, %155 : vector<3x128xf32>
    %157 = math.absf %147 : vector<3x128xf32>
    %cst_113 = arith.constant 0.000000e+00 : f32
    %158 = vector.broadcast %cst_113 : f32 to vector<3x128xf32>
    %159 = arith.subf %158, %157 : vector<3x128xf32>
    %160 = math.exp %159 : vector<3x128xf32>
    %161 = math.log1p %160 : vector<3x128xf32>
    %162 = arith.addf %156, %161 : vector<3x128xf32>
    %163 = vector.shape_cast %162 : vector<3x128xf32> to vector<1x3x128xf32>
    %cst_114 = arith.constant dense<0.000000e+00> : vector<1xf32>
    %164 = vector.multi_reduction <add>, %163, %cst_114 [1, 2] : vector<1x3x128xf32> to vector<1xf32>
    %165 = vector.shape_cast %164 : vector<1xf32> to vector<1x1x1xf32>
    %166 = vector.extract %165[0, 0, 0] : f32 from vector<1x1x1xf32>
    %167 = arith.addf %89, %166 : f32
    %cst_115 = arith.constant 7.680000e+02 : f32
    %168 = arith.divf %167, %cst_115 : f32
    %169 = vector.broadcast %168 : f32 to vector<1x1xf32>
    %c0_116 = arith.constant 0 : index
    %c0_117 = arith.constant 0 : index
    %170 = vector.load %arg17[%c0_116, %c0_117] : memref<1x1xf32, #tpu.memory_space<vmem>>, vector<1x1xf32>
    tpu.vector_store %arg17[%c0_116, %c0_117], %169 {strides = array<i32>} : memref<1x1xf32, #tpu.memory_space<vmem>>, vector<1x1xf32>,
    return
  }
}

</mosaic_0001>

<bundles_post_ra>
// kernel: spec2dcnn_multi_forward.1
= control target key start
LH: loop header
LB: loop body
LE: loop exit
PB: predicated region body
PF: predicated region fallthrough
CT: control target
= control target key end

     0   :  { %s5109_s0 = inlined_call_operand.vmem [shape: f32[2,4,128], index: 0, kind: input, shape index: {}]   ;;  %s5110_s1 = inlined_call_operand.vmem [shape: f32[40,4], index: 1, kind: input, shape index: {}]   ;;  %s5111_s2 = inlined_call_operand.vmem [shape: f32[40,1], index: 2, kind: input, shape index: {}]   ;;  %s5112_s3 = inlined_call_operand.vmem [shape: f32[128,72], index: 3, kind: input, shape index: {}]   ;;  %s5113_s4 = inlined_call_operand.vmem [shape: f32[128,1], index: 4, kind: input, shape index: {}]   ;;  %s5114_s5 = inlined_call_operand.vmem [shape: f32[8,384], index: 5, kind: input, shape index: {}]   ;;  %s5115_s6 = inlined_call_operand.vmem [shape: f32[8,1], index: 6, kind: input, shape index: {}]   ;;  %s5116_s7 = inlined_call_operand.vmem [shape: f32[3,8], index: 7, kind: input, shape index: {}]   ;;  %s5117_s8 = inlined_call_operand.vmem [shape: f32[3,1], index: 8, kind: input, shape index: {}]   ;;  %s5118_s9 = inlined_call_operand.vmem [shape: f32[128,48], index: 9, kind: input, shape index: {}]   ;;  %s5119_s10 = inlined_call_operand.vmem [shape: f32[128,1], index: 10, kind: input, shape index: {}]   ;;  %s5120_s11 = inlined_call_operand.vmem [shape: f32[8,384], index: 11, kind: input, shape index: {}]   ;;  %s5121_s12 = inlined_call_operand.vmem [shape: f32[8,1], index: 12, kind: input, shape index: {}]   ;;  %s5122_s13 = inlined_call_operand.vmem [shape: f32[3,8], index: 13, kind: input, shape index: {}]   ;;  %s5123_s14 = inlined_call_operand.vmem [shape: f32[3,1], index: 14, kind: input, shape index: {}]   ;;  %s5124_s15 = inlined_call_operand.vmem [shape: f32[2,3,128], index: 15, kind: input, shape index: {}]   ;;  %s5125_s16 = inlined_call_operand.vmem [shape: f32[2,3,128], index: 16, kind: output, shape index: {0}]   ;;  %s5126_s17 = inlined_call_operand.hbm [shape: f32[1,1], index: 17, kind: output, shape index: {1}]  }
   0x1   :  { %5264 = sst [smem:[#allocation32_spill]] %s5109_s0 }
   0x2   :  { %5265 = sst [smem:[#allocation33_spill]] %s5110_s1 }
   0x3   :  { %s5266_s26 = sld [smem:[#allocation32_spill]]  ;;  %vm5130_vm0 = vcmask 1043456   ;;  %v3061_v1 = vld [vmem:[%s5111_s2 + $0x10] sm:$0xff]  ;;  %v3066_v2 = vld [vmem:[%s5111_s2] sm:$0xff]  ;;  %v2961_v3 = vmov 0   ;;  %vm5129_vm1 = vcmask 31744  }
   0x4   :  { %2923 = vset.pattern.permute.xlu1 %v2961_v3  ;;  %2922 = vset.pattern.permute.xlu0 %v2961_v3  ;;  %s5267_s19 = sld [smem:[#allocation33_spill]] }
   0x5   :  { %211 = vperm.xlu1 %2923, %v3061_v1   ;;  %201 = vperm.xlu0 %2922, %v3066_v2  }
   0x6   :  { %2924 = vset.pattern.permute.xlu2 %v2961_v3 }
   0x9   :  { %v193_v0 = vld [vmem:[%s5266_s26] sm:$0xf] }
   0xa   :  { %v188_v4 = vld [vmem:[%s5267_s19] sm:$0xff]  ;;  %2573 = vmatpush.msk.msra.mxu3 %vm5130_vm0, %v193_v0 }
   0xb   :  { %2574 = vmatmul.msk.f32.vlgmr.msra.gmra.mxu3 %vm5129_vm1, %v188_v4 }
   0xc   :  { %23 = vsyncpa [#allocation3], 0  ;;  %v3078_v5 = vld [vmem:[%s5113_s4] sm:$0xff]  ;;  %v3083_v6 = vld [vmem:[%s5111_s2 + $0x8] sm:$0xff]  ;;  %v56_v25 = vlaneseq  ;;  %v5268_v32 = vmov 0  ;;  %v5209_v35 = vmov 1.0  }
   0xd   :  { %v189_v7 = vld [vmem:[%s5267_s19 + $0x8] sm:$0xff]  ;;  %368 = vperm.xlu1 %2923, %v3078_v5   ;;  %206 = vperm.xlu0 %2922, %v3083_v6   ;;  %v3094_v8 = vld [vmem:[%s5113_s4 + $0x20] sm:$0xff]  ;;  %v3099_v9 = vld [vmem:[%s5113_s4 + $0x18] sm:$0xff]  ;;  %v5270_v36 = vmov 0  ;;  %v5272_v39 = vmov 0  ;;  %v5274_v40 = vmov 0 }
   0xe   :  { %v190_v10 = vld [vmem:[%s5267_s19 + $0x10] sm:$0xff]  ;;  %v3110_v11 = vld [vmem:[%s5113_s4 + $0x38] sm:$0xff]  ;;  %v3131_v15 = vld [vmem:[%s5113_s4 + $0x48] sm:$0xff]  ;;  %v3187_v26 = vshrl.u32 %v56_v25, 7  ;;  %v3189_v27 = vand.u32 127, %v56_v25  ;;  %v5276_v42 = vmov 0 }
   0xf   :  { %v3115_v12 = vld [vmem:[%s5113_s4 + $0x30] sm:$0xff]  ;;  %v191_v13 = vld [vmem:[%s5267_s19 + $0x18] sm:$0xff]  ;;  %v192_v16 = vld [vmem:[%s5267_s19 + $0x20] sm:$0xff]  ;;  %v5278_v46 = vmov 0  ;;  %v5281_v48 = vmov 0  ;;  %v5283_v51 = vmov 0 }
  0x10   :  { %v3126_v14 = vld [vmem:[%s5113_s4 + $0x50] sm:$0xff]  ;;  %v3142_v17 = vld [vmem:[%s5113_s4 + $0x68] sm:$0xff]  ;;  %v3147_v18 = vld [vmem:[%s5113_s4 + $0x60] sm:$0xff]  ;;  %v72_v28 = vadd.s32 120, %v3187_v26  ;;  %v3193_v29 = vadd.s32 1, %v3189_v27  ;;  %v71_v33 = vadd.s32 112, %v3187_v26 }
  0x11   :  { %v3154_v19 = vld [vmem:[%s5115_s6] sm:$0xff]  ;;  %v3159_v20 = vld [vmem:[%s5113_s4 + $0x78] sm:$0xff]  ;;  %v3183_v24 = vld [vmem:[%s5119_s10 + $0x10] sm:$0xff]  ;;  %v70_v38 = vadd.s32 104, %v3187_v26  ;;  %v69_v43 = vadd.s32 96, %v3187_v26  ;;  %v68_v44 = vadd.s32 88, %v3187_v26 }
  0x12   :  { %v3166_v21 = vld [vmem:[%s5119_s10] sm:$0xff]  ;;  %v3178_v23 = vld [vmem:[%s5119_s10 + $0x18] sm:$0xff]  ;;  %v3198_v30 = vld [vmem:[%s5119_s10 + $0x30] sm:$0xff]  ;;  %v139_v31 = vadd.s32 1, %v72_v28  ;;  %vm3201_vm2 = vcmp.eq.s32.totalorder %v72_v28, %v3193_v29  ;;  %v138_v37 = vadd.s32 1, %v71_v33  ;;  %vm3231_vm5 = vcmp.eq.s32.totalorder %v71_v33, %v3193_v29  ;;  %s2530_s25 = sshll.u32 %s5126_s17, 4  ;;  %s2531_s25 = int_to_ptr.hbm [resolvable:$true] %s2530_s25 }
  0x13   :  { %2575 = vmatmul.msk.f32.gmra.mxu3 %vm5129_vm1, %v189_v7  ;;  %v3171_v22 = vld [vmem:[%s5111_s2 + $0x20] sm:$0xff]  ;;  %v5269_v32 = vsel %vm3201_vm2, 4294967295, %v5268_v32  ;;  %v3209_v34 = vld [vmem:[%s5119_s10 + $0x28] sm:$0xff]  ;;  %2595 = vmatpush.msk.msra.mxu2 %vm3201_vm2, %v5209_v35  ;;  %v5275_v40 = vsel %vm3231_vm5, 4294967295, %v5274_v40  ;;  %v137_v41 = vadd.s32 1, %v70_v38  ;;  %vm3236_vm6 = vcmp.eq.s32.totalorder %v70_v38, %v3193_v29 }
  0x14   :  { %vm3215_vm3 = vcmp.eq.s32.totalorder %v3189_v27, %v139_v31  ;;  %vm3226_vm4 = vcmp.eq.s32.totalorder %v3189_v27, %v138_v37  ;;  %v5277_v42 = vsel %vm3236_vm6, 4294967295, %v5276_v42  ;;  %v3254_v45 = vld [vmem:[%s5113_s4 + $0x8] sm:$0xff]  ;;  %v136_v47 = vadd.s32 1, %v69_v43  ;;  %v3293_v53 = vld [vmem:[%s5119_s10 + $0x40] sm:$0xff] }
  0x15   :  { %388 = vperm.xlu1 %2923, %v3094_v8   ;;  %383 = vperm.xlu0 %2922, %v3099_v9   ;;  %v5271_v36 = vsel %vm3215_vm3, 4294967295, %v5270_v36  ;;  %v5273_v39 = vsel %vm3226_vm4, 4294967295, %v5272_v39  ;;  %vm3257_vm7 = vcmp.eq.s32.totalorder %v3189_v27, %v137_v41  ;;  %vm3272_vm8 = vcmp.eq.s32.totalorder %v69_v43, %v3193_v29  ;;  %v3279_v50 = vld [vmem:[%s5119_s10 + $0x48] sm:$0xff]  ;;  %v3368_v7 = vld [vmem:[%s5119_s10 + $0x60] sm:$0xff] }
  0x16   :  { %2579 = vmatpush.msk.msra.mxu1 %vm3215_vm3, %v5209_v35  ;;  %2627 = vmatpush.msk.msra.mxu0 %vm3215_vm3, %v5209_v35  ;;  %v5279_v46 = vsel %vm3257_vm7, 4294967295, %v5278_v46  ;;  %v5282_v48 = vsel %vm3272_vm8, 4294967295, %v5281_v48  ;;  %v135_v49 = vadd.s32 1, %v68_v44  ;;  %vm3282_vm9 = vcmp.eq.s32.totalorder %v68_v44, %v3193_v29 }
  0x17   :  { %2596 = vmatpush.msk.msra.mxu2 %vm3231_vm5, %v5209_v35  ;;  %5280 = vst [vmem:[#allocation5_spill] sm:$0xff] %v5279_v46  ;;  %373 = vperm.xlu2 %2924, %v3254_v45   ;;  %v5284_v51 = vsel %vm3282_vm9, 4294967295, %v5283_v51  ;;  %v67_v52 = vadd.s32 80, %v3187_v26  ;;  %vm3296_vm10 = vcmp.eq.s32.totalorder %v3189_v27, %v136_v47  ;;  %v5285_v54 = vmov 0 }
  0x18   :  { %2580 = vmatpush.msk.msra.mxu1 %vm3226_vm4, %v5209_v35  ;;  %2628 = vmatpush.msk.msra.mxu0 %vm3226_vm4, %v5209_v35  ;;  %v5286_v54 = vsel %vm3296_vm10, 4294967295, %v5285_v54  ;;  %vm3304_vm11 = vcmp.eq.s32.totalorder %v3189_v27, %v135_v49  ;;  %v5288_v55 = vmov 0  ;;  %v66_v57 = vadd.s32 72, %v3187_v26 }
  0x19   :  { %2597 = vmatpush.msk.msra.mxu2 %vm3236_vm6, %v5209_v35  ;;  %5287 = vst [vmem:[#allocation6_spill] sm:$0xff] %v5286_v54  ;;  %v5289_v55 = vsel %vm3304_vm11, 4294967295, %v5288_v55  ;;  %v134_v56 = vadd.s32 1, %v67_v52  ;;  %v5291_v58 = vmov 0  ;;  %vm3329_vm13 = vcmp.eq.s32.totalorder %v67_v52, %v3193_v29 }
  0x1a   :  { %2581 = vmatpush.msk.msra.mxu1 %vm3257_vm7, %v5209_v35  ;;  %2629 = vmatpush.msk.msra.mxu0 %vm3257_vm7, %v5209_v35  ;;  %5290 = vst [vmem:[#allocation7_spill] sm:$0xff] %v5289_v55  ;;  %v5294_v59 = vmov 0  ;;  %v133_v60 = vadd.s32 1, %v66_v57  ;;  %v65_v61 = vadd.s32 64, %v3187_v26  ;;  %v5296_v62 = vmov 0 }
  0x1b   :  { %2576 = vmatmul.msk.f32.gmra.mxu3 %vm5129_vm1, %v190_v10  ;;  %2598 = vmatpush.msk.msra.mxu2 %vm3272_vm8, %v5209_v35  ;;  %vm3324_vm12 = vcmp.eq.s32.totalorder %v3189_v27, %v134_v56  ;;  %v5295_v59 = vsel %vm3329_vm13, 4294967295, %v5294_v59  ;;  %vm3349_vm15 = vcmp.eq.s32.totalorder %v66_v57, %v3193_v29  ;;  %v5299_v63 = vmov 0 }
  0x1c   :  { %2582 = vmatpush.msk.msra.mxu1 %vm3296_vm10, %v5209_v35  ;;  %2630 = vmatpush.msk.msra.mxu0 %vm3296_vm10, %v5209_v35  ;;  %v5292_v58 = vsel %vm3324_vm12, 4294967295, %v5291_v58  ;;  %vm3344_vm14 = vcmp.eq.s32.totalorder %v3189_v27, %v133_v60  ;;  %v5300_v63 = vsel %vm3349_vm15, 4294967295, %v5299_v63  ;;  %v132_v0 = vadd.s32 1, %v65_v61  ;;  %v3457_v60 = vld [vmem:[%s5119_s10 + $0x78] sm:$0xff] }
  0x1d   :  { %403 = vperm.xlu1 %2923, %v3110_v11   ;;  %398 = vperm.xlu0 %2922, %v3115_v12   ;;  %5293 = vst [vmem:[#allocation8_spill] sm:$0xff] %v5292_v58  ;;  %v5297_v62 = vsel %vm3344_vm14, 4294967295, %v5296_v62  ;;  %v5301_v3 = vmov 0  ;;  %v64_v4 = vadd.s32 56, %v3187_v26  ;;  %v5304_v10 = vmov 0 }
  0x1e   :  { %2599 = vmatpush.msk.msra.mxu2 %vm3282_vm9, %v5209_v35  ;;  %2583 = vmatpush.msk.msra.mxu1 %vm3304_vm11, %v5209_v35  ;;  %5298 = vst [vmem:[#allocation9_spill] sm:$0xff] %v5297_v62  ;;  %vm3374_vm0 = vcmp.eq.s32.totalorder %v3189_v27, %v132_v0  ;;  %v5307_v28 = vmov 0  ;;  %v62_v33 = vadd.s32 40, %v3187_v26  ;;  %v5310_v37 = vmov 0 }
  0x1f   :  { %2631 = vmatpush.msk.msra.mxu0 %vm3304_vm11, %v5209_v35  ;;  %v5305_v10 = vsel %vm3374_vm0, 4294967295, %v5304_v10  ;;  %v131_v25 = vadd.s32 1, %v64_v4  ;;  %v5313_v38 = vmov 0  ;;  %v5316_v41 = vmov 0 }
  0x20   :  { %2600 = vmatpush.msk.msra.mxu2 %vm3329_vm13, %v5209_v35  ;;  %2584 = vmatpush.msk.msra.mxu1 %vm3324_vm12, %v5209_v35  ;;  %5306 = vst [vmem:[#allocation11_spill] sm:$0xff] %v5305_v10  ;;  %v129_v43 = vadd.s32 1, %v62_v33  ;;  %v61_v44 = vadd.s32 32, %v3187_v26  ;;  %v5319_v47 = vmov 0  ;;  %vm3438_vm10 = vcmp.eq.s32.totalorder %v62_v33, %v3193_v29 }
  0x21   :  { %2632 = vmatpush.msk.msra.mxu0 %vm3324_vm12, %v5209_v35  ;;  %vm3388_vm12 = vcmp.eq.s32.totalorder %v64_v4, %v3193_v29  ;;  %vm3401_vm11 = vcmp.eq.s32.totalorder %v3189_v27, %v131_v25  ;;  %v5322_v49 = vmov 0  ;;  %v5325_v56 = vmov 0  ;;  %v3471_v4 = vld [vmem:[%s5119_s10 + $0x70] sm:$0xff] }
  0x22   :  { %2601 = vmatpush.msk.msra.mxu2 %vm3349_vm15, %v5209_v35  ;;  %2585 = vmatpush.msk.msra.mxu1 %vm3344_vm14, %v5209_v35  ;;  %v5308_v28 = vsel %vm3388_vm12, 4294967295, %v5307_v28  ;;  %v5311_v37 = vsel %vm3401_vm11, 4294967295, %v5310_v37  ;;  %v5323_v49 = vsel %vm3438_vm10, 4294967295, %v5322_v49  ;;  %v128_v52 = vadd.s32 1, %v61_v44 }
  0x23   :  { %2577 = vmatmul.msk.f32.gmra.mxu3 %vm5129_vm1, %v191_v13  ;;  %v63_v13 = vadd.s32 48, %v3187_v26  ;;  %5309 = vst [vmem:[#allocation12_spill] sm:$0xff] %v5308_v28  ;;  %2633 = vmatpush.msk.msra.mxu0 %vm3344_vm14, %v5209_v35  ;;  %v60_v57 = vadd.s32 24, %v3187_v26  ;;  %v59_v0 = vadd.s32 16, %v3187_v26  ;;  %v5331_v25 = vmov 0 }
  0x24   :  { %2586 = vmatpush.msk.msra.mxu1 %vm3374_vm0, %v5209_v35  ;;  %5312 = vst [vmem:[#allocation13_spill] sm:$0xff] %v5311_v37  ;;  %v58_v33 = vadd.s32 8, %v3187_v26 }
  0x25   :  { %418 = vperm.xlu1 %2923, %v3126_v14   ;;  %413 = vperm.xlu0 %2922, %v3131_v15   ;;  %v130_v31 = vadd.s32 1, %v63_v13  ;;  %5324 = vst [vmem:[#allocation17_spill] sm:$0xff] %v5323_v49 }
  0x26   :  { %2587 = vmatpush.msk.msra.mxu1 %vm3401_vm11, %v5209_v35  ;;  %2634 = vmatpush.msk.msra.mxu0 %vm3374_vm0, %v5209_v35  ;;  %vm3463_vm0 = vcmp.eq.s32.totalorder %v3189_v27, %v128_v52  ;;  %v5340_v52 = vmov 0  ;;  %vm3526_vm15 = vcmp.eq.s32.totalorder %v58_v33, %v3193_v29 }
  0x27   :  { %vm3413_vm14 = vcmp.eq.s32.totalorder %v3189_v27, %v130_v31  ;;  %v126_v31 = vadd.s32 1, %v59_v0 }
  0x28   :  { %v5314_v38 = vsel %vm3413_vm14, 4294967295, %v5313_v38  ;;  %2588 = vmatpush.msk.msra.mxu1 %vm3413_vm14, %v5209_v35  ;;  %2635 = vmatpush.msk.msra.mxu0 %vm3401_vm11, %v5209_v35  ;;  %vm3477_vm11 = vcmp.eq.s32.totalorder %v60_v57, %v3193_v29 }
  0x29   :  { %5315 = vst [vmem:[#allocation14_spill] sm:$0xff] %v5314_v38  ;;  %v5332_v25 = vsel %vm3477_vm11, 4294967295, %v5331_v25 }
  0x2a   :  { %5333 = vst [vmem:[#allocation20_spill] sm:$0xff] %v5332_v25  ;;  %2636 = vmatpush.msk.msra.mxu0 %vm3413_vm14, %v5209_v35  ;;  %vm3502_vm14 = vcmp.eq.s32.totalorder %v3189_v27, %v126_v31  ;;  %v124_v31 = vadd.s32 1, %v3187_v26 }
  0x2b   :  { %2578 = vmatmul.msk.f32.gmra.mxu3 %vm5129_vm1, %v192_v16  ;;  %vm3354_vm1 = vcmp.eq.s32.totalorder %v65_v61, %v3193_v29  ;;  %v3382_v16 = vld [vmem:[%s5119_s10 + $0x58] sm:$0xff]  ;;  %v5328_v61 = vmov 0 }
  0x2c   :  { %v5302_v3 = vsel %vm3354_vm1, 4294967295, %v5301_v3  ;;  %2602 = vmatpush.msk.msra.mxu2 %vm3354_vm1, %v5209_v35  ;;  %vm3418_vm1 = vcmp.eq.s32.totalorder %v63_v13, %v3193_v29  ;;  %v5329_v61 = vsel %vm3463_vm0, 4294967295, %v5328_v61  ;;  %v127_v13 = vadd.s32 1, %v60_v57 }
  0x2d   :  { %433 = vperm.xlu1 %2923, %v3142_v17   ;;  %428 = vperm.xlu0 %2922, %v3147_v18   ;;  %5303 = vst [vmem:[#allocation10_spill] sm:$0xff] %v5302_v3  ;;  %v5317_v41 = vsel %vm3418_vm1, 4294967295, %v5316_v41  ;;  %v125_v57 = vadd.s32 1, %v58_v33  ;;  %v5349_v33 = vmov 0 }
  0x2e   :  { %2603 = vmatpush.msk.msra.mxu2 %vm3388_vm12, %v5209_v35  ;;  %5318 = vst [vmem:[#allocation15_spill] sm:$0xff] %v5317_v41  ;;  %vm3433_vm12 = vcmp.eq.s32.totalorder %v3189_v27, %v129_v43  ;;  %v5334_v43 = vmov 0 }
  0x2f   :  { %v5320_v47 = vsel %vm3433_vm12, 4294967295, %v5319_v47  ;;  %2589 = vmatpush.msk.msra.mxu1 %vm3433_vm12, %v5209_v35  ;;  %5330 = vst [vmem:[#allocation19_spill] sm:$0xff] %v5329_v61  ;;  %2637 = vmatpush.msk.msra.mxu0 %vm3433_vm12, %v5209_v35  ;;  %vm3541_vm12 = vcmp.eq.s32.totalorder %v3189_v27, %v124_v31 }
  0x30   :  { %2604 = vmatpush.msk.msra.mxu2 %vm3418_vm1, %v5209_v35  ;;  %5321 = vst [vmem:[#allocation16_spill] sm:$0xff] %v5320_v47  ;;  %vm3443_vm1 = vcmp.eq.s32.totalorder %v61_v44, %v3193_v29  ;;  %v5337_v44 = vmov 0  ;;  %v5350_v33 = vsel %vm3541_vm12, 4294967295, %v5349_v33 }
  0x31   :  { %v5326_v56 = vsel %vm3443_vm1, 4294967295, %v5325_v56  ;;  %2590 = vmatpush.msk.msra.mxu1 %vm3463_vm0, %v5209_v35  ;;  %v5338_v44 = vsel %vm3502_vm14, 4294967295, %v5337_v44  ;;  %2638 = vmatpush.msk.msra.mxu0 %vm3463_vm0, %v5209_v35  ;;  %5351 = vst [vmem:[#allocation26_spill] sm:$0xff] %v5350_v33 }
  0x32   :  { %5327 = vst [vmem:[#allocation18_spill] sm:$0xff] %v5326_v56  ;;  %2605 = vmatpush.msk.msra.mxu2 %vm3438_vm10, %v5209_v35  ;;  %vm3507_vm10 = vcmp.eq.s32.totalorder %v59_v0, %v3193_v29  ;;  %v5346_v0 = vmov 0 }
  0x33   :  { %5339 = vst [vmem:[#allocation22_spill] sm:$0xff] %v5338_v44  ;;  %v5341_v52 = vsel %vm3507_vm10, 4294967295, %v5340_v52  ;;  %v5347_v0 = vsel %vm3526_vm15, 4294967295, %v5346_v0 }
  0x34   :  { %2606 = vmatpush.msk.msra.mxu2 %vm3443_vm1, %v5209_v35  ;;  %vm3490_vm1 = vcmp.eq.s32.totalorder %v3189_v27, %v127_v13  ;;  %5342 = vst [vmem:[#allocation23_spill] sm:$0xff] %v5341_v52  ;;  %v5343_v13 = vmov 0 }
  0x35   :  { %708 = vperm.xlu1 %2923, %v3154_v19   ;;  %443 = vperm.xlu0 %2922, %v3159_v20   ;;  %v5335_v43 = vsel %vm3490_vm1, 4294967295, %v5334_v43  ;;  %5348 = vst [vmem:[#allocation25_spill] sm:$0xff] %v5347_v0 }
  0x36   :  { %5336 = vst [vmem:[#allocation21_spill] sm:$0xff] %v5335_v43  ;;  %2607 = vmatpush.msk.msra.mxu2 %vm3477_vm11, %v5209_v35  ;;  %2591 = vmatpush.msk.msra.mxu1 %vm3490_vm1, %v5209_v35  ;;  %vm3521_vm11 = vcmp.eq.s32.totalorder %v3189_v27, %v125_v57  ;;  %v5352_v57 = vmov 0  ;;  %v306_v27 = vld [vmem:[%s5113_s4 + $0x70] sm:$0xff] }
  0x37   :  { %v5344_v13 = vsel %vm3521_vm11, 4294967295, %v5343_v13  ;;  %2639 = vmatpush.msk.msra.mxu0 %vm3490_vm1, %v5209_v35 }
  0x38   :  { %2608 = vmatpush.msk.msra.mxu2 %vm3507_vm10, %v5209_v35  ;;  %2592 = vmatpush.msk.msra.mxu1 %vm3502_vm14, %v5209_v35  ;;  %5345 = vst [vmem:[#allocation24_spill] sm:$0xff] %v5344_v13  ;;  %vm3547_vm10 = vcmp.eq.s32.totalorder %v3187_v26, %v3193_v29  ;;  %v3700_v26 = vld [vmem:[%s5113_s4 + $0x58] sm:$0xff] }
  0x39   :  { %v5353_v57 = vsel %vm3547_vm10, 4294967295, %v5352_v57  ;;  %2640 = vmatpush.msk.msra.mxu0 %vm3502_vm14, %v5209_v35 }
  0x3a   :  { %2609 = vmatpush.msk.msra.mxu2 %vm3526_vm15, %v5209_v35  ;;  %2593 = vmatpush.msk.msra.mxu1 %vm3521_vm11, %v5209_v35  ;;  %5354 = vst [vmem:[#allocation27_spill] sm:$0xff] %v5353_v57 }
  0x3b   :  { %2641 = vmatpush.msk.msra.mxu0 %vm3521_vm11, %v5209_v35 }
  0x3c   :  { %2610 = vmatpush.msk.msra.mxu2 %vm3547_vm10, %v5209_v35  ;;  %2594 = vmatpush.msk.msra.mxu1 %vm3541_vm12, %v5209_v35 }
  0x3d   :  { %886 = vperm.xlu1 %2923, %v3166_v21   ;;  %221 = vperm.xlu0 %2922, %v3171_v22  }
  0x3e   :  { %2643 = vmatpush.msk.msrb.mxu1 %vm3201_vm2, %v5209_v35  ;;  %2642 = vmatpush.msk.msra.mxu0 %vm3541_vm12, %v5209_v35  ;;  %vm5359_vm12 = vnez %v5308_v28 }
  0x40   :  { %2644 = vmatpush.msk.msrb.mxu1 %vm3231_vm5, %v5209_v35  ;;  %2708 = vmatpush.msk.msrb.mxu0 %vm3215_vm3, %v5209_v35  ;;  %vm5355_vm3 = vnez %v5300_v63 }
  0x42   :  { %2645 = vmatpush.msk.msrb.mxu1 %vm3236_vm6, %v5209_v35  ;;  %2709 = vmatpush.msk.msrb.mxu0 %vm3226_vm4, %v5209_v35  ;;  %vm5356_vm4 = vnez %v5286_v54 }
  0x44   :  { %2646 = vmatpush.msk.msrb.mxu1 %vm3272_vm8, %v5209_v35  ;;  %2710 = vmatpush.msk.msrb.mxu0 %vm3257_vm7, %v5209_v35  ;;  %vm5358_vm7 = vnez %v5289_v55 }
  0x45   :  { %901 = vperm.xlu1 %2923, %v3178_v23   ;;  %896 = vperm.xlu0 %2922, %v3183_v24  }
  0x46   :  { %2647 = vmatpush.msk.msrb.mxu1 %vm3282_vm9, %v5209_v35  ;;  %2711 = vmatpush.msk.msrb.mxu0 %vm5356_vm4, %v5209_v35  ;;  %vm5361_vm4 = vnez %v5317_v41 }
  0x48   :  { %2648 = vmatpush.msk.msrb.mxu1 %vm3329_vm13, %v5209_v35  ;;  %vm5357_vm13 = vnez %v5302_v3  ;;  %2712 = vmatpush.msk.msrb.mxu0 %vm5358_vm7, %v5209_v35  ;;  %vm5362_vm7 = vnez %v5297_v62 }
  0x4a   :  { %2649 = vmatpush.msk.msrb.mxu1 %vm5355_vm3, %v5209_v35  ;;  %vm5360_vm3 = vnez %v5292_v58 }
  0x4b   :  { %2713 = vmatpush.msk.msrb.mxu0 %vm5360_vm3, %v5209_v35  ;;  %vm5364_vm3 = vnez %v5305_v10 }
  0x4c   :  { %2650 = vmatpush.msk.msrb.mxu1 %vm5357_vm13, %v5209_v35  ;;  %vm5366_vm13 = vnez %v5311_v37 }
  0x4d   :  { %916 = vperm.xlu1 %2923, %v3198_v30   ;;  %911 = vperm.xlu0 %2922, %v3209_v34  }
  0x4e   :  { %2651 = vmatpush.msk.msrb.mxu1 %vm5359_vm12, %v5209_v35  ;;  %2714 = vmatpush.msk.msrb.mxu0 %vm5362_vm7, %v5209_v35  ;;  %vm5363_vm12 = vnez %v5323_v49  ;;  %vm5367_vm7 = vnez %v5332_v25 }
  0x50   :  { %2652 = vmatpush.msk.msrb.mxu1 %vm5361_vm4, %v5209_v35  ;;  %2715 = vmatpush.msk.msrb.mxu0 %vm5364_vm3, %v5209_v35  ;;  %vm5365_vm4 = vnez %v5326_v56  ;;  %vm5369_vm3 = vnez %v5341_v52 }
  0x52   :  { %2653 = vmatpush.msk.msrb.mxu1 %vm5363_vm12, %v5209_v35  ;;  %2716 = vmatpush.msk.msrb.mxu0 %vm5366_vm13, %v5209_v35  ;;  %vm5368_vm12 = vnez %v5314_v38  ;;  %vm5370_vm13 = vnez %v5320_v47 }
  0x54   :  { %2654 = vmatpush.msk.msrb.mxu1 %vm5365_vm4, %v5209_v35  ;;  %2717 = vmatpush.msk.msrb.mxu0 %vm5368_vm12, %v5209_v35 }
  0x55   :  { %931 = vperm.xlu1 %2923, %v3279_v50   ;;  %926 = vperm.xlu0 %2922, %v3293_v53  }
  0x56   :  { %2655 = vmatpush.msk.msrb.mxu1 %vm5367_vm7, %v5209_v35  ;;  %2718 = vmatpush.msk.msrb.mxu0 %vm5370_vm13, %v5209_v35 }
  0x58   :  { %2656 = vmatpush.msk.msrb.mxu1 %vm5369_vm3, %v5209_v35  ;;  %2719 = vmatpush.msk.msrb.mxu0 %vm3463_vm0, %v5209_v35 }
  0x5a   :  { %2657 = vmatpush.msk.msrb.mxu1 %vm3526_vm15, %v5209_v35  ;;  %2720 = vmatpush.msk.msrb.mxu0 %vm3490_vm1, %v5209_v35 }
  0x5c   :  { %2658 = vmatpush.msk.msrb.mxu1 %vm3547_vm10, %v5209_v35  ;;  %2721 = vmatpush.msk.msrb.mxu0 %vm3502_vm14, %v5209_v35 }
  0x5d   :  { %946 = vperm.xlu1 %2923, %v3368_v7   ;;  %941 = vperm.xlu0 %2922, %v3382_v16  }
  0x5e   :  { %2722 = vmatpush.msk.msrb.mxu0 %vm3521_vm11, %v5209_v35 }
  0x65   :  { %961 = vperm.xlu1 %2923, %v3457_v60   ;;  %956 = vperm.xlu0 %2922, %v3471_v4  }
  0x6d   :  { %1369 = vperm.xlu1 %2923, %v3083_v6   ;;  %1364 = vperm.xlu0 %2922, %v3066_v2   ;;  %v3603_v2 = vld [vmem:[%s5113_s4 + $0x10] sm:$0xff] }
  0x6e   :  { %378 = vperm.xlu2 %2924, %v3603_v2  }
  0x75   :  { %1534 = vperm.xlu1 %2923, %v3254_v45   ;;  %1529 = vperm.xlu0 %2922, %v3078_v5   ;;  %v3632_v5 = vld [vmem:[%s5113_s4 + $0x28] sm:$0xff] }
  0x76   :  { %393 = vperm.xlu2 %2924, %v3632_v5  }
  0x77   :  { %v202_v6 = vpop.permute.xlu0 %201  ;;  %v212_v29 = vpop.permute.xlu1 %211 }
  0x7d   :  { %1549 = vperm.xlu1 %2923, %v3094_v8   ;;  %1544 = vperm.xlu0 %2922, %v3099_v9   ;;  %v3664_v8 = vld [vmem:[%s5113_s4 + $0x40] sm:$0xff] }
  0x7e   :  { %408 = vperm.xlu2 %2924, %v3664_v8  }
  0x85   :  { %1564 = vperm.xlu1 %2923, %v3110_v11   ;;  %1559 = vperm.xlu0 %2922, %v3115_v12   ;;  %v207_v12 = vpop.permute.xlu0 %206 }
  0x86   :  { %423 = vperm.xlu2 %2924, %v3700_v26  }
  0x8d   :  { %1579 = vperm.xlu1 %2923, %v3126_v14   ;;  %1574 = vperm.xlu0 %2922, %v3131_v15  }
  0x8e   :  { %v261_v9 = vpop.f32.mrf.mxu3  ;;  %438 = vperm.xlu2 %2924, %v306_v27  }
  0x8f   :  { %v3672_v11 = vadd.f32 %v261_v9, %v202_v6  ;;  %v1474_v6 = vld [vmem:[%s5117_s8] sm:$0x7] }
  0x90   :  { %v280_v9 = vld [vmem:[%s5112_s3 + $0x20] sm:$0xff] }
  0x91   :  { %330 = vmatmul.f32.vlgmr.msra.gmra.mxu1 %v3672_v11  ;;  %356 = vmatmul.f32.vlgmr.msra.gmra.mxu2 %v3672_v11 }
  0x92   :  { %2724 = vmatpush.msk.msra.mxu1 %vm3201_vm2, %v5209_v35  ;;  %vm5377_vm2 = vnez %v5323_v49 }
  0x94   :  { %2725 = vmatpush.msk.msra.mxu1 %vm3231_vm5, %v5209_v35  ;;  %vm5372_vm5 = vnez %v5295_v59 }
  0x95   :  { %1594 = vperm.xlu1 %2923, %v3142_v17   ;;  %1589 = vperm.xlu0 %2922, %v3147_v18   ;;  %v1360_v18 = vld [vmem:[%s5111_s2 + $0x18] sm:$0xff] }
  0x96   :  { %v264_v14 = vpop.f32.mrf.mxu3  ;;  %2726 = vmatpush.msk.msra.mxu1 %vm3236_vm6, %v5209_v35  ;;  %vm5371_vm6 = vnez %v5350_v33  ;;  %216 = vperm.xlu2 %2924, %v1360_v18  }
  0x97   :  { %v3705_v15 = vadd.f32 %v264_v14, %v207_v12  ;;  %2723 = vmatpush.msk.msrb.mxu0 %vm5371_vm6, %v5209_v35  ;;  %v282_v12 = vld [vmem:[%s5112_s3 + $0x30] sm:$0xff]  ;;  %v283_v14 = vld [vmem:[%s5112_s3 + $0x38] sm:$0xff] }
  0x98   :  { %2727 = vmatpush.msk.msra.mxu1 %vm3272_vm8, %v5209_v35  ;;  %vm5373_vm8 = vnez %v5300_v63 }
  0x99   :  { %333 = vmatmul.f32.gmra.mxu1 %v3705_v15  ;;  %359 = vmatmul.f32.gmra.mxu2 %v3705_v15 }
  0x9a   :  { %2728 = vmatpush.msk.msra.mxu1 %vm3282_vm9, %v5209_v35  ;;  %vm5375_vm9 = vnez %v5308_v28 }
  0x9c   :  { %2729 = vmatpush.msk.msra.mxu1 %vm5372_vm5, %v5209_v35  ;;  %vm5374_vm5 = vnez %v5302_v3 }
  0x9d   :  { %1379 = vperm.xlu1 %2923, %v1360_v18   ;;  %1604 = vperm.xlu0 %2922, %v3159_v20   ;;  %v817_v20 = vld [vmem:[%s5119_s10 + $0x8] sm:$0xff] }
  0x9e   :  { %v267_v17 = vpop.f32.mrf.mxu3  ;;  %2730 = vmatpush.msk.msra.mxu1 %vm5373_vm8, %v5209_v35  ;;  %vm5376_vm8 = vnez %v5317_v41  ;;  %891 = vperm.xlu2 %2924, %v817_v20  }
  0x9f   :  { %v3733_v45 = vadd.f32 %v267_v17, %v212_v29  ;;  %v286_v17 = vld [vmem:[%s5112_s3 + $0x50] sm:$0xff] }
  0xa0   :  { %2731 = vmatpush.msk.msra.mxu1 %vm5374_vm5, %v5209_v35  ;;  %vm5387_vm5 = vcmask 588800  }
  0xa1   :  { %336 = vmatmul.f32.gmra.mxu1 %v3733_v45  ;;  %362 = vmatmul.f32.gmra.mxu2 %v3733_v45 }
  0xa2   :  { %2732 = vmatpush.msk.msra.mxu1 %vm5375_vm9, %v5209_v35  ;;  %vm5385_vm9 = vnez %v5297_v62 }
  0xa4   :  { %2733 = vmatpush.msk.msra.mxu1 %vm5376_vm8, %v5209_v35  ;;  %vm5384_vm8 = vnez %v5292_v58 }
  0xa5   :  { %2045 = vperm.xlu1 %2923, %v3166_v21   ;;  %1384 = vperm.xlu0 %2922, %v3171_v22   ;;  %v820_v21 = vld [vmem:[%s5119_s10 + $0x20] sm:$0xff]  ;;  %v823_v22 = vld [vmem:[%s5119_s10 + $0x38] sm:$0xff] }
  0xa6   :  { %2734 = vmatpush.msk.msra.mxu1 %vm5377_vm2, %v5209_v35  ;;  %906 = vperm.xlu2 %2924, %v820_v21   ;;  %vm5383_vm2 = vnez %v5289_v55 }
  0xa8   :  { %2735 = vmatpush.msk.msra.mxu1 %vm5365_vm4, %v5209_v35  ;;  %vm5382_vm4 = vcmask 588800  }
  0xaa   :  { %2736 = vmatpush.msk.msra.mxu1 %vm5367_vm7, %v5209_v35  ;;  %vm5380_vm7 = vnez %v5279_v46 }
  0xac   :  { %2737 = vmatpush.msk.msra.mxu1 %vm5369_vm3, %v5209_v35  ;;  %vm5379_vm3 = vnez %v5273_v39 }
  0xad   :  { %2060 = vperm.xlu1 %2923, %v3178_v23   ;;  %2055 = vperm.xlu0 %2922, %v3183_v24   ;;  %v826_v23 = vld [vmem:[%s5119_s10 + $0x50] sm:$0xff]  ;;  %v829_v24 = vld [vmem:[%s5119_s10 + $0x68] sm:$0xff] }
  0xae   :  { %2738 = vmatpush.msk.msra.mxu1 %vm3526_vm15, %v5209_v35  ;;  %921 = vperm.xlu2 %2924, %v823_v22   ;;  %vm5378_vm15 = vnez %v5271_v36 }
  0xb0   :  { %2739 = vmatpush.msk.msra.mxu1 %vm3547_vm10, %v5209_v35  ;;  %vm5189_vm10 = vcmask 588800  }
  0xb5   :  { %2075 = vperm.xlu1 %2923, %v3198_v30   ;;  %2070 = vperm.xlu0 %2922, %v3209_v34   ;;  %v835_v30 = vld [vmem:[%s5121_s12] sm:$0xff] }
  0xb6   :  { %936 = vperm.xlu2 %2924, %v826_v23   ;;  %v837_v34 = vld [vmem:[%s5123_s14] sm:$0x7] }
  0xbd   :  { %2090 = vperm.xlu1 %2923, %v3279_v50   ;;  %2085 = vperm.xlu0 %2922, %v3293_v53   ;;  %v313_v50 = vld [vmem:[%s5117_s8] sm:$0x7] }
  0xbe   :  { %951 = vperm.xlu2 %2924, %v829_v24   ;;  %v1996_v53 = vld [vmem:[%s5123_s14] sm:$0x7] }
  0xc5   :  { %2105 = vperm.xlu1 %2923, %v3368_v7   ;;  %2100 = vperm.xlu0 %2922, %v3382_v16  }
  0xc6   :  { %1226 = vperm.xlu2 %2924, %v835_v30  }
  0xcd   :  { %2120 = vperm.xlu1 %2923, %v3457_v60   ;;  %2115 = vperm.xlu0 %2922, %v3471_v4  }
  0xce   :  { %1374 = vperm.xlu2 %2924, %v3061_v1  }
  0xd5   :  { %1291 = vperm.xlu1 %2923, %v837_v34   ;;  %773 = vperm.xlu0 %2922, %v313_v50   ;;  %v290_v50 = vld [vmem:[%s5112_s3 + $0x70] sm:$0xff] }
  0xd6   :  { %1539 = vperm.xlu2 %2924, %v3603_v2   ;;  %v277_v2 = vld [vmem:[%s5112_s3 + $0x8] sm:$0xff] }
  0xdd   :  { %2449 = vperm.xlu0 %2922, %v1996_v53  }
  0xde   :  { %1554 = vperm.xlu2 %2924, %v3632_v5   ;;  %v278_v5 = vld [vmem:[%s5112_s3 + $0x10] sm:$0xff] }
  0xe6   :  { %1569 = vperm.xlu2 %2924, %v3664_v8   ;;  %v279_v8 = vld [vmem:[%s5112_s3 + $0x18] sm:$0xff] }
  0xee   :  { %1584 = vperm.xlu2 %2924, %v3700_v26   ;;  %v284_v26 = vld [vmem:[%s5112_s3 + $0x40] sm:$0xff] }
  0xf6   :  { %1599 = vperm.xlu2 %2924, %v306_v27   ;;  %v285_v27 = vld [vmem:[%s5112_s3 + $0x48] sm:$0xff] }
  0xfe   :  { %1868 = vperm.xlu2 %2924, %v3154_v19   ;;  %v276_v19 = vld [vmem:[%s5112_s3] sm:$0xff] }
 0x106   :  { %2050 = vperm.xlu2 %2924, %v817_v20   ;;  %v287_v20 = vld [vmem:[%s5112_s3 + $0x58] sm:$0xff] }
 0x10e   :  { %v331_v16 = vpop.f32.mrf.mxu1  ;;  %2065 = vperm.xlu2 %2924, %v820_v21  }
 0x114   :  { %v357_v7 = vpop.f32.mrf.mxu2 }
 0x116   :  { %v334_v4 = vpop.f32.mrf.mxu1  ;;  %2080 = vperm.xlu2 %2924, %v823_v22   ;;  %v288_v22 = vld [vmem:[%s5112_s3 + $0x60] sm:$0xff] }
 0x11c   :  { %v360_v1 = vpop.f32.mrf.mxu2 }
 0x11e   :  { %2095 = vperm.xlu2 %2924, %v826_v23   ;;  %v337_v31 = vpop.f32.mrf.mxu1 }
 0x124   :  { %v363_v60 = vpop.f32.mrf.mxu2 }
 0x125   :  { %502 = vmatpush.msrb.mxu3 %v363_v60 }
 0x126   :  { %2110 = vperm.xlu2 %2924, %v829_v24   ;;  %v289_v24 = vld [vmem:[%s5112_s3 + $0x68] sm:$0xff] }
 0x127   :  { %503 = vmatpush.msrb.mxu3 %v360_v1  ;;  %v291_v1 = vld [vmem:[%s5112_s3 + $0x78] sm:$0xff] }
 0x129   :  { %504 = vmatpush.msrb.mxu3 %v357_v7  ;;  %v270_v7 = vpop.f32.mrf.mxu3 }
 0x12b   :  { %505 = vmatpush.msrb.mxu3 %v3733_v45  ;;  %v3911_v45 = vpop.permute.xlu0 %383 }
 0x12d   :  { %506 = vmatpush.msrb.mxu3 %v3705_v15  ;;  %v374_v15 = vpop.permute.xlu2 %373 }
 0x12e   :  { %2384 = vperm.xlu2 %2924, %v835_v30  }
 0x12f   :  { %507 = vmatpush.msrb.mxu3 %v3672_v11  ;;  %v281_v11 = vld [vmem:[%s5112_s3 + $0x28] sm:$0xff] }
 0x131   :  { %508 = vmatpush.msrb.mxu3 %v337_v31 }
 0x133   :  { %509 = vmatpush.msrb.mxu3 %v334_v4  ;;  %v3919_v21 = vpop.permute.xlu0 %398  ;;  %v273_v4 = vpop.f32.mrf.mxu3 }
 0x135   :  { %510 = vmatpush.msrb.mxu3 %v331_v16  ;;  %v379_v29 = vpop.permute.xlu2 %378 }
 0x136   :  { %2611 = vmatmul.msk.f32.vlgmr.msrb.gmra.mxu3 %vm5189_vm10, %v276_v19  ;;  %vm5381_vm10 = vnez %v5286_v54  ;;  %1933 = vperm.xlu2 %2924, %v1474_v6  }
 0x137   :  { %2660 = vmatpush.msk.msra.mxu3 %vm5378_vm15, %v5209_v35 }
 0x139   :  { %2661 = vmatpush.msk.msra.mxu3 %vm5379_vm3, %v5209_v35 }
 0x13b   :  { %2662 = vmatpush.msk.msra.mxu3 %vm5380_vm7, %v5209_v35  ;;  %v3930_v30 = vpop.permute.xlu0 %413 }
 0x13d   :  { %2663 = vmatpush.msk.msra.mxu3 %vm5381_vm10, %v5209_v35  ;;  %v3913_v18 = vpop.permute.xlu2 %393 }
 0x13e   :  { %2612 = vmatmul.msk.f32.gmra.mxu3 %vm5382_vm4, %v277_v2  ;;  %vm5386_vm4 = vnez %v5305_v10  ;;  %v369_v2 = vpop.permute.xlu1 %368 }
 0x13f   :  { %2664 = vmatpush.msk.msra.mxu3 %vm5383_vm2, %v5209_v35 }
 0x141   :  { %2665 = vmatpush.msk.msra.mxu3 %vm5384_vm8, %v5209_v35  ;;  %vm5388_vm8 = vnez %v5311_v37 }
 0x143   :  { %2666 = vmatpush.msk.msra.mxu3 %vm5385_vm9, %v5209_v35  ;;  %v3938_v53 = vpop.permute.xlu0 %428 }
 0x145   :  { %2667 = vmatpush.msk.msra.mxu3 %vm5386_vm4, %v5209_v35  ;;  %v3924_v23 = vpop.permute.xlu2 %408 }
 0x146   :  { %2613 = vmatmul.msk.f32.gmra.mxu3 %vm5387_vm5, %v278_v5 }
 0x147   :  { %2668 = vmatpush.msk.msra.mxu3 %vm5388_vm8, %v5209_v35 }
 0x149   :  { %2669 = vmatpush.msk.msra.mxu3 %vm5368_vm12, %v5209_v35 }
 0x14b   :  { %2670 = vmatpush.msk.msra.mxu3 %vm5370_vm13, %v5209_v35  ;;  %v3947_v60 = vpop.permute.xlu0 %443 }
 0x14d   :  { %2671 = vmatpush.msk.msra.mxu3 %vm3463_vm0, %v5209_v35  ;;  %v3933_v34 = vpop.permute.xlu2 %423 }
 0x14e   :  { %2614 = vmatmul.msk.f32.gmra.mxu3 %vm5387_vm5, %v279_v8 }
 0x14f   :  { %2672 = vmatpush.msk.msra.mxu3 %vm3490_vm1, %v5209_v35  ;;  %vm5389_vm1 = vmmov %vm5387_vm5 }
 0x151   :  { %2673 = vmatpush.msk.msra.mxu3 %vm3502_vm14, %v5209_v35  ;;  %vm5390_vm14 = vmmov %vm5389_vm1 }
 0x153   :  { %2674 = vmatpush.msk.msra.mxu3 %vm3521_vm11, %v5209_v35  ;;  %vm5391_vm11 = vmmov %vm5389_vm1  ;;  %v222_v6 = vpop.permute.xlu0 %221 }
 0x155   :  { %2675 = vmatpush.msk.msra.mxu3 %vm5371_vm6, %v5209_v35  ;;  %v3941_v16 = vpop.permute.xlu2 %438 }
 0x156   :  { %2615 = vmatmul.msk.f32.gmra.mxu3 %vm5387_vm5, %v280_v9  ;;  %vm5392_vm5 = vmmov %vm5389_vm1 }
 0x15d   :  { %v217_v31 = vpop.permute.xlu2 %216 }
 0x15e   :  { %2616 = vmatmul.msk.f32.gmra.mxu3 %vm5389_vm1, %v281_v11  ;;  %v3949_v19 = vadd.f32 %v270_v7, %v217_v31  ;;  %v3954_v11 = vadd.f32 %v273_v4, %v222_v6 }
 0x166   :  { %2617 = vmatmul.msk.f32.gmra.mxu3 %vm5390_vm14, %v282_v12  ;;  %vm5393_vm14 = vmmov %vm5389_vm1 }
 0x16e   :  { %2618 = vmatmul.msk.f32.gmra.mxu3 %vm5391_vm11, %v283_v14  ;;  %vm5394_vm11 = vmmov %vm5389_vm1 }
 0x176   :  { %2619 = vmatmul.msk.f32.gmra.mxu3 %vm5392_vm5, %v284_v26  ;;  %vm5395_vm5 = vmmov %vm5389_vm1 }
 0x17e   :  { %2620 = vmatmul.msk.f32.gmra.mxu3 %vm5389_vm1, %v285_v27 }
 0x186   :  { %2621 = vmatmul.msk.f32.gmra.mxu3 %vm5393_vm14, %v286_v17  ;;  %vm5396_vm14 = vmmov %vm5389_vm1 }
 0x18e   :  { %2622 = vmatmul.msk.f32.gmra.mxu3 %vm5394_vm11, %v287_v20  ;;  %vm5397_vm11 = vmmov %vm5389_vm1 }
 0x196   :  { %2623 = vmatmul.msk.f32.gmra.mxu3 %vm5395_vm5, %v288_v22  ;;  %vm5398_vm5 = vnez %v5269_v32  ;;  %v5538_v32 = vld [vmem:[#allocation10_spill] sm:$0xff] }
 0x19e   :  { %2624 = vmatmul.msk.f32.gmra.mxu3 %vm5389_vm1, %v289_v24  ;;  %vm5399_vm1 = vnez %v5275_v40  ;;  %v5540_v40 = vld [vmem:[#allocation12_spill] sm:$0xff] }
 0x1a6   :  { %2625 = vmatmul.msk.f32.gmra.mxu3 %vm5396_vm14, %v290_v50  ;;  %vm5400_vm14 = vnez %v5277_v42  ;;  %v5542_v42 = vld [vmem:[#allocation15_spill] sm:$0xff] }
 0x1ae   :  { %2626 = vmatmul.msk.f32.gmra.mxu3 %vm5397_vm11, %v291_v1  ;;  %vm5401_vm11 = vnez %v5282_v48 }
 0x1b6   :  { %854 = vmatmul.f32.vlgmr.msra.gmra.mxu3 %v3949_v19 }
 0x1b9   :  { %v512_v5 = vpop.f32.mrf.mxu3 }
 0x1ba   :  { %v513_v8 = vadd.f32 %v512_v5, %v369_v2 }
 0x1bc   :  { %v3952_v9 = vmax.f32 %v513_v8, 0.0 }
 0x1be   :  { %592 = vmatmul.f32.vlgmr.msra.gmra.mxu0 %v3952_v9  ;;  %657 = vmatmul.f32.vlgmr.msrb.gmra.mxu1 %v3952_v9 }
 0x1bf   :  { %857 = vmatmul.f32.gmra.mxu3 %v3954_v11  ;;  %2764 = vmatpush.msk.msra.mxu0 %vm5398_vm5, %v5209_v35 }
 0x1c0   :  { %2796 = vmatpush.msk.msrb.mxu1 %vm5378_vm15, %v5209_v35  ;;  %vm5404_vm15 = vnez %v5300_v63 }
 0x1c1   :  { %v515_v12 = vpop.f32.mrf.mxu3  ;;  %2765 = vmatpush.msk.msra.mxu0 %vm5399_vm1, %v5209_v35 }
 0x1c2   :  { %v516_v14 = vadd.f32 %v515_v12, %v374_v15  ;;  %2797 = vmatpush.msk.msrb.mxu1 %vm5379_vm3, %v5209_v35  ;;  %vm5402_vm3 = vnez %v5284_v51 }
 0x1c3   :  { %2766 = vmatpush.msk.msra.mxu0 %vm5400_vm14, %v5209_v35 }
 0x1c4   :  { %v3974_v26 = vmax.f32 %v516_v14, 0.0  ;;  %2798 = vmatpush.msk.msrb.mxu1 %vm5380_vm7, %v5209_v35  ;;  %vm5403_vm7 = vnez %v5295_v59 }
 0x1c5   :  { %2767 = vmatpush.msk.msra.mxu0 %vm5401_vm11, %v5209_v35 }
 0x1c6   :  { %595 = vmatmul.f32.gmra.mxu0 %v3974_v26  ;;  %660 = vmatmul.f32.gmra.mxu1 %v3974_v26 }
 0x1c7   :  { %2768 = vmatpush.msk.msra.mxu0 %vm5402_vm3, %v5209_v35  ;;  %2799 = vmatpush.msk.msrb.mxu1 %vm5381_vm10, %v5209_v35  ;;  %vm5405_vm3 = vnez %v5292_v58  ;;  %vm5406_vm10 = vnez %v5302_v3 }
 0x1c9   :  { %v518_v15 = vpop.f32.mrf.mxu3  ;;  %2769 = vmatpush.msk.msra.mxu0 %vm5403_vm7, %v5209_v35  ;;  %2800 = vmatpush.msk.msrb.mxu1 %vm5383_vm2, %v5209_v35  ;;  %vm5407_vm2 = vnez %v5308_v28 }
 0x1ca   :  { %v519_v27 = vadd.f32 %v518_v15, %v379_v29 }
 0x1cb   :  { %2770 = vmatpush.msk.msra.mxu0 %vm5404_vm15, %v5209_v35  ;;  %2801 = vmatpush.msk.msrb.mxu1 %vm5405_vm3, %v5209_v35  ;;  %vm5408_vm3 = vnez %v5317_v41 }
 0x1cc   :  { %v4002_v17 = vmax.f32 %v519_v27, 0.0 }
 0x1cd   :  { %2771 = vmatpush.msk.msra.mxu0 %vm5406_vm10, %v5209_v35  ;;  %2802 = vmatpush.msk.msrb.mxu1 %vm5385_vm9, %v5209_v35  ;;  %vm5409_vm9 = vnez %v5323_v49 }
 0x1ce   :  { %598 = vmatmul.f32.gmra.mxu0 %v4002_v17  ;;  %663 = vmatmul.f32.gmra.mxu1 %v4002_v17 }
 0x1cf   :  { %2772 = vmatpush.msk.msra.mxu0 %vm5407_vm2, %v5209_v35  ;;  %2803 = vmatpush.msk.msrb.mxu1 %vm5386_vm4, %v5209_v35  ;;  %vm5410_vm4 = vnez %v5326_v56 }
 0x1d1   :  { %v521_v29 = vpop.f32.mrf.mxu3  ;;  %2773 = vmatpush.msk.msra.mxu0 %vm5408_vm3, %v5209_v35  ;;  %2804 = vmatpush.msk.msrb.mxu1 %vm5388_vm8, %v5209_v35  ;;  %vm5411_vm8 = vnez %v5332_v25 }
 0x1d2   :  { %v522_v20 = vadd.f32 %v521_v29, %v3911_v45  ;;  %v389_v45 = vpop.permute.xlu1 %388 }
 0x1d3   :  { %2774 = vmatpush.msk.msra.mxu0 %vm5409_vm9, %v5209_v35  ;;  %2805 = vmatpush.msk.msrb.mxu1 %vm5368_vm12, %v5209_v35  ;;  %vm5412_vm12 = vnez %v5341_v52 }
 0x1d4   :  { %v4031_v22 = vmax.f32 %v522_v20, 0.0 }
 0x1d5   :  { %2775 = vmatpush.msk.msra.mxu0 %vm5410_vm4, %v5209_v35  ;;  %2806 = vmatpush.msk.msrb.mxu1 %vm5370_vm13, %v5209_v35  ;;  %vm5413_vm13 = vnez %v5335_v43  ;;  %vm5414_vm4 = vnez %v5347_v0 }
 0x1d6   :  { %601 = vmatmul.f32.gmra.mxu0 %v4031_v22  ;;  %666 = vmatmul.f32.gmra.mxu1 %v4031_v22 }
 0x1d7   :  { %2776 = vmatpush.msk.msra.mxu0 %vm5411_vm8, %v5209_v35  ;;  %2807 = vmatpush.msk.msrb.mxu1 %vm3463_vm0, %v5209_v35  ;;  %vm5415_vm8 = vnez %v5338_v44  ;;  %vm5416_vm0 = vnez %v5353_v57 }
 0x1d9   :  { %v524_v24 = vpop.f32.mrf.mxu3  ;;  %2777 = vmatpush.msk.msra.mxu0 %vm5412_vm12, %v5209_v35  ;;  %2808 = vmatpush.msk.msrb.mxu1 %vm5413_vm13, %v5209_v35  ;;  %vm5417_vm12 = vnez %v5344_v13 }
 0x1da   :  { %v525_v50 = vadd.f32 %v524_v24, %v389_v45  ;;  %v404_v8 = vpop.permute.xlu1 %403 }
 0x1db   :  { %2778 = vmatpush.msk.msra.mxu0 %vm5414_vm4, %v5209_v35  ;;  %2809 = vmatpush.msk.msrb.mxu1 %vm5415_vm8, %v5209_v35 }
 0x1dc   :  { %v4059_v7 = vmax.f32 %v525_v50, 0.0 }
 0x1dd   :  { %2779 = vmatpush.msk.msra.mxu0 %vm5416_vm0, %v5209_v35  ;;  %2810 = vmatpush.msk.msrb.mxu1 %vm5417_vm12, %v5209_v35  ;;  %vm5419_vm12 = vnez %v5284_v51 }
 0x1de   :  { %604 = vmatmul.f32.gmra.mxu0 %v4059_v7  ;;  %669 = vmatmul.f32.gmra.mxu1 %v4059_v7 }
 0x1df   :  { %2811 = vmatpush.msk.msrb.mxu1 %vm5371_vm6, %v5209_v35  ;;  %vm5240_vm6 = vcmask 64512  }
 0x1e1   :  { %v527_v1 = vpop.f32.mrf.mxu3 }
 0x1e2   :  { %v528_v4 = vadd.f32 %v527_v1, %v3913_v18  ;;  %v419_v24 = vpop.permute.xlu1 %418 }
 0x1e4   :  { %v4073_v31 = vmax.f32 %v528_v4, 0.0 }
 0x1e6   :  { %607 = vmatmul.f32.gmra.mxu0 %v4073_v31  ;;  %672 = vmatmul.f32.gmra.mxu1 %v4073_v31 }
 0x1e9   :  { %v530_v2 = vpop.f32.mrf.mxu3 }
 0x1ea   :  { %v531_v5 = vadd.f32 %v530_v2, %v3919_v21 }
 0x1ec   :  { %v4078_v6 = vmax.f32 %v531_v5, 0.0 }
 0x1ee   :  { %610 = vmatmul.f32.gmra.mxu0 %v4078_v6  ;;  %675 = vmatmul.f32.gmra.mxu1 %v4078_v6 }
 0x1f1   :  { %v533_v12 = vpop.f32.mrf.mxu3 }
 0x1f2   :  { %v534_v14 = vadd.f32 %v533_v12, %v404_v8 }
 0x1f4   :  { %v4082_v15 = vmax.f32 %v534_v14, 0.0  ;;  %v434_v14 = vpop.permute.xlu1 %433 }
 0x1f6   :  { %613 = vmatmul.f32.gmra.mxu0 %v4082_v15  ;;  %678 = vmatmul.f32.gmra.mxu1 %v4082_v15 }
 0x1f9   :  { %v536_v18 = vpop.f32.mrf.mxu3 }
 0x1fa   :  { %v537_v27 = vadd.f32 %v536_v18, %v3924_v23 }
 0x1fc   :  { %v4087_v29 = vmax.f32 %v537_v27, 0.0 }
 0x1fe   :  { %616 = vmatmul.f32.gmra.mxu0 %v4087_v29  ;;  %681 = vmatmul.f32.gmra.mxu1 %v4087_v29 }
 0x201   :  { %v539_v21 = vpop.f32.mrf.mxu3 }
 0x202   :  { %v540_v20 = vadd.f32 %v539_v21, %v3930_v30 }
 0x204   :  { %v4092_v45 = vmax.f32 %v540_v20, 0.0 }
 0x206   :  { %619 = vmatmul.f32.gmra.mxu0 %v4092_v45  ;;  %684 = vmatmul.f32.gmra.mxu1 %v4092_v45 }
 0x209   :  { %v542_v50 = vpop.f32.mrf.mxu3 }
 0x20a   :  { %v543_v1 = vadd.f32 %v542_v50, %v419_v24 }
 0x20c   :  { %v4096_v4 = vmax.f32 %v543_v1, 0.0 }
 0x20e   :  { %622 = vmatmul.f32.gmra.mxu0 %v4096_v4  ;;  %687 = vmatmul.f32.gmra.mxu1 %v4096_v4 }
 0x211   :  { %v545_v23 = vpop.f32.mrf.mxu3 }
 0x212   :  { %v546_v2 = vadd.f32 %v545_v23, %v3933_v34 }
 0x214   :  { %v4101_v5 = vmax.f32 %v546_v2, 0.0 }
 0x216   :  { %625 = vmatmul.f32.gmra.mxu0 %v4101_v5  ;;  %690 = vmatmul.f32.gmra.mxu1 %v4101_v5 }
 0x219   :  { %v548_v30 = vpop.f32.mrf.mxu3 }
 0x21a   :  { %v549_v8 = vadd.f32 %v548_v30, %v3938_v53 }
 0x21c   :  { %v4106_v12 = vmax.f32 %v549_v8, 0.0 }
 0x21e   :  { %628 = vmatmul.f32.gmra.mxu0 %v4106_v12  ;;  %693 = vmatmul.f32.gmra.mxu1 %v4106_v12 }
 0x221   :  { %v551_v18 = vpop.f32.mrf.mxu3 }
 0x222   :  { %v552_v27 = vadd.f32 %v551_v18, %v434_v14 }
 0x224   :  { %v573_v21 = vmax.f32 %v552_v27, 0.0 }
 0x226   :  { %631 = vmatmul.f32.gmra.mxu0 %v573_v21  ;;  %696 = vmatmul.f32.gmra.mxu1 %v573_v21 }
 0x229   :  { %v554_v34 = vpop.f32.mrf.mxu3 }
 0x22a   :  { %v555_v20 = vadd.f32 %v554_v34, %v3941_v16 }
 0x22c   :  { %v574_v24 = vmax.f32 %v555_v20, 0.0 }
 0x22e   :  { %634 = vmatmul.f32.gmra.mxu0 %v574_v24  ;;  %699 = vmatmul.f32.gmra.mxu1 %v574_v24 }
 0x231   :  { %v557_v50 = vpop.f32.mrf.mxu3 }
 0x232   :  { %v558_v53 = vadd.f32 %v557_v50, %v3947_v60 }
 0x234   :  { %v575_v1 = vmax.f32 %v558_v53, 0.0 }
 0x236   :  { %637 = vmatmul.f32.gmra.mxu0 %v575_v1  ;;  %702 = vmatmul.f32.gmra.mxu1 %v575_v1 }
 0x23b   :  { %v593_v23 = vpop.f32.mrf.mxu0  ;;  %v4112_v18 = vpop.f32.mrf.mxu1 }
 0x243   :  { %v596_v2 = vpop.f32.mrf.mxu0  ;;  %v4114_v35 = vpop.f32.mrf.mxu1 }
 0x24b   :  { %v599_v30 = vpop.f32.mrf.mxu0  ;;  %v4116_v34 = vpop.f32.mrf.mxu1 }
 0x253   :  { %v602_v8 = vpop.f32.mrf.mxu0  ;;  %v4118_v33 = vpop.f32.mrf.mxu1 }
 0x25b   :  { %v605_v14 = vpop.f32.mrf.mxu0  ;;  %v4120_v53 = vpop.f32.mrf.mxu1 }
 0x263   :  { %v608_v27 = vpop.f32.mrf.mxu0  ;;  %v673_v44 = vpop.f32.mrf.mxu1 }
 0x26b   :  { %v611_v16 = vpop.f32.mrf.mxu0  ;;  %v676_v61 = vpop.f32.mrf.mxu1 }
 0x273   :  { %v614_v20 = vpop.f32.mrf.mxu0  ;;  %v679_v38 = vpop.f32.mrf.mxu1 }
 0x27b   :  { %v617_v60 = vpop.f32.mrf.mxu0  ;;  %v682_v62 = vpop.f32.mrf.mxu1 }
 0x283   :  { %v620_v50 = vpop.f32.mrf.mxu0  ;;  %v685_v55 = vpop.f32.mrf.mxu1 }
 0x28b   :  { %v623_v13 = vpop.f32.mrf.mxu0  ;;  %v688_v54 = vpop.f32.mrf.mxu1 }
 0x293   :  { %v626_v43 = vpop.f32.mrf.mxu0  ;;  %v691_v46 = vpop.f32.mrf.mxu1 }
 0x29b   :  { %v629_v47 = vpop.f32.mrf.mxu0 }
 0x2a3   :  { %v632_v37 = vpop.f32.mrf.mxu0 }
 0x2ab   :  { %v635_v10 = vpop.f32.mrf.mxu0 }
 0x2b3   :  { %v638_v58 = vpop.f32.mrf.mxu0 }
 0x2b4   :  { %711 = vmatpush.msrb.mxu2 %v638_v58  ;;  %v308_v58 = vld [vmem:[%s5114_s5] sm:$0xff] }
 0x2b6   :  { %712 = vmatpush.msrb.mxu2 %v635_v10  ;;  %v694_v10 = vpop.f32.mrf.mxu1 }
 0x2b8   :  { %713 = vmatpush.msrb.mxu2 %v632_v37 }
 0x2ba   :  { %714 = vmatpush.msrb.mxu2 %v629_v47 }
 0x2bc   :  { %715 = vmatpush.msrb.mxu2 %v626_v43  ;;  %v309_v43 = vld [vmem:[%s5114_s5 + $0x8] sm:$0xff] }
 0x2be   :  { %716 = vmatpush.msrb.mxu2 %v623_v13  ;;  %v697_v37 = vpop.f32.mrf.mxu1 }
 0x2c0   :  { %717 = vmatpush.msrb.mxu2 %v620_v50  ;;  %v809_v50 = vld [vmem:[%s5118_s9 + $0x48] sm:$0xff] }
 0x2c2   :  { %718 = vmatpush.msrb.mxu2 %v617_v60  ;;  %v808_v60 = vld [vmem:[%s5118_s9 + $0x40] sm:$0xff] }
 0x2c4   :  { %719 = vmatpush.msrb.mxu2 %v614_v20  ;;  %v807_v20 = vld [vmem:[%s5118_s9 + $0x38] sm:$0xff] }
 0x2c6   :  { %720 = vmatpush.msrb.mxu2 %v611_v16  ;;  %v700_v47 = vpop.f32.mrf.mxu1  ;;  %v805_v16 = vld [vmem:[%s5118_s9 + $0x28] sm:$0xff] }
 0x2c8   :  { %721 = vmatpush.msrb.mxu2 %v608_v27  ;;  %v5450_v27 = vld [vmem:[#allocation26_spill] sm:$0xff] }
 0x2ca   :  { %722 = vmatpush.msrb.mxu2 %v605_v14  ;;  %v804_v14 = vld [vmem:[%s5118_s9 + $0x20] sm:$0xff] }
 0x2cc   :  { %723 = vmatpush.msrb.mxu2 %v602_v8 }
 0x2ce   :  { %724 = vmatpush.msrb.mxu2 %v599_v30  ;;  %v703_v13 = vpop.f32.mrf.mxu1 }
 0x2d0   :  { %725 = vmatpush.msrb.mxu2 %v596_v2  ;;  %v5444_v2 = vld [vmem:[#allocation19_spill] sm:$0xff] }
 0x2d2   :  { %726 = vmatpush.msrb.mxu2 %v593_v23  ;;  %v5442_v23 = vld [vmem:[#allocation16_spill] sm:$0xff] }
 0x2d3   :  { %727 = vmatmul.f32.vlgmr.msrb.gmra.mxu2 %v308_v58  ;;  %v811_v58 = vld [vmem:[%s5118_s9 + $0x58] sm:$0xff] }
 0x2d4   :  { %731 = vmatpush.msra.mxu2 %v575_v1  ;;  %v803_v1 = vld [vmem:[%s5118_s9 + $0x18] sm:$0xff] }
 0x2d6   :  { %732 = vmatpush.msra.mxu2 %v574_v24  ;;  %v5440_v24 = vld [vmem:[#allocation14_spill] sm:$0xff] }
 0x2d8   :  { %733 = vmatpush.msra.mxu2 %v573_v21  ;;  %v5438_v21 = vld [vmem:[#allocation13_spill] sm:$0xff] }
 0x2da   :  { %734 = vmatpush.msra.mxu2 %v4106_v12  ;;  %v5436_v12 = vld [vmem:[#allocation11_spill] sm:$0xff] }
 0x2dc   :  { %735 = vmatpush.msra.mxu2 %v4101_v5  ;;  %v5434_v5 = vld [vmem:[#allocation9_spill] sm:$0xff] }
 0x2de   :  { %736 = vmatpush.msra.mxu2 %v4096_v4  ;;  %v802_v4 = vld [vmem:[%s5118_s9 + $0x10] sm:$0xff] }
 0x2e0   :  { %737 = vmatpush.msra.mxu2 %v4092_v45  ;;  %v5432_v45 = vld [vmem:[#allocation8_spill] sm:$0xff] }
 0x2e2   :  { %738 = vmatpush.msra.mxu2 %v4087_v29  ;;  %v5430_v29 = vld [vmem:[#allocation7_spill] sm:$0xff] }
 0x2e4   :  { %739 = vmatpush.msra.mxu2 %v4082_v15  ;;  %v5428_v15 = vld [vmem:[#allocation6_spill] sm:$0xff] }
 0x2e6   :  { %740 = vmatpush.msra.mxu2 %v4078_v6  ;;  %v800_v6 = vld [vmem:[%s5118_s9] sm:$0xff] }
 0x2e8   :  { %741 = vmatpush.msra.mxu2 %v4073_v31 }
 0x2ea   :  { %742 = vmatpush.msra.mxu2 %v4059_v7 }
 0x2ec   :  { %743 = vmatpush.msra.mxu2 %v4031_v22  ;;  %v855_v22 = vpop.f32.mrf.mxu3 }
 0x2ee   :  { %744 = vmatpush.msra.mxu2 %v4002_v17 }
 0x2f0   :  { %745 = vmatpush.msra.mxu2 %v3974_v26 }
 0x2f2   :  { %746 = vmatpush.msra.mxu2 %v3952_v9  ;;  %v310_v9 = vld [vmem:[%s5114_s5 + $0x10] sm:$0xff] }
 0x2f3   :  { %747 = vmatmul.f32.vlgmr.msra.gmra.mxu2 %v309_v43  ;;  %v815_v43 = vld [vmem:[%s5118_s9 + $0x78] sm:$0xff] }
 0x2f4   :  { %751 = vmatpush.msrb.mxu2 %v703_v13  ;;  %v858_v31 = vpop.f32.mrf.mxu3 }
 0x2f6   :  { %752 = vmatpush.msrb.mxu2 %v700_v47  ;;  %v814_v47 = vld [vmem:[%s5118_s9 + $0x70] sm:$0xff] }
 0x2f8   :  { %753 = vmatpush.msrb.mxu2 %v697_v37  ;;  %v813_v37 = vld [vmem:[%s5118_s9 + $0x68] sm:$0xff] }
 0x2fa   :  { %754 = vmatpush.msrb.mxu2 %v694_v10  ;;  %v812_v10 = vld [vmem:[%s5118_s9 + $0x60] sm:$0xff] }
 0x2fc   :  { %755 = vmatpush.msrb.mxu2 %v691_v46 }
 0x2fe   :  { %756 = vmatpush.msrb.mxu2 %v688_v54 }
 0x300   :  { %757 = vmatpush.msrb.mxu2 %v685_v55  ;;  %v709_v55 = vpop.permute.xlu1 %708 }
 0x302   :  { %758 = vmatpush.msrb.mxu2 %v682_v62 }
 0x304   :  { %759 = vmatpush.msrb.mxu2 %v679_v38 }
 0x306   :  { %760 = vmatpush.msrb.mxu2 %v676_v61 }
 0x308   :  { %761 = vmatpush.msrb.mxu2 %v673_v44  ;;  %v887_v13 = vpop.permute.xlu1 %886 }
 0x30a   :  { %762 = vmatpush.msrb.mxu2 %v4120_v53  ;;  %v810_v53 = vld [vmem:[%s5118_s9 + $0x50] sm:$0xff] }
 0x30c   :  { %763 = vmatpush.msrb.mxu2 %v4118_v33  ;;  %v312_v33 = vld [vmem:[%s5116_s7] sm:$0x7] }
 0x30e   :  { %764 = vmatpush.msrb.mxu2 %v4116_v34  ;;  %v806_v34 = vld [vmem:[%s5118_s9 + $0x30] sm:$0xff] }
 0x310   :  { %765 = vmatpush.msrb.mxu2 %v4114_v35  ;;  %v5418_v35 = vmov 1.0  }
 0x312   :  { %766 = vmatpush.msrb.mxu2 %v4112_v18  ;;  %v5448_v18 = vld [vmem:[#allocation24_spill] sm:$0xff] }
 0x313   :  { %767 = vmatmul.f32.vlgmr.msrb.gmra.mxu2 %v310_v9 }
 0x356   :  { %v728_v46 = vpop.f32.mrf.mxu2 }
 0x357   :  { %v729_v62 = vadd.f32 %v728_v46, %v709_v55  ;;  %v892_v55 = vpop.permute.xlu2 %891 }
 0x376   :  { %v748_v54 = vpop.f32.mrf.mxu2 }
 0x377   :  { %v749_v38 = vadd.f32 %v748_v54, %v729_v62 }
 0x396   :  { %v768_v61 = vpop.f32.mrf.mxu2 }
 0x397   :  { %v769_v44 = vadd.f32 %v768_v61, %v749_v38 }
 0x399   :  { %795 = vmatpush.msra.mxu2 %v769_v44  ;;  %v897_v44 = vpop.permute.xlu0 %896 }
 0x39a   :  { %2659 = vmatmul.msk.f32.vlgmr.msra.gmra.mxu2 %vm5240_vm6, %v312_v33  ;;  %vm5420_vm6 = vnez %v5326_v56 }
 0x39b   :  { %2676 = vmatpush.msk.msrb.mxu2 %vm5398_vm5, %v5418_v35 }
 0x39d   :  { %2677 = vmatpush.msk.msrb.mxu2 %vm5399_vm1, %v5418_v35 }
 0x39f   :  { %2678 = vmatpush.msk.msrb.mxu2 %vm5400_vm14, %v5418_v35 }
 0x3a1   :  { %2679 = vmatpush.msk.msrb.mxu2 %vm5401_vm11, %v5418_v35 }
 0x3a3   :  { %2680 = vmatpush.msk.msrb.mxu2 %vm5419_vm12, %v5418_v35 }
 0x3a5   :  { %2681 = vmatpush.msk.msrb.mxu2 %vm5403_vm7, %v5418_v35 }
 0x3a7   :  { %2682 = vmatpush.msk.msrb.mxu2 %vm5404_vm15, %v5418_v35  ;;  %vm5421_vm15 = vnez %v5332_v25 }
 0x3a9   :  { %2683 = vmatpush.msk.msrb.mxu2 %vm5406_vm10, %v5418_v35  ;;  %vm5422_vm10 = vnez %v5341_v52 }
 0x3ab   :  { %2684 = vmatpush.msk.msrb.mxu2 %vm5407_vm2, %v5418_v35 }
 0x3ad   :  { %2685 = vmatpush.msk.msrb.mxu2 %vm5408_vm3, %v5418_v35 }
 0x3af   :  { %2686 = vmatpush.msk.msrb.mxu2 %vm5409_vm9, %v5418_v35 }
 0x3b1   :  { %2687 = vmatpush.msk.msrb.mxu2 %vm5420_vm6, %v5418_v35  ;;  %vm5429_vm6 = vnez %v5428_v15 }
 0x3b3   :  { %2688 = vmatpush.msk.msrb.mxu2 %vm5421_vm15, %v5418_v35 }
 0x3b5   :  { %2689 = vmatpush.msk.msrb.mxu2 %vm5422_vm10, %v5418_v35  ;;  %vm5425_vm10 = vnez %v5273_v39 }
 0x3b7   :  { %2690 = vmatpush.msk.msrb.mxu2 %vm5414_vm4, %v5418_v35  ;;  %vm5424_vm4 = vnez %v5271_v36 }
 0x3b9   :  { %2691 = vmatpush.msk.msrb.mxu2 %vm5416_vm0, %v5418_v35  ;;  %vm5245_vm0 = vcmask 392192  }
 0x3ba   :  { %877 = vmatmul.f32.vlgmr.msrb.gmra.mxu2 %v3949_v19 }
 0x3c2   :  { %880 = vmatmul.f32.gmra.mxu2 %v3954_v11 }
 0x41d   :  { %v4203_v26 = vpop.f32.mrf.mxu2 }
 0x41e   :  { %5423 = vst [vmem:[#allocation28_spill] sm:$0xff] %v4203_v26 }
 0x43d   :  { %v878_v17 = vpop.f32.mrf.mxu2 }
 0x445   :  { %v881_v7 = vpop.f32.mrf.mxu2 }
 0x446   :  { %1023 = vmatpush.msrb.mxu3 %v881_v7  ;;  %v902_v7 = vpop.permute.xlu1 %901 }
 0x448   :  { %1024 = vmatpush.msrb.mxu3 %v878_v17 }
 0x44a   :  { %1025 = vmatpush.msrb.mxu3 %v3954_v11  ;;  %v5426_v11 = vld [vmem:[#allocation5_spill] sm:$0xff] }
 0x44b   :  { %vm5427_vm15 = vnez %v5426_v11 }
 0x44c   :  { %1026 = vmatpush.msrb.mxu3 %v3949_v19  ;;  %v801_v19 = vld [vmem:[%s5118_s9 + $0x8] sm:$0xff] }
 0x44e   :  { %1027 = vmatpush.msrb.mxu3 %v858_v31 }
 0x450   :  { %1028 = vmatpush.msrb.mxu3 %v855_v22 }
 0x451   :  { %2692 = vmatmul.msk.f32.vlgmr.msrb.gmra.mxu3 %vm5245_vm0, %v800_v6 }
 0x452   :  { %2748 = vmatpush.msk.msra.mxu3 %vm5424_vm4, %v5418_v35  ;;  %vm5431_vm4 = vnez %v5430_v29 }
 0x454   :  { %2749 = vmatpush.msk.msra.mxu3 %vm5425_vm10, %v5418_v35  ;;  %vm5433_vm10 = vnez %v5432_v45 }
 0x456   :  { %2750 = vmatpush.msk.msra.mxu3 %vm5427_vm15, %v5418_v35  ;;  %vm5435_vm15 = vnez %v5434_v5 }
 0x458   :  { %2751 = vmatpush.msk.msra.mxu3 %vm5429_vm6, %v5418_v35  ;;  %vm5437_vm6 = vnez %v5436_v12 }
 0x459   :  { %2693 = vmatmul.msk.f32.gmra.mxu3 %vm5245_vm0, %v801_v19 }
 0x45a   :  { %2752 = vmatpush.msk.msra.mxu3 %vm5431_vm4, %v5418_v35  ;;  %vm5439_vm4 = vnez %v5438_v21 }
 0x45c   :  { %2753 = vmatpush.msk.msra.mxu3 %vm5433_vm10, %v5418_v35  ;;  %vm5441_vm10 = vnez %v5440_v24 }
 0x45e   :  { %2754 = vmatpush.msk.msra.mxu3 %vm5435_vm15, %v5418_v35  ;;  %vm5443_vm15 = vnez %v5442_v23 }
 0x460   :  { %2755 = vmatpush.msk.msra.mxu3 %vm5437_vm6, %v5418_v35  ;;  %vm5445_vm6 = vnez %v5444_v2 }
 0x461   :  { %2694 = vmatmul.msk.f32.gmra.mxu3 %vm5245_vm0, %v802_v4  ;;  %v907_v4 = vpop.permute.xlu2 %906 }
 0x462   :  { %2756 = vmatpush.msk.msra.mxu3 %vm5439_vm4, %v5418_v35 }
 0x464   :  { %2757 = vmatpush.msk.msra.mxu3 %vm5441_vm10, %v5418_v35 }
 0x466   :  { %2758 = vmatpush.msk.msra.mxu3 %vm5443_vm15, %v5418_v35  ;;  %vm5449_vm15 = vnez %v5448_v18 }
 0x468   :  { %2759 = vmatpush.msk.msra.mxu3 %vm5445_vm6, %v5418_v35  ;;  %vm5451_vm6 = vnez %v5450_v27 }
 0x469   :  { %2695 = vmatmul.msk.f32.gmra.mxu3 %vm5245_vm0, %v803_v1 }
 0x46a   :  { %2760 = vmatpush.msk.msra.mxu3 %vm5413_vm13, %v5418_v35 }
 0x46c   :  { %2761 = vmatpush.msk.msra.mxu3 %vm5415_vm8, %v5418_v35 }
 0x46e   :  { %2762 = vmatpush.msk.msra.mxu3 %vm5449_vm15, %v5418_v35 }
 0x470   :  { %2763 = vmatpush.msk.msra.mxu3 %vm5451_vm6, %v5418_v35  ;;  %vm5453_vm6 = vcmask 1043456  }
 0x471   :  { %2696 = vmatmul.msk.f32.gmra.mxu3 %vm5245_vm0, %v804_v14 }
 0x479   :  { %2697 = vmatmul.msk.f32.gmra.mxu3 %vm5245_vm0, %v805_v16 }
 0x481   :  { %2698 = vmatmul.msk.f32.gmra.mxu3 %vm5245_vm0, %v806_v34  ;;  %v912_v34 = vpop.permute.xlu0 %911 }
 0x489   :  { %2699 = vmatmul.msk.f32.gmra.mxu3 %vm5245_vm0, %v807_v20 }
 0x491   :  { %2700 = vmatmul.msk.f32.gmra.mxu3 %vm5245_vm0, %v808_v60 }
 0x499   :  { %2701 = vmatmul.msk.f32.gmra.mxu3 %vm5245_vm0, %v809_v50 }
 0x4a1   :  { %2702 = vmatmul.msk.f32.gmra.mxu3 %vm5245_vm0, %v810_v53  ;;  %v917_v53 = vpop.permute.xlu1 %916 }
 0x4a9   :  { %2703 = vmatmul.msk.f32.gmra.mxu3 %vm5245_vm0, %v811_v58 }
 0x4b1   :  { %2704 = vmatmul.msk.f32.gmra.mxu3 %vm5245_vm0, %v812_v10 }
 0x4b9   :  { %2705 = vmatmul.msk.f32.gmra.mxu3 %vm5245_vm0, %v813_v37 }
 0x4c1   :  { %2706 = vmatmul.msk.f32.gmra.mxu3 %vm5245_vm0, %v814_v47  ;;  %v922_v47 = vpop.permute.xlu2 %921 }
 0x4c9   :  { %2707 = vmatmul.msk.f32.gmra.mxu3 %vm5245_vm0, %v815_v43  ;;  %vm5452_vm0 = vcmask 64512  }
 0x4d4   :  { %v1030_v9 = vpop.f32.mrf.mxu3 }
 0x4d5   :  { %v1031_v46 = vadd.f32 %v1030_v9, %v887_v13 }
 0x4d7   :  { %v4319_v54 = vmax.f32 %v1031_v46, 0.0  ;;  %v927_v46 = vpop.permute.xlu0 %926 }
 0x4d9   :  { %1110 = vmatmul.f32.vlgmr.msrb.gmra.mxu0 %v4319_v54  ;;  %1175 = vmatmul.f32.vlgmr.msra.gmra.mxu1 %v4319_v54 }
 0x4dc   :  { %v1033_v62 = vpop.f32.mrf.mxu3 }
 0x4dd   :  { %v1034_v38 = vadd.f32 %v1033_v62, %v892_v55 }
 0x4df   :  { %v4323_v61 = vmax.f32 %v1034_v38, 0.0 }
 0x4e1   :  { %1113 = vmatmul.f32.gmra.mxu0 %v4323_v61  ;;  %1178 = vmatmul.f32.gmra.mxu1 %v4323_v61 }
 0x4e4   :  { %v1036_v33 = vpop.f32.mrf.mxu3 }
 0x4e5   :  { %v1037_v17 = vadd.f32 %v1036_v33, %v897_v44  ;;  %v932_v44 = vpop.permute.xlu1 %931 }
 0x4e7   :  { %v4327_v22 = vmax.f32 %v1037_v17, 0.0 }
 0x4e9   :  { %1116 = vmatmul.f32.gmra.mxu0 %v4327_v22  ;;  %1181 = vmatmul.f32.gmra.mxu1 %v4327_v22 }
 0x4ec   :  { %v1039_v31 = vpop.f32.mrf.mxu3 }
 0x4ed   :  { %v1040_v6 = vadd.f32 %v1039_v31, %v902_v7  ;;  %v937_v31 = vpop.permute.xlu2 %936 }
 0x4ef   :  { %v4331_v19 = vmax.f32 %v1040_v6, 0.0 }
 0x4f1   :  { %1119 = vmatmul.f32.gmra.mxu0 %v4331_v19  ;;  %1184 = vmatmul.f32.gmra.mxu1 %v4331_v19 }
 0x4f4   :  { %v1042_v1 = vpop.f32.mrf.mxu3 }
 0x4f5   :  { %v1043_v14 = vadd.f32 %v1042_v1, %v907_v4 }
 0x4f7   :  { %v4335_v16 = vmax.f32 %v1043_v14, 0.0  ;;  %v942_v14 = vpop.permute.xlu0 %941 }
 0x4f9   :  { %1122 = vmatmul.f32.gmra.mxu0 %v4335_v16  ;;  %1187 = vmatmul.f32.gmra.mxu1 %v4335_v16 }
 0x4fc   :  { %v1045_v20 = vpop.f32.mrf.mxu3 }
 0x4fd   :  { %v1046_v60 = vadd.f32 %v1045_v20, %v912_v34 }
 0x4ff   :  { %v4339_v50 = vmax.f32 %v1046_v60, 0.0 }
 0x501   :  { %1125 = vmatmul.f32.gmra.mxu0 %v4339_v50  ;;  %1190 = vmatmul.f32.gmra.mxu1 %v4339_v50 }
 0x504   :  { %v1048_v58 = vpop.f32.mrf.mxu3 }
 0x505   :  { %v1049_v10 = vadd.f32 %v1048_v58, %v917_v53  ;;  %v947_v53 = vpop.permute.xlu1 %946 }
 0x507   :  { %v4343_v37 = vmax.f32 %v1049_v10, 0.0 }
 0x509   :  { %1128 = vmatmul.f32.gmra.mxu0 %v4343_v37  ;;  %1193 = vmatmul.f32.gmra.mxu1 %v4343_v37 }
 0x50c   :  { %v1051_v43 = vpop.f32.mrf.mxu3 }
 0x50d   :  { %v1052_v13 = vadd.f32 %v1051_v43, %v922_v47  ;;  %v952_v43 = vpop.permute.xlu2 %951 }
 0x50f   :  { %v4347_v9 = vmax.f32 %v1052_v13, 0.0 }
 0x511   :  { %1131 = vmatmul.f32.gmra.mxu0 %v4347_v9  ;;  %1196 = vmatmul.f32.gmra.mxu1 %v4347_v9 }
 0x514   :  { %v1054_v55 = vpop.f32.mrf.mxu3 }
 0x515   :  { %v1055_v62 = vadd.f32 %v1054_v55, %v927_v46 }
 0x517   :  { %v4351_v38 = vmax.f32 %v1055_v62, 0.0  ;;  %v957_v62 = vpop.permute.xlu0 %956 }
 0x519   :  { %1134 = vmatmul.f32.gmra.mxu0 %v4351_v38  ;;  %1199 = vmatmul.f32.gmra.mxu1 %v4351_v38 }
 0x51c   :  { %v1057_v33 = vpop.f32.mrf.mxu3 }
 0x51d   :  { %v1058_v17 = vadd.f32 %v1057_v33, %v932_v44 }
 0x51f   :  { %v4355_v7 = vmax.f32 %v1058_v17, 0.0 }
 0x521   :  { %1137 = vmatmul.f32.gmra.mxu0 %v4355_v7  ;;  %1202 = vmatmul.f32.gmra.mxu1 %v4355_v7 }
 0x524   :  { %v1060_v6 = vpop.f32.mrf.mxu3 }
 0x525   :  { %v1061_v4 = vadd.f32 %v1060_v6, %v937_v31  ;;  %v962_v31 = vpop.permute.xlu1 %961 }
 0x527   :  { %v4359_v1 = vmax.f32 %v1061_v4, 0.0 }
 0x529   :  { %1140 = vmatmul.f32.gmra.mxu0 %v4359_v1  ;;  %1205 = vmatmul.f32.gmra.mxu1 %v4359_v1 }
 0x52c   :  { %v1063_v34 = vpop.f32.mrf.mxu3 }
 0x52d   :  { %v1064_v20 = vadd.f32 %v1063_v34, %v942_v14 }
 0x52f   :  { %v4363_v60 = vmax.f32 %v1064_v20, 0.0 }
 0x531   :  { %1143 = vmatmul.f32.gmra.mxu0 %v4363_v60  ;;  %1208 = vmatmul.f32.gmra.mxu1 %v4363_v60 }
 0x534   :  { %v1066_v58 = vpop.f32.mrf.mxu3 }
 0x535   :  { %v1067_v10 = vadd.f32 %v1066_v58, %v947_v53 }
 0x537   :  { %v4367_v47 = vmax.f32 %v1067_v10, 0.0 }
 0x539   :  { %1146 = vmatmul.f32.gmra.mxu0 %v4367_v47  ;;  %1211 = vmatmul.f32.gmra.mxu1 %v4367_v47 }
 0x53c   :  { %v1069_v13 = vpop.f32.mrf.mxu3 }
 0x53d   :  { %v1070_v46 = vadd.f32 %v1069_v13, %v952_v43 }
 0x53f   :  { %v4371_v55 = vmax.f32 %v1070_v46, 0.0 }
 0x541   :  { %1149 = vmatmul.f32.gmra.mxu0 %v4371_v55  ;;  %1214 = vmatmul.f32.gmra.mxu1 %v4371_v55 }
 0x544   :  { %v1072_v44 = vpop.f32.mrf.mxu3 }
 0x545   :  { %v1073_v33 = vadd.f32 %v1072_v44, %v957_v62 }
 0x547   :  { %v1092_v17 = vmax.f32 %v1073_v33, 0.0 }
 0x549   :  { %1152 = vmatmul.f32.gmra.mxu0 %v1092_v17  ;;  %1217 = vmatmul.f32.gmra.mxu1 %v1092_v17 }
 0x54c   :  { %v1075_v6 = vpop.f32.mrf.mxu3 }
 0x54d   :  { %v1076_v4 = vadd.f32 %v1075_v6, %v962_v31 }
 0x54f   :  { %v1093_v14 = vmax.f32 %v1076_v4, 0.0 }
 0x551   :  { %1155 = vmatmul.f32.gmra.mxu0 %v1093_v14  ;;  %1220 = vmatmul.f32.gmra.mxu1 %v1093_v14 }
 0x556   :  { %v1111_v34 = vpop.f32.mrf.mxu0  ;;  %v4375_v43 = vpop.f32.mrf.mxu1 }
 0x55e   :  { %v1114_v20 = vpop.f32.mrf.mxu0  ;;  %v4377_v46 = vpop.f32.mrf.mxu1 }
 0x566   :  { %v1117_v53 = vpop.f32.mrf.mxu0  ;;  %v4379_v44 = vpop.f32.mrf.mxu1 }
 0x56e   :  { %v1120_v58 = vpop.f32.mrf.mxu0  ;;  %v4381_v26 = vpop.f32.mrf.mxu1 }
 0x576   :  { %v1123_v10 = vpop.f32.mrf.mxu0  ;;  %v4383_v4 = vpop.f32.mrf.mxu1 }
 0x57e   :  { %v1126_v13 = vpop.f32.mrf.mxu0  ;;  %v1191_v18 = vpop.f32.mrf.mxu1 }
 0x586   :  { %v1129_v62 = vpop.f32.mrf.mxu0  ;;  %v1194_v30 = vpop.f32.mrf.mxu1 }
 0x58e   :  { %v1132_v33 = vpop.f32.mrf.mxu0  ;;  %v1197_v23 = vpop.f32.mrf.mxu1 }
 0x596   :  { %v1135_v31 = vpop.f32.mrf.mxu0  ;;  %v1200_v12 = vpop.f32.mrf.mxu1 }
 0x59e   :  { %v1138_v6 = vpop.f32.mrf.mxu0  ;;  %v1203_v45 = vpop.f32.mrf.mxu1 }
 0x5a6   :  { %v1141_v27 = vpop.f32.mrf.mxu0  ;;  %v1206_v29 = vpop.f32.mrf.mxu1 }
 0x5ae   :  { %v1144_v8 = vpop.f32.mrf.mxu0  ;;  %v1209_v15 = vpop.f32.mrf.mxu1 }
 0x5b6   :  { %v1147_v2 = vpop.f32.mrf.mxu0 }
 0x5be   :  { %v1150_v24 = vpop.f32.mrf.mxu0 }
 0x5c6   :  { %v1153_v21 = vpop.f32.mrf.mxu0 }
 0x5ce   :  { %v1156_v5 = vpop.f32.mrf.mxu0 }
 0x5cf   :  { %1229 = vmatpush.msra.mxu2 %v1156_v5  ;;  %v832_v5 = vld [vmem:[%s5120_s11] sm:$0xff] }
 0x5d1   :  { %1230 = vmatpush.msra.mxu2 %v1153_v21  ;;  %v1212_v21 = vpop.f32.mrf.mxu1 }
 0x5d3   :  { %1231 = vmatpush.msra.mxu2 %v1150_v24 }
 0x5d5   :  { %1232 = vmatpush.msra.mxu2 %v1147_v2 }
 0x5d7   :  { %1233 = vmatpush.msra.mxu2 %v1144_v8  ;;  %v833_v8 = vld [vmem:[%s5120_s11 + $0x8] sm:$0xff] }
 0x5d9   :  { %1234 = vmatpush.msra.mxu2 %v1141_v27  ;;  %v1215_v24 = vpop.f32.mrf.mxu1 }
 0x5db   :  { %1235 = vmatpush.msra.mxu2 %v1138_v6 }
 0x5dd   :  { %1236 = vmatpush.msra.mxu2 %v1135_v31  ;;  %v5480_v31 = vld [vmem:[#allocation19_spill] sm:$0xff] }
 0x5df   :  { %1237 = vmatpush.msra.mxu2 %v1132_v33  ;;  %v5478_v33 = vld [vmem:[#allocation16_spill] sm:$0xff] }
 0x5e1   :  { %1238 = vmatpush.msra.mxu2 %v1129_v62  ;;  %v1218_v2 = vpop.f32.mrf.mxu1 }
 0x5e3   :  { %1239 = vmatpush.msra.mxu2 %v1126_v13 }
 0x5e5   :  { %1240 = vmatpush.msra.mxu2 %v1123_v10  ;;  %v5472_v10 = vld [vmem:[#allocation9_spill] sm:$0xff] }
 0x5e7   :  { %1241 = vmatpush.msra.mxu2 %v1120_v58  ;;  %v5470_v58 = vld [vmem:[#allocation8_spill] sm:$0xff] }
 0x5e9   :  { %1242 = vmatpush.msra.mxu2 %v1117_v53  ;;  %v1221_v27 = vpop.f32.mrf.mxu1  ;;  %v5468_v53 = vld [vmem:[#allocation7_spill] sm:$0xff] }
 0x5eb   :  { %1243 = vmatpush.msra.mxu2 %v1114_v20  ;;  %v5466_v20 = vld [vmem:[#allocation6_spill] sm:$0xff] }
 0x5ed   :  { %1244 = vmatpush.msra.mxu2 %v1111_v34 }
 0x5ee   :  { %1245 = vmatmul.f32.vlgmr.msra.gmra.mxu2 %v832_v5 }
 0x5ef   :  { %1249 = vmatpush.msrb.mxu2 %v1093_v14 }
 0x5f1   :  { %1250 = vmatpush.msrb.mxu2 %v1092_v17  ;;  %v1354_v17 = vld [vmem:[%s5267_s19 + $0x20] sm:$0xff] }
 0x5f3   :  { %1251 = vmatpush.msrb.mxu2 %v4371_v55 }
 0x5f5   :  { %1252 = vmatpush.msrb.mxu2 %v4367_v47 }
 0x5f7   :  { %1253 = vmatpush.msrb.mxu2 %v4363_v60  ;;  %v1353_v60 = vld [vmem:[%s5267_s19 + $0x18] sm:$0xff] }
 0x5f9   :  { %1254 = vmatpush.msrb.mxu2 %v4359_v1  ;;  %v1352_v1 = vld [vmem:[%s5267_s19 + $0x10] sm:$0xff] }
 0x5fb   :  { %1255 = vmatpush.msrb.mxu2 %v4355_v7 }
 0x5fd   :  { %1256 = vmatpush.msrb.mxu2 %v4351_v38 }
 0x5ff   :  { %1257 = vmatpush.msrb.mxu2 %v4347_v9  ;;  %v1351_v9 = vld [vmem:[%s5267_s19 + $0x8] sm:$0xff] }
 0x601   :  { %1258 = vmatpush.msrb.mxu2 %v4343_v37 }
 0x603   :  { %1259 = vmatpush.msrb.mxu2 %v4339_v50 }
 0x605   :  { %1260 = vmatpush.msrb.mxu2 %v4335_v16  ;;  %v1350_v16 = vld [vmem:[%s5267_s19] sm:$0xff] }
 0x607   :  { %1261 = vmatpush.msrb.mxu2 %v4331_v19  ;;  %v4422_v19 = vpop.permute.xlu0 %1364 }
 0x609   :  { %1262 = vmatpush.msrb.mxu2 %v4327_v22  ;;  %v4419_v22 = vpop.permute.xlu1 %1369 }
 0x60b   :  { %1263 = vmatpush.msrb.mxu2 %v4323_v61  ;;  %v2741_v61 = vld [vmem:[%s5266_s26 + $0x4] sm:$0xf] }
 0x60d   :  { %1264 = vmatpush.msrb.mxu2 %v4319_v54  ;;  %v834_v54 = vld [vmem:[%s5120_s11 + $0x10] sm:$0xff] }
 0x60e   :  { %1265 = vmatmul.f32.vlgmr.msrb.gmra.mxu2 %v833_v8 }
 0x60f   :  { %1269 = vmatpush.msra.mxu2 %v1221_v27  ;;  %v4443_v37 = vpop.permute.xlu0 %1529 }
 0x611   :  { %1270 = vmatpush.msra.mxu2 %v1218_v2  ;;  %v4441_v50 = vpop.permute.xlu1 %1534  ;;  %v5485_v2 = vld [vmem:[#allocation26_spill] sm:$0xff] }
 0x613   :  { %1271 = vmatpush.msra.mxu2 %v1215_v24 }
 0x615   :  { %1272 = vmatpush.msra.mxu2 %v1212_v21 }
 0x617   :  { %1273 = vmatpush.msra.mxu2 %v1209_v15  ;;  %v4466_v7 = vpop.permute.xlu0 %1544 }
 0x619   :  { %1274 = vmatpush.msra.mxu2 %v1206_v29  ;;  %v4464_v38 = vpop.permute.xlu1 %1549 }
 0x61b   :  { %1275 = vmatpush.msra.mxu2 %v1203_v45  ;;  %v1227_v45 = vpop.permute.xlu2 %1226 }
 0x61d   :  { %1276 = vmatpush.msra.mxu2 %v1200_v12 }
 0x61f   :  { %1277 = vmatpush.msra.mxu2 %v1197_v23  ;;  %v4492_v55 = vpop.permute.xlu0 %1559 }
 0x621   :  { %1278 = vmatpush.msra.mxu2 %v1194_v30  ;;  %v4490_v47 = vpop.permute.xlu1 %1564 }
 0x623   :  { %1279 = vmatpush.msra.mxu2 %v1191_v18 }
 0x625   :  { %1280 = vmatpush.msra.mxu2 %v4383_v4 }
 0x627   :  { %1281 = vmatpush.msra.mxu2 %v4381_v26  ;;  %v836_v26 = vld [vmem:[%s5122_s13] sm:$0x7]  ;;  %v4516_v34 = vpop.permute.xlu0 %1574 }
 0x629   :  { %1282 = vmatpush.msra.mxu2 %v4379_v44  ;;  %v4513_v14 = vpop.permute.xlu1 %1579 }
 0x62b   :  { %1283 = vmatpush.msra.mxu2 %v4377_v46 }
 0x62d   :  { %1284 = vmatpush.msra.mxu2 %v4375_v43  ;;  %v5474_v43 = vld [vmem:[#allocation11_spill] sm:$0xff] }
 0x62e   :  { %1285 = vmatmul.f32.vlgmr.msra.gmra.mxu2 %v834_v54 }
 0x62f   :  { %v4535_v46 = vpop.permute.xlu0 %1589 }
 0x631   :  { %v4533_v13 = vpop.permute.xlu1 %1594 }
 0x637   :  { %v4554_v5 = vpop.permute.xlu0 %1604 }
 0x639   :  { %v4552_v4 = vpop.permute.xlu1 %1379 }
 0x63f   :  { %v4567_v27 = vpop.permute.xlu0 %1384 }
 0x641   :  { %v4565_v8 = vpop.permute.xlu1 %2045 }
 0x642   :  { %5487 = vst [vmem:[#allocation5_spill] sm:$0xff] %v4565_v8 }
 0x649   :  { %v4569_v54 = vpop.permute.xlu1 %2060 }
 0x64a   :  { %5488 = vst [vmem:[#allocation6_spill] sm:$0xff] %v4569_v54 }
 0x671   :  { %v1246_v15 = vpop.f32.mrf.mxu2 }
 0x672   :  { %v1247_v12 = vadd.f32 %v1246_v15, %v1227_v45  ;;  %v4571_v15 = vpop.permute.xlu0 %2055 }
 0x673   :  { %5489 = vst [vmem:[#allocation7_spill] sm:$0xff] %v4571_v15 }
 0x67a   :  { %v4575_v45 = vpop.permute.xlu0 %2070 }
 0x67b   :  { %5491 = vst [vmem:[#allocation9_spill] sm:$0xff] %v4575_v45 }
 0x691   :  { %v1266_v29 = vpop.f32.mrf.mxu2 }
 0x692   :  { %v1267_v23 = vadd.f32 %v1266_v29, %v1247_v12  ;;  %v4573_v29 = vpop.permute.xlu1 %2075 }
 0x693   :  { %5490 = vst [vmem:[#allocation8_spill] sm:$0xff] %v4573_v29 }
 0x69a   :  { %v4577_v12 = vpop.permute.xlu1 %2090 }
 0x69b   :  { %5492 = vst [vmem:[#allocation11_spill] sm:$0xff] %v4577_v12 }
 0x6b1   :  { %v1286_v30 = vpop.f32.mrf.mxu2 }
 0x6b2   :  { %v1287_v18 = vadd.f32 %v1286_v30, %v1267_v23  ;;  %v4579_v23 = vpop.permute.xlu0 %2085  ;;  %v4581_v30 = vpop.permute.xlu1 %2105 }
 0x6b3   :  { %5493 = vst [vmem:[#allocation13_spill] sm:$0xff] %v4579_v23 }
 0x6b4   :  { %1312 = vmatpush.msrb.mxu2 %v1287_v18  ;;  %5494 = vst [vmem:[#allocation14_spill] sm:$0xff] %v4581_v30 }
 0x6b5   :  { %2740 = vmatmul.msk.f32.vlgmr.msrb.gmra.mxu2 %vm5452_vm0, %v836_v26  ;;  %vm5454_vm0 = vcmask 31744  }
 0x6b6   :  { %2742 = vmatpush.msk.msra.mxu2 %vm5453_vm6, %v2741_v61  ;;  %vm5455_vm6 = vnez %v5300_v63 }
 0x6b8   :  { %2812 = vmatpush.msk.msrb.mxu2 %vm5398_vm5, %v5418_v35 }
 0x6ba   :  { %2813 = vmatpush.msk.msrb.mxu2 %vm5399_vm1, %v5418_v35  ;;  %v4583_v18 = vpop.permute.xlu0 %2100  ;;  %v4585_v26 = vpop.permute.xlu1 %2120 }
 0x6bb   :  { %5495 = vst [vmem:[#allocation29_spill] sm:$0xff] %v4583_v18 }
 0x6bc   :  { %2814 = vmatpush.msk.msrb.mxu2 %vm5400_vm14, %v5418_v35  ;;  %5496 = vst [vmem:[#allocation30_spill] sm:$0xff] %v4585_v26 }
 0x6bd   :  { %2743 = vmatmul.msk.f32.vlgmr.msra.gmra.mxu2 %vm5454_vm0, %v1350_v16 }
 0x6be   :  { %2815 = vmatpush.msk.msrb.mxu2 %vm5401_vm11, %v5418_v35  ;;  %vm5456_vm11 = vnez %v5302_v3 }
 0x6c0   :  { %2816 = vmatpush.msk.msrb.mxu2 %vm5419_vm12, %v5418_v35 }
 0x6c2   :  { %2817 = vmatpush.msk.msrb.mxu2 %vm5403_vm7, %v5418_v35  ;;  %v4587_v61 = vpop.permute.xlu0 %2115  ;;  %v1292_v16 = vpop.permute.xlu1 %1291 }
 0x6c3   :  { %5497 = vst [vmem:[#allocation31_spill] sm:$0xff] %v4587_v61 }
 0x6c4   :  { %2818 = vmatpush.msk.msrb.mxu2 %vm5455_vm6, %v5418_v35 }
 0x6c5   :  { %2744 = vmatmul.msk.f32.gmra.mxu2 %vm5454_vm0, %v1351_v9 }
 0x6c6   :  { %2819 = vmatpush.msk.msrb.mxu2 %vm5456_vm11, %v5418_v35  ;;  %vm5458_vm11 = vnez %v5332_v25 }
 0x6c8   :  { %2820 = vmatpush.msk.msrb.mxu2 %vm5407_vm2, %v5418_v35  ;;  %vm5457_vm2 = vnez %v5326_v56 }
 0x6ca   :  { %2821 = vmatpush.msk.msrb.mxu2 %vm5408_vm3, %v5418_v35  ;;  %vm5459_vm3 = vnez %v5341_v52  ;;  %v774_v9 = vpop.permute.xlu0 %773 }
 0x6cc   :  { %2822 = vmatpush.msk.msrb.mxu2 %vm5409_vm9, %v5418_v35  ;;  %vm5463_vm9 = vnez %v5271_v36 }
 0x6cd   :  { %2745 = vmatmul.msk.f32.gmra.mxu2 %vm5454_vm0, %v1352_v1  ;;  %vm5460_vm0 = vnez %v5347_v0 }
 0x6ce   :  { %2823 = vmatpush.msk.msrb.mxu2 %vm5457_vm2, %v5418_v35  ;;  %vm5461_vm2 = vcmask 31744  }
 0x6d0   :  { %2824 = vmatpush.msk.msrb.mxu2 %vm5458_vm11, %v5418_v35  ;;  %vm5462_vm11 = vnez %v5353_v57 }
 0x6d2   :  { %2825 = vmatpush.msk.msrb.mxu2 %vm5459_vm3, %v5418_v35  ;;  %vm5464_vm3 = vnez %v5273_v39 }
 0x6d4   :  { %2826 = vmatpush.msk.msrb.mxu2 %vm5460_vm0, %v5418_v35  ;;  %vm5465_vm0 = vnez %v5426_v11 }
 0x6d5   :  { %2746 = vmatmul.msk.f32.gmra.mxu2 %vm5461_vm2, %v1353_v60  ;;  %v5498_v60 = vld [vmem:[#allocation28_spill] sm:$0xff] }
 0x6d6   :  { %2827 = vmatpush.msk.msrb.mxu2 %vm5462_vm11, %v5418_v35  ;;  %vm5471_vm11 = vnez %v5470_v58 }
 0x6d8   :  { %2877 = vmatpush.msk.msra.mxu2 %vm5463_vm9, %v5418_v35  ;;  %vm5467_vm9 = vnez %v5466_v20  ;;  %v5576_v20 = vld [vmem:[#allocation13_spill] sm:$0xff] }
 0x6da   :  { %2878 = vmatpush.msk.msra.mxu2 %vm5464_vm3, %v5418_v35  ;;  %vm5469_vm3 = vnez %v5468_v53  ;;  %v5530_v53 = vld [vmem:[#allocation24_spill] sm:$0xff] }
 0x6dc   :  { %2879 = vmatpush.msk.msra.mxu2 %vm5465_vm0, %v5418_v35  ;;  %vm5473_vm0 = vnez %v5472_v10 }
 0x6dd   :  { %2747 = vmatmul.msk.f32.gmra.mxu2 %vm5461_vm2, %v1354_v17  ;;  %vm5475_vm2 = vnez %v5474_v43  ;;  %v798_v17 = vadd.f32 %v5498_v60, %v774_v9 }
 0x6de   :  { %2880 = vmatpush.msk.msra.mxu2 %vm5467_vm9, %v5418_v35 }
 0x6e0   :  { %2881 = vmatpush.msk.msra.mxu2 %vm5469_vm3, %v5418_v35 }
 0x6e2   :  { %2882 = vmatpush.msk.msra.mxu2 %vm5471_vm11, %v5418_v35  ;;  %vm5479_vm11 = vnez %v5478_v33 }
 0x6e4   :  { %2883 = vmatpush.msk.msra.mxu2 %vm5473_vm0, %v5418_v35  ;;  %vm5481_vm0 = vnez %v5480_v31 }
 0x6e6   :  { %2884 = vmatpush.msk.msra.mxu2 %vm5475_vm2, %v5418_v35 }
 0x6e8   :  { %2885 = vmatpush.msk.msra.mxu2 %vm5439_vm4, %v5418_v35 }
 0x6ea   :  { %2886 = vmatpush.msk.msra.mxu2 %vm5441_vm10, %v5418_v35 }
 0x6ec   :  { %2887 = vmatpush.msk.msra.mxu2 %vm5479_vm11, %v5418_v35  ;;  %vm5486_vm11 = vnez %v5485_v2 }
 0x6ee   :  { %2888 = vmatpush.msk.msra.mxu2 %vm5481_vm0, %v5418_v35 }
 0x6f0   :  { %2889 = vmatpush.msk.msra.mxu2 %vm5413_vm13, %v5418_v35 }
 0x6f2   :  { %2890 = vmatpush.msk.msra.mxu2 %vm5415_vm8, %v5418_v35 }
 0x6f4   :  { %2891 = vmatpush.msk.msra.mxu2 %vm5449_vm15, %v5418_v35  ;;  %vm5251_vm15 = vcmask 1042432  }
 0x6f6   :  { %2892 = vmatpush.msk.msra.mxu2 %vm5486_vm11, %v5418_v35 }
 0x738   :  { %v1314_v1 = vpop.f32.mrf.mxu2 }
 0x739   :  { %v1315_v29 = vadd.f32 %v1314_v1, %v1292_v16  ;;  %v1320_v16 = vld [vmem:[%s5124_s15] sm:$0x7] }
 0x73b   :  { %v1317_v54 = vadd.f32 %v1315_v29, %v798_v17 }
 0x73d   :  { %v1318_v45 = vmul.f32 0.5, %v1317_v54 }
 0x73f   :  { %1319 = vst [vmem:[%s5125_s16] sm:$0x7] %v1318_v45  ;;  %v1324_v12 = vand.u32 2147483647, %v1318_v45  ;;  %v1322_v60 = vmul.f32 %v1320_v16, %v1318_v45 }
 0x740   :  { %v1422_v30 = vpop.f32.mrf.mxu2 }
 0x741   :  { %v1325_v23 = vsub.f32 0.0, %v1324_v12  ;;  %v1423_v18 = vadd.f32 %v1422_v30, %v4422_v19  ;;  %v1375_v12 = vpop.permute.xlu2 %1374  ;;  %v1321_v30 = vmax.f32 %v1318_v45, 0.0 }
 0x743   :  { %v1326_v26 = vmul.f32 1.442695, %v1325_v23  ;;  %1491 = vmatmul.f32.vlgmr.msra.gmra.mxu3 %v1423_v18  ;;  %1517 = vmatmul.f32.vlgmr.msra.gmra.mxu0 %v1423_v18  ;;  %v1323_v8 = vsub.f32 %v1321_v30, %v1322_v60  ;;  %v1445_v30 = vld [vmem:[%s5112_s3 + $0x40] sm:$0xff]  ;;  %v1446_v60 = vld [vmem:[%s5112_s3 + $0x48] sm:$0xff] }
 0x745   :  { %2925 = vpow2.f32 %v1326_v26 }
 0x748   :  { %v1425_v61 = vpop.f32.mrf.mxu2 }
 0x749   :  { %v1426_v15 = vadd.f32 %v1425_v61, %v4419_v22 }
 0x74b   :  { %v2926_v9 = vpop.eup %2925  ;;  %1494 = vmatmul.f32.gmra.mxu3 %v1426_v15  ;;  %1520 = vmatmul.f32.gmra.mxu0 %v1426_v15 }
 0x74c   :  { %v1328_v54 = vadd.f32 1.0, %v2926_v9  ;;  %v1331_v29 = vmul.f32 -0.5, %v2926_v9  ;;  %v1334_v26 = vand.u32 2147483647, %v2926_v9 }
 0x74e   :  { %2927 = vlog2.f32 %v1328_v54  ;;  %v1332_v23 = vadd.f32 1.0, %v1331_v29  ;;  %vm1335_vm11 = vcmp.lt.f32.partialorder %v1334_v26, 0.0004427343  ;;  %v1447_v26 = vld [vmem:[%s5112_s3 + $0x50] sm:$0xff] }
 0x750   :  { %v1428_v1 = vpop.f32.mrf.mxu2  ;;  %v1333_v17 = vmul.f32 %v2926_v9, %v1332_v23 }
 0x751   :  { %v1429_v19 = vadd.f32 %v1428_v1, %v1375_v12 }
 0x753   :  { %1497 = vmatmul.f32.gmra.mxu3 %v1429_v19  ;;  %1523 = vmatmul.f32.gmra.mxu0 %v1429_v19 }
 0x754   :  { %v2928_v22 = vpop.eup %2927 }
 0x755   :  { %v1330_v61 = vmul.f32 0.6931472, %v2928_v22  ;;  %v1448_v22 = vld [vmem:[%s5112_s3 + $0x58] sm:$0xff] }
 0x757   :  { %v1336_v2 = vsel %vm1335_vm11, %v1333_v17, %v1330_v61  ;;  %vm5499_vm11 = vcmask 588800   ;;  %v1449_v61 = vld [vmem:[%s5112_s3 + $0x60] sm:$0xff]  ;;  %v1450_v17 = vld [vmem:[%s5112_s3 + $0x68] sm:$0xff] }
 0x758   :  { %v1337_v54 = vadd.f32 %v1336_v2, %v1323_v8  ;;  %v1437_v8 = vld [vmem:[%s5112_s3] sm:$0xff] }
 0x75a   :  { %v1339_v24 = vsel %vm5251_vm15, %v1337_v54, 0.0  ;;  %vm5500_vm15 = vnez %v5282_v48  ;;  %v1451_v54 = vld [vmem:[%s5112_s3 + $0x70] sm:$0xff] }
 0x75b   :  { %1340 = vadd.xlane.f32.xlu1 %v1339_v24 }
 0x7c0   :  { %v1518_v21 = vpop.f32.mrf.mxu0 }
 0x7c6   :  { %v1492_v6 = vpop.f32.mrf.mxu3 }
 0x7c8   :  { %v1521_v12 = vpop.f32.mrf.mxu0 }
 0x7ce   :  { %v1341_v29 = vpop.xlane.xlu1 %1340  ;;  %v1495_v31 = vpop.f32.mrf.mxu3 }
 0x7cf   :  { %v1342_v1 = vrot.slane %v1341_v29, 4 }
 0x7d0   :  { %v1524_v45 = vpop.f32.mrf.mxu0 }
 0x7d1   :  { %v1343_v16 = vadd.f32 %v1342_v1, %v1341_v29  ;;  %1662 = vmatpush.msrb.mxu3 %v1524_v45  ;;  %v1431_v29 = vpop.f32.mrf.mxu2 }
 0x7d2   :  { %v4712_v1 = vadd.f32 %v1431_v29, %v4552_v4 }
 0x7d3   :  { %v1344_v33 = vrot.slane %v1343_v16, 2  ;;  %1663 = vmatpush.msrb.mxu3 %v1521_v12  ;;  %v1452_v12 = vld [vmem:[%s5112_s3 + $0x78] sm:$0xff] }
 0x7d5   :  { %1664 = vmatpush.msrb.mxu3 %v1518_v21  ;;  %v1345_v9 = vadd.f32 %v1344_v33, %v1343_v16  ;;  %v1438_v33 = vld [vmem:[%s5112_s3 + $0x8] sm:$0xff]  ;;  %v1441_v21 = vld [vmem:[%s5112_s3 + $0x20] sm:$0xff] }
 0x7d6   :  { %v1498_v24 = vpop.f32.mrf.mxu3 }
 0x7d7   :  { %1665 = vmatpush.msrb.mxu3 %v1429_v19  ;;  %v1346_v23 = vrot.slane %v1345_v9, 1  ;;  %v1444_v19 = vld [vmem:[%s5112_s3 + $0x38] sm:$0xff] }
 0x7d9   :  { %1666 = vmatpush.msrb.mxu3 %v1426_v15  ;;  %v1347_v2 = vadd.f32 %v1346_v23, %v1345_v9  ;;  %v1442_v15 = vld [vmem:[%s5112_s3 + $0x28] sm:$0xff]  ;;  %v1434_v16 = vpop.f32.mrf.mxu2 }
 0x7db   :  { %2912 = vpush %v1347_v2  ;;  %1667 = vmatpush.msrb.mxu3 %v1423_v18  ;;  %v1443_v18 = vld [vmem:[%s5112_s3 + $0x30] sm:$0xff]  ;;  %v4719_v2 = vadd.f32 %v1434_v16, %v4567_v27 }
 0x7dd   :  { %1668 = vmatpush.msrb.mxu3 %v1498_v24 }
 0x7df   :  { %1669 = vmatpush.msrb.mxu3 %v1495_v31  ;;  %v1439_v31 = vld [vmem:[%s5112_s3 + $0x10] sm:$0xff] }
 0x7e1   :  { %1670 = vmatpush.msrb.mxu3 %v1492_v6  ;;  %v1440_v6 = vld [vmem:[%s5112_s3 + $0x18] sm:$0xff] }
 0x7e2   :  { %2780 = vmatmul.msk.f32.vlgmr.msrb.gmra.mxu3 %vm5499_vm11, %v1437_v8 }
 0x7e3   :  { %2845 = vmatpush.msk.msra.mxu3 %vm5398_vm5, %v5418_v35 }
 0x7e5   :  { %2846 = vmatpush.msk.msra.mxu3 %vm5399_vm1, %v5418_v35 }
 0x7e7   :  { %2847 = vmatpush.msk.msra.mxu3 %vm5400_vm14, %v5418_v35 }
 0x7e9   :  { %2848 = vmatpush.msk.msra.mxu3 %vm5500_vm15, %v5418_v35  ;;  %vm5501_vm15 = vnez %v5302_v3 }
 0x7ea   :  { %2781 = vmatmul.msk.f32.gmra.mxu3 %vm5499_vm11, %v1438_v33 }
 0x7eb   :  { %2849 = vmatpush.msk.msra.mxu3 %vm5419_vm12, %v5418_v35  ;;  %vm5502_vm12 = vnez %v5308_v28 }
 0x7ed   :  { %2850 = vmatpush.msk.msra.mxu3 %vm5403_vm7, %v5418_v35  ;;  %vm5503_vm7 = vnez %v5317_v41 }
 0x7ef   :  { %2851 = vmatpush.msk.msra.mxu3 %vm5455_vm6, %v5418_v35  ;;  %vm5504_vm6 = vnez %v5323_v49 }
 0x7f1   :  { %2852 = vmatpush.msk.msra.mxu3 %vm5501_vm15, %v5418_v35  ;;  %vm5505_vm15 = vnez %v5326_v56 }
 0x7f2   :  { %2782 = vmatmul.msk.f32.gmra.mxu3 %vm5499_vm11, %v1439_v31 }
 0x7f3   :  { %2853 = vmatpush.msk.msra.mxu3 %vm5502_vm12, %v5418_v35  ;;  %vm5506_vm12 = vnez %v5332_v25 }
 0x7f5   :  { %2854 = vmatpush.msk.msra.mxu3 %vm5503_vm7, %v5418_v35  ;;  %vm5507_vm7 = vnez %v5341_v52 }
 0x7f7   :  { %2855 = vmatpush.msk.msra.mxu3 %vm5504_vm6, %v5418_v35  ;;  %vm5508_vm6 = vnez %v5347_v0 }
 0x7f9   :  { %2856 = vmatpush.msk.msra.mxu3 %vm5505_vm15, %v5418_v35  ;;  %vm5509_vm15 = vnez %v5353_v57 }
 0x7fa   :  { %2783 = vmatmul.msk.f32.gmra.mxu3 %vm5499_vm11, %v1440_v6 }
 0x7fb   :  { %2857 = vmatpush.msk.msra.mxu3 %vm5506_vm12, %v5418_v35  ;;  %vm5510_vm12 = vmmov %vm5499_vm11 }
 0x7fd   :  { %2858 = vmatpush.msk.msra.mxu3 %vm5507_vm7, %v5418_v35  ;;  %vm5511_vm7 = vmmov %vm5499_vm11 }
 0x7ff   :  { %2859 = vmatpush.msk.msra.mxu3 %vm5508_vm6, %v5418_v35  ;;  %vm5512_vm6 = vmmov %vm5511_vm7 }
 0x801   :  { %2860 = vmatpush.msk.msra.mxu3 %vm5509_vm15, %v5418_v35 }
 0x802   :  { %2784 = vmatmul.msk.f32.gmra.mxu3 %vm5499_vm11, %v1441_v21  ;;  %vm5513_vm11 = vmmov %vm5512_vm6 }
 0x80a   :  { %2785 = vmatmul.msk.f32.gmra.mxu3 %vm5510_vm12, %v1442_v15  ;;  %vm5514_vm12 = vmmov %vm5512_vm6 }
 0x812   :  { %2786 = vmatmul.msk.f32.gmra.mxu3 %vm5511_vm7, %v1443_v18  ;;  %vm5515_vm7 = vmmov %vm5512_vm6 }
 0x81a   :  { %2787 = vmatmul.msk.f32.gmra.mxu3 %vm5512_vm6, %v1444_v19 }
 0x822   :  { %2788 = vmatmul.msk.f32.gmra.mxu3 %vm5513_vm11, %v1445_v30  ;;  %vm5516_vm11 = vmmov %vm5512_vm6 }
 0x82a   :  { %2789 = vmatmul.msk.f32.gmra.mxu3 %vm5514_vm12, %v1446_v60  ;;  %vm5517_vm12 = vmmov %vm5512_vm6 }
 0x832   :  { %2790 = vmatmul.msk.f32.gmra.mxu3 %vm5515_vm7, %v1447_v26  ;;  %vm5518_vm7 = vmmov %vm5512_vm6 }
 0x83a   :  { %2791 = vmatmul.msk.f32.gmra.mxu3 %vm5512_vm6, %v1448_v22 }
 0x842   :  { %2792 = vmatmul.msk.f32.gmra.mxu3 %vm5516_vm11, %v1449_v61  ;;  %vm5519_vm11 = vcmask 64512  }
 0x84a   :  { %2793 = vmatmul.msk.f32.gmra.mxu3 %vm5517_vm12, %v1450_v17  ;;  %vm5520_vm12 = vnez %v5271_v36  ;;  %v5525_v36 = vld [vmem:[#allocation16_spill] sm:$0xff] }
 0x852   :  { %2794 = vmatmul.msk.f32.gmra.mxu3 %vm5518_vm7, %v1451_v54  ;;  %vm5521_vm7 = vnez %v5273_v39 }
 0x85a   :  { %2795 = vmatmul.msk.f32.gmra.mxu3 %vm5512_vm6, %v1452_v12  ;;  %vm5522_vm6 = vnez %v5426_v11 }
 0x862   :  { %2036 = vmatmul.f32.vlgmr.msra.gmra.mxu3 %v4712_v1 }
 0x865   :  { %v1672_v45 = vpop.f32.mrf.mxu3 }
 0x866   :  { %v1673_v9 = vadd.f32 %v1672_v45, %v4443_v37  ;;  %v1540_v37 = vpop.permute.xlu2 %1539 }
 0x868   :  { %v4716_v23 = vmax.f32 %v1673_v9, 0.0 }
 0x86a   :  { %1752 = vmatmul.f32.vlgmr.msrb.gmra.mxu1 %v4716_v23  ;;  %1817 = vmatmul.f32.vlgmr.msrb.gmra.mxu2 %v4716_v23 }
 0x86b   :  { %2039 = vmatmul.f32.gmra.mxu3 %v4719_v2 }
 0x86d   :  { %v1675_v24 = vpop.f32.mrf.mxu3 }
 0x86e   :  { %v1676_v4 = vadd.f32 %v1675_v24, %v4441_v50  ;;  %v1555_v30 = vpop.permute.xlu2 %1554 }
 0x870   :  { %v4725_v8 = vmax.f32 %v1676_v4, 0.0 }
 0x872   :  { %1755 = vmatmul.f32.gmra.mxu1 %v4725_v8  ;;  %1820 = vmatmul.f32.gmra.mxu2 %v4725_v8 }
 0x875   :  { %v1678_v33 = vpop.f32.mrf.mxu3 }
 0x876   :  { %v1679_v31 = vadd.f32 %v1678_v33, %v1540_v37  ;;  %v1570_v29 = vpop.permute.xlu2 %1569 }
 0x878   :  { %v4729_v27 = vmax.f32 %v1679_v31, 0.0 }
 0x87a   :  { %1758 = vmatmul.f32.gmra.mxu1 %v4729_v27  ;;  %1823 = vmatmul.f32.gmra.mxu2 %v4729_v27 }
 0x87d   :  { %v1681_v6 = vpop.f32.mrf.mxu3 }
 0x87e   :  { %v1682_v21 = vadd.f32 %v1681_v6, %v4466_v7  ;;  %v1585_v31 = vpop.permute.xlu2 %1584 }
 0x880   :  { %v4734_v15 = vmax.f32 %v1682_v21, 0.0 }
 0x882   :  { %1761 = vmatmul.f32.gmra.mxu1 %v4734_v15  ;;  %1826 = vmatmul.f32.gmra.mxu2 %v4734_v15 }
 0x885   :  { %v1684_v50 = vpop.f32.mrf.mxu3 }
 0x886   :  { %v1685_v18 = vadd.f32 %v1684_v50, %v4464_v38 }
 0x888   :  { %v4739_v19 = vmax.f32 %v1685_v18, 0.0 }
 0x88a   :  { %1764 = vmatmul.f32.gmra.mxu1 %v4739_v19  ;;  %1829 = vmatmul.f32.gmra.mxu2 %v4739_v19 }
 0x88d   :  { %v1687_v60 = vpop.f32.mrf.mxu3 }
 0x88e   :  { %v1688_v26 = vadd.f32 %v1687_v60, %v1555_v30 }
 0x890   :  { %v4743_v22 = vmax.f32 %v1688_v26, 0.0 }
 0x892   :  { %1767 = vmatmul.f32.gmra.mxu1 %v4743_v22  ;;  %1832 = vmatmul.f32.gmra.mxu2 %v4743_v22 }
 0x895   :  { %v1690_v7 = vpop.f32.mrf.mxu3 }
 0x896   :  { %v1691_v61 = vadd.f32 %v1690_v7, %v4492_v55  ;;  %v1600_v7 = vpop.permute.xlu2 %1599 }
 0x898   :  { %v4748_v17 = vmax.f32 %v1691_v61, 0.0 }
 0x89a   :  { %1770 = vmatmul.f32.gmra.mxu1 %v4748_v17  ;;  %1835 = vmatmul.f32.gmra.mxu2 %v4748_v17 }
 0x89d   :  { %v1693_v38 = vpop.f32.mrf.mxu3 }
 0x89e   :  { %v1694_v54 = vadd.f32 %v1693_v38, %v4490_v47 }
 0x8a0   :  { %v4753_v12 = vmax.f32 %v1694_v54, 0.0 }
 0x8a2   :  { %1773 = vmatmul.f32.gmra.mxu1 %v4753_v12  ;;  %1838 = vmatmul.f32.gmra.mxu2 %v4753_v12 }
 0x8a5   :  { %v1696_v45 = vpop.f32.mrf.mxu3 }
 0x8a6   :  { %v1697_v16 = vadd.f32 %v1696_v45, %v1570_v29 }
 0x8a8   :  { %v4757_v9 = vmax.f32 %v1697_v16, 0.0 }
 0x8aa   :  { %1776 = vmatmul.f32.gmra.mxu1 %v4757_v9  ;;  %1841 = vmatmul.f32.gmra.mxu2 %v4757_v9 }
 0x8ad   :  { %v1699_v55 = vpop.f32.mrf.mxu3 }
 0x8ae   :  { %v1700_v24 = vadd.f32 %v1699_v55, %v4516_v34 }
 0x8b0   :  { %v4762_v4 = vmax.f32 %v1700_v24, 0.0 }
 0x8b2   :  { %1779 = vmatmul.f32.gmra.mxu1 %v4762_v4  ;;  %1844 = vmatmul.f32.gmra.mxu2 %v4762_v4 }
 0x8b5   :  { %v1702_v47 = vpop.f32.mrf.mxu3 }
 0x8b6   :  { %v1703_v37 = vadd.f32 %v1702_v47, %v4513_v14 }
 0x8b8   :  { %v4767_v33 = vmax.f32 %v1703_v37, 0.0 }
 0x8ba   :  { %1782 = vmatmul.f32.gmra.mxu1 %v4767_v33  ;;  %1847 = vmatmul.f32.gmra.mxu2 %v4767_v33 }
 0x8bd   :  { %v1705_v6 = vpop.f32.mrf.mxu3 }
 0x8be   :  { %v1706_v21 = vadd.f32 %v1705_v6, %v1585_v31 }
 0x8c0   :  { %v4771_v50 = vmax.f32 %v1706_v21, 0.0 }
 0x8c2   :  { %1785 = vmatmul.f32.gmra.mxu1 %v4771_v50  ;;  %1850 = vmatmul.f32.gmra.mxu2 %v4771_v50 }
 0x8c5   :  { %v1708_v34 = vpop.f32.mrf.mxu3 }
 0x8c6   :  { %v1709_v18 = vadd.f32 %v1708_v34, %v4535_v46 }
 0x8c8   :  { %v4776_v30 = vmax.f32 %v1709_v18, 0.0 }
 0x8ca   :  { %1788 = vmatmul.f32.gmra.mxu1 %v4776_v30  ;;  %1853 = vmatmul.f32.gmra.mxu2 %v4776_v30 }
 0x8cd   :  { %v1711_v14 = vpop.f32.mrf.mxu3 }
 0x8ce   :  { %v1712_v60 = vadd.f32 %v1711_v14, %v4533_v13 }
 0x8d0   :  { %v4781_v26 = vmax.f32 %v1712_v60, 0.0 }
 0x8d2   :  { %1791 = vmatmul.f32.gmra.mxu1 %v4781_v26  ;;  %1856 = vmatmul.f32.gmra.mxu2 %v4781_v26 }
 0x8d5   :  { %v1714_v61 = vpop.f32.mrf.mxu3 }
 0x8d6   :  { %v1715_v38 = vadd.f32 %v1714_v61, %v1600_v7 }
 0x8d8   :  { %v1734_v54 = vmax.f32 %v1715_v38, 0.0 }
 0x8da   :  { %1794 = vmatmul.f32.gmra.mxu1 %v1734_v54  ;;  %1859 = vmatmul.f32.gmra.mxu2 %v1734_v54 }
 0x8dd   :  { %v1717_v46 = vpop.f32.mrf.mxu3 }
 0x8de   :  { %v1718_v29 = vadd.f32 %v1717_v46, %v4554_v5 }
 0x8e0   :  { %v1735_v45 = vmax.f32 %v1718_v29, 0.0 }
 0x8e2   :  { %1797 = vmatmul.f32.gmra.mxu1 %v1735_v45  ;;  %1862 = vmatmul.f32.gmra.mxu2 %v1735_v45 }
 0x8e5   :  { %v2037_v16 = vpop.f32.mrf.mxu3 }
 0x8e7   :  { %v1753_v13 = vpop.f32.mrf.mxu1 }
 0x8ed   :  { %v4788_v6 = vpop.f32.mrf.mxu2 }
 0x8ee   :  { %v2040_v55 = vpop.f32.mrf.mxu3 }
 0x8ef   :  { %2181 = vmatpush.msra.mxu1 %v2040_v55  ;;  %v1756_v24 = vpop.f32.mrf.mxu1 }
 0x8f1   :  { %2182 = vmatpush.msra.mxu1 %v2037_v16 }
 0x8f3   :  { %2183 = vmatpush.msra.mxu1 %v4719_v2 }
 0x8f5   :  { %2184 = vmatpush.msra.mxu1 %v4712_v1  ;;  %v4790_v5 = vpop.f32.mrf.mxu2 }
 0x8f7   :  { %v1759_v47 = vpop.f32.mrf.mxu1 }
 0x8fd   :  { %v4792_v18 = vpop.f32.mrf.mxu2 }
 0x8ff   :  { %v1762_v37 = vpop.f32.mrf.mxu1 }
 0x905   :  { %v4794_v60 = vpop.f32.mrf.mxu2 }
 0x907   :  { %v1765_v31 = vpop.f32.mrf.mxu1 }
 0x90d   :  { %v4796_v38 = vpop.f32.mrf.mxu2 }
 0x90f   :  { %v1768_v21 = vpop.f32.mrf.mxu1 }
 0x915   :  { %v1833_v29 = vpop.f32.mrf.mxu2 }
 0x917   :  { %v1771_v34 = vpop.f32.mrf.mxu1 }
 0x91d   :  { %v1836_v55 = vpop.f32.mrf.mxu2 }
 0x91f   :  { %v1774_v14 = vpop.f32.mrf.mxu1 }
 0x925   :  { %v1839_v0 = vpop.f32.mrf.mxu2 }
 0x927   :  { %v1777_v7 = vpop.f32.mrf.mxu1 }
 0x92d   :  { %v1842_v56 = vpop.f32.mrf.mxu2 }
 0x92f   :  { %v1780_v61 = vpop.f32.mrf.mxu1 }
 0x935   :  { %v1845_v41 = vpop.f32.mrf.mxu2 }
 0x937   :  { %v1783_v46 = vpop.f32.mrf.mxu1 }
 0x93d   :  { %v1848_v28 = vpop.f32.mrf.mxu2 }
 0x93f   :  { %v1786_v16 = vpop.f32.mrf.mxu1 }
 0x945   :  { %v1851_v3 = vpop.f32.mrf.mxu2 }
 0x947   :  { %v1789_v57 = vpop.f32.mrf.mxu1 }
 0x94f   :  { %v1792_v52 = vpop.f32.mrf.mxu1 }
 0x957   :  { %v1795_v25 = vpop.f32.mrf.mxu1 }
 0x95f   :  { %v1798_v49 = vpop.f32.mrf.mxu1 }
 0x960   :  { %1871 = vmatpush.msrb.mxu0 %v1798_v49  ;;  %v1469_v49 = vld [vmem:[%s5114_s5] sm:$0xff] }
 0x962   :  { %1872 = vmatpush.msrb.mxu0 %v1795_v25  ;;  %v1854_v25 = vpop.f32.mrf.mxu2 }
 0x964   :  { %1873 = vmatpush.msrb.mxu0 %v1792_v52 }
 0x966   :  { %1874 = vmatpush.msrb.mxu0 %v1789_v57 }
 0x968   :  { %1875 = vmatpush.msrb.mxu0 %v1786_v16  ;;  %v5573_v16 = vld [vmem:[#allocation6_spill] sm:$0xff] }
 0x96a   :  { %1876 = vmatpush.msrb.mxu0 %v1783_v46  ;;  %v1857_v52 = vpop.f32.mrf.mxu2 }
 0x96c   :  { %1877 = vmatpush.msrb.mxu0 %v1780_v61  ;;  %v5572_v61 = vld [vmem:[#allocation7_spill] sm:$0xff] }
 0x96e   :  { %1878 = vmatpush.msrb.mxu0 %v1777_v7 }
 0x970   :  { %1879 = vmatpush.msrb.mxu0 %v1774_v14 }
 0x972   :  { %1880 = vmatpush.msrb.mxu0 %v1771_v34  ;;  %v1860_v57 = vpop.f32.mrf.mxu2 }
 0x974   :  { %1881 = vmatpush.msrb.mxu0 %v1768_v21 }
 0x976   :  { %1882 = vmatpush.msrb.mxu0 %v1765_v31 }
 0x978   :  { %1883 = vmatpush.msrb.mxu0 %v1762_v37  ;;  %v1974_v37 = vld [vmem:[%s5118_s9 + $0x78] sm:$0xff] }
 0x97a   :  { %1884 = vmatpush.msrb.mxu0 %v1759_v47  ;;  %v1973_v47 = vld [vmem:[%s5118_s9 + $0x70] sm:$0xff] }
 0x97c   :  { %1885 = vmatpush.msrb.mxu0 %v1756_v24  ;;  %v1972_v24 = vld [vmem:[%s5118_s9 + $0x68] sm:$0xff] }
 0x97e   :  { %1886 = vmatpush.msrb.mxu0 %v1753_v13  ;;  %v1971_v13 = vld [vmem:[%s5118_s9 + $0x60] sm:$0xff] }
 0x97f   :  { %1887 = vmatmul.f32.vlgmr.msrb.gmra.mxu0 %v1469_v49 }
 0x980   :  { %1891 = vmatpush.msra.mxu0 %v1735_v45  ;;  %v1970_v45 = vld [vmem:[%s5118_s9 + $0x58] sm:$0xff] }
 0x982   :  { %1892 = vmatpush.msra.mxu0 %v1734_v54  ;;  %v1969_v54 = vld [vmem:[%s5118_s9 + $0x50] sm:$0xff] }
 0x984   :  { %1893 = vmatpush.msra.mxu0 %v4781_v26  ;;  %v1968_v26 = vld [vmem:[%s5118_s9 + $0x48] sm:$0xff] }
 0x986   :  { %1894 = vmatpush.msra.mxu0 %v4776_v30  ;;  %v1967_v30 = vld [vmem:[%s5118_s9 + $0x40] sm:$0xff] }
 0x988   :  { %1895 = vmatpush.msra.mxu0 %v4771_v50  ;;  %v1966_v50 = vld [vmem:[%s5118_s9 + $0x38] sm:$0xff] }
 0x98a   :  { %1896 = vmatpush.msra.mxu0 %v4767_v33  ;;  %v1965_v33 = vld [vmem:[%s5118_s9 + $0x30] sm:$0xff] }
 0x98c   :  { %1897 = vmatpush.msra.mxu0 %v4762_v4  ;;  %v1470_v4 = vld [vmem:[%s5114_s5 + $0x8] sm:$0xff] }
 0x98e   :  { %1898 = vmatpush.msra.mxu0 %v4757_v9  ;;  %v1964_v9 = vld [vmem:[%s5118_s9 + $0x28] sm:$0xff] }
 0x990   :  { %1899 = vmatpush.msra.mxu0 %v4753_v12  ;;  %v1863_v12 = vpop.f32.mrf.mxu2 }
 0x992   :  { %1900 = vmatpush.msra.mxu0 %v4748_v17  ;;  %v1963_v17 = vld [vmem:[%s5118_s9 + $0x20] sm:$0xff] }
 0x994   :  { %1901 = vmatpush.msra.mxu0 %v4743_v22  ;;  %v1962_v22 = vld [vmem:[%s5118_s9 + $0x18] sm:$0xff] }
 0x996   :  { %1902 = vmatpush.msra.mxu0 %v4739_v19  ;;  %v1960_v19 = vld [vmem:[%s5118_s9 + $0x8] sm:$0xff] }
 0x998   :  { %1903 = vmatpush.msra.mxu0 %v4734_v15  ;;  %v1473_v15 = vld [vmem:[%s5116_s7] sm:$0x7] }
 0x99a   :  { %1904 = vmatpush.msra.mxu0 %v4729_v27 }
 0x99c   :  { %1905 = vmatpush.msra.mxu0 %v4725_v8 }
 0x99e   :  { %1906 = vmatpush.msra.mxu0 %v4716_v23  ;;  %v1471_v23 = vld [vmem:[%s5114_s5 + $0x10] sm:$0xff] }
 0x99f   :  { %1907 = vmatmul.f32.vlgmr.msra.gmra.mxu0 %v1470_v4 }
 0x9a0   :  { %1911 = vmatpush.msrb.mxu0 %v1863_v12 }
 0x9a2   :  { %1912 = vmatpush.msrb.mxu0 %v1860_v57 }
 0x9a4   :  { %1913 = vmatpush.msrb.mxu0 %v1857_v52 }
 0x9a6   :  { %1914 = vmatpush.msrb.mxu0 %v1854_v25 }
 0x9a8   :  { %1915 = vmatpush.msrb.mxu0 %v1851_v3 }
 0x9aa   :  { %1916 = vmatpush.msrb.mxu0 %v1848_v28 }
 0x9ac   :  { %1917 = vmatpush.msrb.mxu0 %v1845_v41  ;;  %v1869_v41 = vpop.permute.xlu2 %1868 }
 0x9ae   :  { %1918 = vmatpush.msrb.mxu0 %v1842_v56 }
 0x9b0   :  { %1919 = vmatpush.msrb.mxu0 %v1839_v0 }
 0x9b2   :  { %1920 = vmatpush.msrb.mxu0 %v1836_v55 }
 0x9b4   :  { %1921 = vmatpush.msrb.mxu0 %v1833_v29  ;;  %v2051_v34 = vpop.permute.xlu2 %2050 }
 0x9b6   :  { %1922 = vmatpush.msrb.mxu0 %v4796_v38 }
 0x9b8   :  { %1923 = vmatpush.msrb.mxu0 %v4794_v60 }
 0x9ba   :  { %1924 = vmatpush.msrb.mxu0 %v4792_v18 }
 0x9bc   :  { %1925 = vmatpush.msrb.mxu0 %v4790_v5  ;;  %v2066_v25 = vpop.permute.xlu2 %2065 }
 0x9be   :  { %1926 = vmatpush.msrb.mxu0 %v4788_v6  ;;  %v5571_v6 = vld [vmem:[#allocation5_spill] sm:$0xff] }
 0x9bf   :  { %1927 = vmatmul.f32.vlgmr.msrb.gmra.mxu0 %v1471_v23  ;;  %v5574_v23 = vld [vmem:[#allocation9_spill] sm:$0xff] }
 0x9fc   :  { %v1888_v3 = vpop.f32.mrf.mxu0 }
 0x9fd   :  { %v1889_v56 = vadd.f32 %v1888_v3, %v1869_v41 }
 0xa1c   :  { %v1908_v28 = vpop.f32.mrf.mxu0 }
 0xa1d   :  { %v1909_v0 = vadd.f32 %v1908_v28, %v1889_v56  ;;  %v5575_v56 = vld [vmem:[#allocation8_spill] sm:$0xff] }
 0xa3c   :  { %v1928_v8 = vpop.f32.mrf.mxu0 }
 0xa3d   :  { %v1929_v27 = vadd.f32 %v1928_v8, %v1909_v0 }
 0xa3f   :  { %1954 = vmatpush.msra.mxu0 %v1929_v27  ;;  %v2081_v27 = vpop.permute.xlu2 %2080 }
 0xa40   :  { %2828 = vmatmul.msk.f32.vlgmr.msra.gmra.mxu0 %vm5519_vm11, %v1473_v15  ;;  %vm5523_vm11 = vnez %v5470_v58  ;;  %v5532_v58 = vld [vmem:[#allocation26_spill] sm:$0xff] }
 0xa41   :  { %2829 = vmatpush.msk.msrb.mxu0 %vm5520_vm12, %v5418_v35  ;;  %vm5524_vm12 = vnez %v5472_v10  ;;  %v5552_v10 = vld [vmem:[#allocation25_spill] sm:$0xff] }
 0xa43   :  { %2830 = vmatpush.msk.msrb.mxu0 %vm5521_vm7, %v5418_v35 }
 0xa45   :  { %2831 = vmatpush.msk.msrb.mxu0 %vm5522_vm6, %v5418_v35 }
 0xa47   :  { %2832 = vmatpush.msk.msrb.mxu0 %vm5467_vm9, %v5418_v35  ;;  %vm5531_vm9 = vnez %v5530_v53 }
 0xa49   :  { %2833 = vmatpush.msk.msrb.mxu0 %vm5469_vm3, %v5418_v35  ;;  %vm5526_vm3 = vnez %v5525_v36 }
 0xa4b   :  { %2834 = vmatpush.msk.msrb.mxu0 %vm5523_vm11, %v5418_v35 }
 0xa4d   :  { %2835 = vmatpush.msk.msrb.mxu0 %vm5524_vm12, %v5418_v35  ;;  %vm5553_vm12 = vnez %v5552_v10 }
 0xa4f   :  { %2836 = vmatpush.msk.msrb.mxu0 %vm5475_vm2, %v5418_v35 }
 0xa51   :  { %2837 = vmatpush.msk.msrb.mxu0 %vm5439_vm4, %v5418_v35  ;;  %vm5536_vm4 = vnez %v5295_v59  ;;  %v5548_v59 = vld [vmem:[#allocation20_spill] sm:$0xff] }
 0xa52   :  { %vm5549_vm6 = vnez %v5548_v59 }
 0xa53   :  { %2838 = vmatpush.msk.msrb.mxu0 %vm5441_vm10, %v5418_v35  ;;  %vm5533_vm10 = vnez %v5532_v58 }
 0xa55   :  { %2839 = vmatpush.msk.msrb.mxu0 %vm5526_vm3, %v5418_v35  ;;  %vm5555_vm3 = vcmask 392192  }
 0xa57   :  { %2840 = vmatpush.msk.msrb.mxu0 %vm5481_vm0, %v5418_v35  ;;  %vm5543_vm0 = vnez %v5542_v42 }
 0xa59   :  { %2841 = vmatpush.msk.msrb.mxu0 %vm5413_vm13, %v5418_v35  ;;  %vm5535_vm13 = vnez %v5284_v51  ;;  %v5546_v51 = vld [vmem:[#allocation18_spill] sm:$0xff] }
 0xa5a   :  { %vm5547_vm7 = vnez %v5546_v51  ;;  %v2096_v51 = vpop.permute.xlu2 %2095 }
 0xa5b   :  { %2842 = vmatpush.msk.msrb.mxu0 %vm5415_vm8, %v5418_v35  ;;  %vm5534_vm8 = vnez %v5282_v48  ;;  %v5544_v48 = vld [vmem:[#allocation17_spill] sm:$0xff] }
 0xa5c   :  { %vm5545_vm2 = vnez %v5544_v48 }
 0xa5d   :  { %2843 = vmatpush.msk.msrb.mxu0 %vm5531_vm9, %v5418_v35  ;;  %vm5556_vm9 = vmmov %vm5555_vm3 }
 0xa5f   :  { %2844 = vmatpush.msk.msrb.mxu0 %vm5533_vm10, %v5418_v35  ;;  %vm5558_vm10 = vmmov %vm5555_vm3 }
 0xa60   :  { %2013 = vmatmul.f32.vlgmr.msrb.gmra.mxu0 %v4712_v1 }
 0xa61   :  { %2893 = vmatpush.msk.msra.mxu0 %vm5398_vm5, %v5418_v35  ;;  %vm5537_vm5 = vnez %v5300_v63  ;;  %v5550_v63 = vld [vmem:[#allocation23_spill] sm:$0xff] }
 0xa62   :  { %vm5551_vm11 = vnez %v5550_v63 }
 0xa63   :  { %2894 = vmatpush.msk.msra.mxu0 %vm5399_vm1, %v5418_v35  ;;  %vm5539_vm1 = vnez %v5538_v32 }
 0xa65   :  { %2895 = vmatpush.msk.msra.mxu0 %vm5400_vm14, %v5418_v35  ;;  %vm5541_vm14 = vnez %v5540_v40  ;;  %v5577_v40 = vld [vmem:[#allocation11_spill] sm:$0xff] }
 0xa67   :  { %2896 = vmatpush.msk.msra.mxu0 %vm5534_vm8, %v5418_v35  ;;  %vm5559_vm8 = vmmov %vm5555_vm3 }
 0xa68   :  { %2016 = vmatmul.f32.gmra.mxu0 %v4719_v2  ;;  %v1959_v2 = vld [vmem:[%s5118_s9] sm:$0xff] }
 0xa69   :  { %2897 = vmatpush.msk.msra.mxu0 %vm5535_vm13, %v5418_v35  ;;  %vm5560_vm13 = vmmov %vm5555_vm3 }
 0xa6b   :  { %2898 = vmatpush.msk.msra.mxu0 %vm5536_vm4, %v5418_v35  ;;  %vm5561_vm4 = vmmov %vm5555_vm3 }
 0xa6d   :  { %2899 = vmatpush.msk.msra.mxu0 %vm5537_vm5, %v5418_v35  ;;  %vm5562_vm5 = vmmov %vm5555_vm3 }
 0xa6f   :  { %2900 = vmatpush.msk.msra.mxu0 %vm5539_vm1, %v5418_v35  ;;  %vm5563_vm1 = vmmov %vm5555_vm3 }
 0xa71   :  { %2901 = vmatpush.msk.msra.mxu0 %vm5541_vm14, %v5418_v35  ;;  %vm5564_vm14 = vmmov %vm5563_vm1 }
 0xa73   :  { %2902 = vmatpush.msk.msra.mxu0 %vm5543_vm0, %v5418_v35  ;;  %vm5565_vm0 = vmmov %vm5563_vm1 }
 0xa75   :  { %2903 = vmatpush.msk.msra.mxu0 %vm5545_vm2, %v5418_v35  ;;  %vm5566_vm2 = vmmov %vm5565_vm0 }
 0xa77   :  { %2904 = vmatpush.msk.msra.mxu0 %vm5547_vm7, %v5418_v35  ;;  %vm5567_vm7 = vmmov %vm5565_vm0 }
 0xa79   :  { %2905 = vmatpush.msk.msra.mxu0 %vm5549_vm6, %v5418_v35  ;;  %vm5568_vm6 = vmmov %vm5565_vm0 }
 0xa7b   :  { %2906 = vmatpush.msk.msra.mxu0 %vm5551_vm11, %v5418_v35  ;;  %vm5569_vm11 = vmmov %vm5565_vm0 }
 0xa7d   :  { %2907 = vmatpush.msk.msra.mxu0 %vm5553_vm12, %v5418_v35  ;;  %vm5570_vm12 = vmmov %vm5565_vm0 }
 0xa7f   :  { %2908 = vmatpush.msk.msra.mxu0 %vm5509_vm15, %v5418_v35  ;;  %v1961_v35 = vld [vmem:[%s5118_s9 + $0x10] sm:$0xff]  ;;  %vm5557_vm15 = vmmov %vm5555_vm3 }
 0xabd   :  { %v4928_v62 = vpop.f32.mrf.mxu0 }
 0xadd   :  { %v2014_v44 = vpop.f32.mrf.mxu0 }
 0xae5   :  { %v2017_v1 = vpop.f32.mrf.mxu0 }
 0xae6   :  { %2185 = vmatpush.msra.mxu1 %v2017_v1 }
 0xae8   :  { %2186 = vmatpush.msra.mxu1 %v2014_v44  ;;  %v5578_v44 = vld [vmem:[#allocation29_spill] sm:$0xff] }
 0xae9   :  { %2861 = vmatmul.msk.f32.vlgmr.msra.gmra.mxu1 %vm5555_vm3, %v1959_v2  ;;  %vm5582_vm3 = vcmask 64512  }
 0xaf1   :  { %2862 = vmatmul.msk.f32.gmra.mxu1 %vm5556_vm9, %v1960_v19 }
 0xaf9   :  { %2863 = vmatmul.msk.f32.gmra.mxu1 %vm5557_vm15, %v1961_v35  ;;  %v5579_v35 = vld [vmem:[#allocation14_spill] sm:$0xff]  ;;  %vm5583_vm15 = vcmask 1042432  }
 0xb01   :  { %2864 = vmatmul.msk.f32.gmra.mxu1 %vm5558_vm10, %v1962_v22 }
 0xb09   :  { %2865 = vmatmul.msk.f32.gmra.mxu1 %vm5559_vm8, %v1963_v17  ;;  %vm2519_vm8 = vcmask 0  }
 0xb11   :  { %2866 = vmatmul.msk.f32.gmra.mxu1 %vm5560_vm13, %v1964_v9  ;;  %v2111_v9 = vpop.permute.xlu2 %2110 }
 0xb19   :  { %2867 = vmatmul.msk.f32.gmra.mxu1 %vm5561_vm4, %v1965_v33 }
 0xb21   :  { %2868 = vmatmul.msk.f32.gmra.mxu1 %vm5562_vm5, %v1966_v50 }
 0xb29   :  { %2869 = vmatmul.msk.f32.gmra.mxu1 %vm5563_vm1, %v1967_v30 }
 0xb31   :  { %2870 = vmatmul.msk.f32.gmra.mxu1 %vm5564_vm14, %v1968_v26 }
 0xb39   :  { %2871 = vmatmul.msk.f32.gmra.mxu1 %vm5565_vm0, %v1969_v54  ;;  %v5580_v54 = vld [vmem:[#allocation31_spill] sm:$0xff] }
 0xb41   :  { %2872 = vmatmul.msk.f32.gmra.mxu1 %vm5566_vm2, %v1970_v45 }
 0xb49   :  { %2873 = vmatmul.msk.f32.gmra.mxu1 %vm5567_vm7, %v1971_v13 }
 0xb51   :  { %2874 = vmatmul.msk.f32.gmra.mxu1 %vm5568_vm6, %v1972_v24 }
 0xb59   :  { %2875 = vmatmul.msk.f32.gmra.mxu1 %vm5569_vm11, %v1973_v47  ;;  %v5581_v47 = vld [vmem:[#allocation30_spill] sm:$0xff] }
 0xb61   :  { %2876 = vmatmul.msk.f32.gmra.mxu1 %vm5570_vm12, %v1974_v37 }
 0xb66   :  { %v2188_v31 = vpop.f32.mrf.mxu1 }
 0xb67   :  { %v2189_v21 = vadd.f32 %v2188_v31, %v5571_v6 }
 0xb69   :  { %v4995_v5 = vmax.f32 %v2189_v21, 0.0 }
 0xb6b   :  { %2268 = vmatmul.f32.vlgmr.msra.gmra.mxu2 %v4995_v5  ;;  %2333 = vmatmul.f32.vlgmr.msra.gmra.mxu0 %v4995_v5 }
 0xb6e   :  { %v2191_v18 = vpop.f32.mrf.mxu1 }
 0xb6f   :  { %v2192_v14 = vadd.f32 %v2191_v18, %v2051_v34 }
 0xb71   :  { %v4999_v60 = vmax.f32 %v2192_v14, 0.0 }
 0xb73   :  { %2271 = vmatmul.f32.gmra.mxu2 %v4999_v60  ;;  %2336 = vmatmul.f32.gmra.mxu0 %v4999_v60 }
 0xb76   :  { %v2194_v7 = vpop.f32.mrf.mxu1 }
 0xb77   :  { %v2195_v38 = vadd.f32 %v2194_v7, %v5572_v61 }
 0xb79   :  { %v5004_v46 = vmax.f32 %v2195_v38, 0.0 }
 0xb7b   :  { %2274 = vmatmul.f32.gmra.mxu2 %v5004_v46  ;;  %2339 = vmatmul.f32.gmra.mxu0 %v5004_v46 }
 0xb7e   :  { %v2197_v29 = vpop.f32.mrf.mxu1 }
 0xb7f   :  { %v2198_v55 = vadd.f32 %v2197_v29, %v5573_v16 }
 0xb81   :  { %v5009_v49 = vmax.f32 %v2198_v55, 0.0 }
 0xb83   :  { %2277 = vmatmul.f32.gmra.mxu2 %v5009_v49  ;;  %2342 = vmatmul.f32.gmra.mxu0 %v5009_v49 }
 0xb86   :  { %v2200_v52 = vpop.f32.mrf.mxu1 }
 0xb87   :  { %v2201_v57 = vadd.f32 %v2200_v52, %v2066_v25 }
 0xb89   :  { %v5013_v4 = vmax.f32 %v2201_v57, 0.0 }
 0xb8b   :  { %2280 = vmatmul.f32.gmra.mxu2 %v5013_v4  ;;  %2345 = vmatmul.f32.gmra.mxu0 %v5013_v4 }
 0xb8e   :  { %v2203_v12 = vpop.f32.mrf.mxu1 }
 0xb8f   :  { %v2204_v3 = vadd.f32 %v2203_v12, %v5574_v23 }
 0xb91   :  { %v5018_v28 = vmax.f32 %v2204_v3, 0.0 }
 0xb93   :  { %2283 = vmatmul.f32.gmra.mxu2 %v5018_v28  ;;  %2348 = vmatmul.f32.gmra.mxu0 %v5018_v28 }
 0xb96   :  { %v2206_v41 = vpop.f32.mrf.mxu1 }
 0xb97   :  { %v2207_v0 = vadd.f32 %v2206_v41, %v5575_v56 }
 0xb99   :  { %v5023_v8 = vmax.f32 %v2207_v0, 0.0 }
 0xb9b   :  { %2286 = vmatmul.f32.gmra.mxu2 %v5023_v8  ;;  %2351 = vmatmul.f32.gmra.mxu0 %v5023_v8 }
 0xb9e   :  { %v2209_v15 = vpop.f32.mrf.mxu1 }
 0xb9f   :  { %v2210_v36 = vadd.f32 %v2209_v15, %v2081_v27 }
 0xba1   :  { %v5027_v39 = vmax.f32 %v2210_v36, 0.0 }
 0xba3   :  { %2289 = vmatmul.f32.gmra.mxu2 %v5027_v39  ;;  %2354 = vmatmul.f32.gmra.mxu0 %v5027_v39 }
 0xba6   :  { %v2212_v11 = vpop.f32.mrf.mxu1 }
 0xba7   :  { %v2213_v53 = vadd.f32 %v2212_v11, %v5576_v20 }
 0xba9   :  { %v5032_v58 = vmax.f32 %v2213_v53, 0.0 }
 0xbab   :  { %2292 = vmatmul.f32.gmra.mxu2 %v5032_v58  ;;  %2357 = vmatmul.f32.gmra.mxu0 %v5032_v58 }
 0xbae   :  { %v2215_v32 = vpop.f32.mrf.mxu1 }
 0xbaf   :  { %v2216_v42 = vadd.f32 %v2215_v32, %v5577_v40 }
 0xbb1   :  { %v5037_v48 = vmax.f32 %v2216_v42, 0.0  ;;  %v1991_v42 = vld [vmem:[%s5120_s11] sm:$0xff] }
 0xbb3   :  { %2295 = vmatmul.f32.gmra.mxu2 %v5037_v48  ;;  %2360 = vmatmul.f32.gmra.mxu0 %v5037_v48 }
 0xbb6   :  { %v2218_v59 = vpop.f32.mrf.mxu1 }
 0xbb7   :  { %v2219_v63 = vadd.f32 %v2218_v59, %v2096_v51 }
 0xbb9   :  { %v5041_v10 = vmax.f32 %v2219_v63, 0.0 }
 0xbbb   :  { %2298 = vmatmul.f32.gmra.mxu2 %v5041_v10  ;;  %2363 = vmatmul.f32.gmra.mxu0 %v5041_v10 }
 0xbbe   :  { %v2221_v43 = vpop.f32.mrf.mxu1 }
 0xbbf   :  { %v2222_v1 = vadd.f32 %v2221_v43, %v5578_v44  ;;  %v2450_v43 = vpop.permute.xlu0 %2449 }
 0xbc1   :  { %v5046_v2 = vmax.f32 %v2222_v1, 0.0 }
 0xbc3   :  { %2301 = vmatmul.f32.gmra.mxu2 %v5046_v2  ;;  %2366 = vmatmul.f32.gmra.mxu0 %v5046_v2 }
 0xbc6   :  { %v2224_v19 = vpop.f32.mrf.mxu1 }
 0xbc7   :  { %v2225_v22 = vadd.f32 %v2224_v19, %v5579_v35 }
 0xbc9   :  { %v5051_v17 = vmax.f32 %v2225_v22, 0.0 }
 0xbcb   :  { %2304 = vmatmul.f32.gmra.mxu2 %v5051_v17  ;;  %2369 = vmatmul.f32.gmra.mxu0 %v5051_v17 }
 0xbce   :  { %v2227_v33 = vpop.f32.mrf.mxu1 }
 0xbcf   :  { %v2228_v50 = vadd.f32 %v2227_v33, %v2111_v9 }
 0xbd1   :  { %v2249_v30 = vmax.f32 %v2228_v50, 0.0 }
 0xbd3   :  { %2307 = vmatmul.f32.gmra.mxu2 %v2249_v30  ;;  %2372 = vmatmul.f32.gmra.mxu0 %v2249_v30 }
 0xbd6   :  { %v2230_v26 = vpop.f32.mrf.mxu1 }
 0xbd7   :  { %v2231_v45 = vadd.f32 %v2230_v26, %v5580_v54  ;;  %v2911_v54 = vld [vmem:[%s5124_s15 + $0x4] sm:$0x7]  ;;  %s2913_s15 = spop %2912 }
 0xbd9   :  { %v2250_v13 = vmax.f32 %v2231_v45, 0.0 }
 0xbdb   :  { %2310 = vmatmul.f32.gmra.mxu2 %v2250_v13  ;;  %2375 = vmatmul.f32.gmra.mxu0 %v2250_v13 }
 0xbde   :  { %v2233_v24 = vpop.f32.mrf.mxu1 }
 0xbdf   :  { %v2234_v37 = vadd.f32 %v2233_v24, %v5581_v47 }
 0xbe1   :  { %v2251_v31 = vmax.f32 %v2234_v37, 0.0 }
 0xbe3   :  { %2313 = vmatmul.f32.gmra.mxu2 %v2251_v31  ;;  %2378 = vmatmul.f32.gmra.mxu0 %v2251_v31 }
 0xbe8   :  { %v5057_v7 = vpop.f32.mrf.mxu0 }
 0xbee   :  { %v2269_v6 = vpop.f32.mrf.mxu2 }
 0xbf0   :  { %v5059_v38 = vpop.f32.mrf.mxu0 }
 0xbf6   :  { %v2272_v21 = vpop.f32.mrf.mxu2 }
 0xbf8   :  { %v5061_v16 = vpop.f32.mrf.mxu0 }
 0xbfe   :  { %v2275_v34 = vpop.f32.mrf.mxu2 }
 0xc00   :  { %v5063_v25 = vpop.f32.mrf.mxu0 }
 0xc06   :  { %v2278_v18 = vpop.f32.mrf.mxu2 }
 0xc08   :  { %v5065_v12 = vpop.f32.mrf.mxu0 }
 0xc0e   :  { %v2281_v14 = vpop.f32.mrf.mxu2 }
 0xc10   :  { %v2349_v3 = vpop.f32.mrf.mxu0 }
 0xc16   :  { %v2284_v61 = vpop.f32.mrf.mxu2 }
 0xc18   :  { %v2352_v56 = vpop.f32.mrf.mxu0 }
 0xc1e   :  { %v2287_v29 = vpop.f32.mrf.mxu2 }
 0xc20   :  { %v2355_v27 = vpop.f32.mrf.mxu0 }
 0xc26   :  { %v2290_v55 = vpop.f32.mrf.mxu2 }
 0xc28   :  { %v2358_v11 = vpop.f32.mrf.mxu0 }
 0xc2e   :  { %v2293_v52 = vpop.f32.mrf.mxu2 }
 0xc30   :  { %v2361_v53 = vpop.f32.mrf.mxu0 }
 0xc36   :  { %v2296_v57 = vpop.f32.mrf.mxu2 }
 0xc38   :  { %v2364_v32 = vpop.f32.mrf.mxu0 }
 0xc3e   :  { %v2299_v23 = vpop.f32.mrf.mxu2 }
 0xc40   :  { %v2367_v40 = vpop.f32.mrf.mxu0 }
 0xc46   :  { %v2302_v41 = vpop.f32.mrf.mxu2 }
 0xc48   :  { %v2370_v51 = vpop.f32.mrf.mxu0 }
 0xc4e   :  { %v2305_v0 = vpop.f32.mrf.mxu2 }
 0xc50   :  { %v2373_v59 = vpop.f32.mrf.mxu0 }
 0xc56   :  { %v2308_v15 = vpop.f32.mrf.mxu2 }
 0xc58   :  { %v2376_v63 = vpop.f32.mrf.mxu0 }
 0xc5e   :  { %v2311_v36 = vpop.f32.mrf.mxu2 }
 0xc66   :  { %v2314_v20 = vpop.f32.mrf.mxu2 }
 0xc67   :  { %2387 = vmatpush.msrb.mxu3 %v2314_v20 }
 0xc69   :  { %2388 = vmatpush.msrb.mxu3 %v2311_v36 }
 0xc6b   :  { %2389 = vmatpush.msrb.mxu3 %v2308_v15 }
 0xc6d   :  { %2390 = vmatpush.msrb.mxu3 %v2305_v0 }
 0xc6f   :  { %2391 = vmatpush.msrb.mxu3 %v2302_v41 }
 0xc71   :  { %2392 = vmatpush.msrb.mxu3 %v2299_v23 }
 0xc73   :  { %2393 = vmatpush.msrb.mxu3 %v2296_v57 }
 0xc75   :  { %2394 = vmatpush.msrb.mxu3 %v2293_v52 }
 0xc77   :  { %2395 = vmatpush.msrb.mxu3 %v2290_v55 }
 0xc79   :  { %2396 = vmatpush.msrb.mxu3 %v2287_v29 }
 0xc7b   :  { %2397 = vmatpush.msrb.mxu3 %v2284_v61 }
 0xc7d   :  { %2398 = vmatpush.msrb.mxu3 %v2281_v14  ;;  %v2963_v14 = vmov 768.0  }
 0xc7f   :  { %2399 = vmatpush.msrb.mxu3 %v2278_v18 }
 0xc81   :  { %2400 = vmatpush.msrb.mxu3 %v2275_v34 }
 0xc83   :  { %2401 = vmatpush.msrb.mxu3 %v2272_v21 }
 0xc85   :  { %2402 = vmatpush.msrb.mxu3 %v2269_v6 }
 0xc86   :  { %2403 = vmatmul.f32.vlgmr.msrb.gmra.mxu3 %v1991_v42 }
 0xc87   :  { %2407 = vmatpush.msra.mxu3 %v2251_v31 }
 0xc89   :  { %2408 = vmatpush.msra.mxu3 %v2250_v13 }
 0xc8b   :  { %2409 = vmatpush.msra.mxu3 %v2249_v30 }
 0xc8d   :  { %2410 = vmatpush.msra.mxu3 %v5051_v17 }
 0xc8f   :  { %2411 = vmatpush.msra.mxu3 %v5046_v2 }
 0xc91   :  { %2412 = vmatpush.msra.mxu3 %v5041_v10  ;;  %v1995_v10 = vld [vmem:[%s5122_s13] sm:$0x7] }
 0xc93   :  { %2413 = vmatpush.msra.mxu3 %v5037_v48  ;;  %v1992_v48 = vld [vmem:[%s5120_s11 + $0x8] sm:$0xff] }
 0xc95   :  { %2414 = vmatpush.msra.mxu3 %v5032_v58 }
 0xc97   :  { %2415 = vmatpush.msra.mxu3 %v5027_v39  ;;  %v2379_v39 = vpop.f32.mrf.mxu0 }
 0xc99   :  { %2416 = vmatpush.msra.mxu3 %v5023_v8 }
 0xc9b   :  { %2417 = vmatpush.msra.mxu3 %v5018_v28 }
 0xc9d   :  { %2418 = vmatpush.msra.mxu3 %v5013_v4 }
 0xc9f   :  { %2419 = vmatpush.msra.mxu3 %v5009_v49  ;;  %v2385_v49 = vpop.permute.xlu2 %2384 }
 0xca1   :  { %2420 = vmatpush.msra.mxu3 %v5004_v46 }
 0xca3   :  { %2421 = vmatpush.msra.mxu3 %v4999_v60 }
 0xca5   :  { %2422 = vmatpush.msra.mxu3 %v4995_v5  ;;  %v1993_v5 = vld [vmem:[%s5120_s11 + $0x10] sm:$0xff] }
 0xca6   :  { %2423 = vmatmul.f32.vlgmr.msra.gmra.mxu3 %v1992_v48 }
 0xca7   :  { %2427 = vmatpush.msrb.mxu3 %v2379_v39  ;;  %v1934_v44 = vpop.permute.xlu2 %1933 }
 0xca8   :  { %v1957_v2 = vadd.f32 %v4928_v62, %v1934_v44 }
 0xca9   :  { %2428 = vmatpush.msrb.mxu3 %v2376_v63 }
 0xcab   :  { %2429 = vmatpush.msrb.mxu3 %v2373_v59 }
 0xcad   :  { %2430 = vmatpush.msrb.mxu3 %v2370_v51 }
 0xcaf   :  { %2431 = vmatpush.msrb.mxu3 %v2367_v40 }
 0xcb1   :  { %2432 = vmatpush.msrb.mxu3 %v2364_v32 }
 0xcb3   :  { %2433 = vmatpush.msrb.mxu3 %v2361_v53 }
 0xcb5   :  { %2434 = vmatpush.msrb.mxu3 %v2358_v11 }
 0xcb7   :  { %2435 = vmatpush.msrb.mxu3 %v2355_v27 }
 0xcb9   :  { %2436 = vmatpush.msrb.mxu3 %v2352_v56 }
 0xcbb   :  { %2437 = vmatpush.msrb.mxu3 %v2349_v3 }
 0xcbd   :  { %2438 = vmatpush.msrb.mxu3 %v5065_v12 }
 0xcbf   :  { %2439 = vmatpush.msrb.mxu3 %v5063_v25 }
 0xcc1   :  { %2440 = vmatpush.msrb.mxu3 %v5061_v16 }
 0xcc3   :  { %2441 = vmatpush.msrb.mxu3 %v5059_v38 }
 0xcc5   :  { %2442 = vmatpush.msrb.mxu3 %v5057_v7 }
 0xcc6   :  { %2443 = vmatmul.f32.vlgmr.msrb.gmra.mxu3 %v1993_v5 }
 0xd09   :  { %v2404_v60 = vpop.f32.mrf.mxu3 }
 0xd0a   :  { %v2405_v4 = vadd.f32 %v2404_v60, %v2385_v49 }
 0xd29   :  { %v2424_v46 = vpop.f32.mrf.mxu3 }
 0xd2a   :  { %v2425_v28 = vadd.f32 %v2424_v46, %v2405_v4 }
 0xd49   :  { %v2444_v8 = vpop.f32.mrf.mxu3 }
 0xd4a   :  { %v2445_v58 = vadd.f32 %v2444_v8, %v2425_v28 }
 0xd4c   :  { %2470 = vmatpush.msra.mxu3 %v2445_v58 }
 0xd4d   :  { %2909 = vmatmul.msk.f32.vlgmr.msra.gmra.mxu3 %vm5582_vm3, %v1995_v10 }
 0xdd0   :  { %v2472_v1 = vpop.f32.mrf.mxu3 }
 0xdd1   :  { %v2473_v19 = vadd.f32 %v2472_v1, %v2450_v43 }
 0xdd3   :  { %v2475_v35 = vadd.f32 %v2473_v19, %v1957_v2 }
 0xdd5   :  { %v2476_v22 = vmul.f32 0.5, %v2475_v35 }
 0xdd7   :  { %2910 = vst [vmem:[%s5125_s16 + $0x4] sm:$0x7] %v2476_v22  ;;  %v2484_v17 = vand.u32 2147483647, %v2476_v22  ;;  %v2481_v45 = vmax.f32 %v2476_v22, 0.0  ;;  %v2482_v13 = vmul.f32 %v2911_v54, %v2476_v22  ;;  %s2964_s16 = smov [#allocation2]  }
 0xdd8   :  { %s2528_s23 = sshll.u32 %s2964_s16, 4  ;;  %s2529_s23 = int_to_ptr.vmem [resolvable:$true] %s2528_s23 }
 0xdd9   :  { %v2485_v9 = vsub.f32 0.0, %v2484_v17  ;;  %v2483_v6 = vsub.f32 %v2481_v45, %v2482_v13 }
 0xddb   :  { %v2486_v33 = vmul.f32 1.442695, %v2485_v9 }
 0xddd   :  { %2929 = vpow2.f32 %v2486_v33 }
 0xde3   :  { %v2930_v50 = vpop.eup %2929 }
 0xde4   :  { %v2488_v30 = vadd.f32 1.0, %v2930_v50  ;;  %v2491_v26 = vmul.f32 -0.5, %v2930_v50  ;;  %v2494_v24 = vand.u32 2147483647, %v2930_v50 }
 0xde6   :  { %2931 = vlog2.f32 %v2488_v30  ;;  %v2492_v62 = vadd.f32 1.0, %v2491_v26  ;;  %vm2495_vm9 = vcmp.lt.f32.partialorder %v2494_v24, 0.0004427343 }
 0xde7   :  { %2933 = vrcp.f32 %v2963_v14 }
 0xde8   :  { %v2493_v31 = vmul.f32 %v2930_v50, %v2492_v62 }
 0xdec   :  { %v2932_v47 = vpop.eup %2931 }
 0xded   :  { %v2490_v37 = vmul.f32 0.6931472, %v2932_v47  ;;  %v2934_v7 = vpop.eup %2933 }
 0xdee   :  { %v2510_v61 = vmul.f32 768.0, %v2934_v7  ;;  %vm2514_vm10 = vweird.f32 %v2934_v7 }
 0xdef   :  { %v2496_v21 = vsel %vm2495_vm9, %v2493_v31, %v2490_v37 }
 0xdf0   :  { %v2497_v34 = vadd.f32 %v2496_v21, %v2483_v6  ;;  %v2511_v38 = vsub.f32 1.0, %v2510_v61 }
 0xdf2   :  { %v2498_v18 = vsel %vm5583_vm15, %v2497_v34, 0.0  ;;  %v2512_v25 = vmul.f32 %v2934_v7, %v2511_v38 }
 0xdf3   :  { %2499 = vadd.xlane.f32.xlu2 %v2498_v18 }
 0xdf4   :  { %v2513_v12 = vadd.f32 %v2934_v7, %v2512_v25 }
 0xdf6   :  { %v2515_v41 = vsel %vm2514_vm10, %v2934_v7, %v2513_v12 }
 0xe66   :  { %v2500_v29 = vpop.xlane.xlu2 %2499 }
 0xe67   :  { %v2501_v16 = vrot.slane %v2500_v29, 4 }
 0xe69   :  { %v2502_v55 = vadd.f32 %v2501_v16, %v2500_v29 }
 0xe6b   :  { %v2503_v52 = vrot.slane %v2502_v55, 2 }
 0xe6d   :  { %v2504_v57 = vadd.f32 %v2503_v52, %v2502_v55 }
 0xe6f   :  { %v2505_v23 = vrot.slane %v2504_v57, 1 }
 0xe71   :  { %v2506_v3 = vadd.f32 %v2505_v23, %v2504_v57 }
 0xe73   :  { %2914 = vpush %v2506_v3 }
 0xe74   :  { %2916 = vpush %v2515_v41 }
 0xea4   :  { %s2915_s3 = spop %2914 }
 0xea5   :  { %s2508_s27 = sadd.f32 %s2915_s3, %s2913_s15  ;;  %s2917_s28 = spop %2916 }
 0xea7   :  { %s2517_s8 = smul.f32 %s2917_s28, %s2508_s27 }
 0xea9   :  { %v2518_v56 = vstv %s2517_s8 }
 0xeaa   :  { %2520 = vst.msk [vmem:[#allocation2] sm:$0x1] %vm2519_vm8, %v2518_v56 }
 0xeab   :  { %2533 = dma.vmem_to_hbm [thread:$0]  %s2529_s23, 16, %s2531_s25, [#allocation3]  }
 0xeac   :  { %2959 = dma.done.wait [#allocation3], 16  }
 0xead   :  { %2960 = vsyncadd [#allocation3], 4294967280 }
 0xeae   :  { %2540 = vsyncpa [#allocation3], 1 }

</bundles_post_ra>
